<compile_context>
chip_gen: v7x
topology: tpu7x:2x2x1
jax: 0.10.0
libtpu: 0.0.40
codegen_flags: <defaults>
</compile_context>

<pallas_src>
import itertools

import numpy as np
import jax
import jax.numpy as jnp
from jax.experimental import pallas as pl
from jax.experimental.pallas import tpu as pltpu

F32 = jnp.float32
BF16 = jnp.bfloat16
VMEM_LIMIT = 32 * 1024 * 1024   # safe on v5e/v6e (128 MiB) and v7x (64 MiB)


def _cparams(n_parallel=1):
    return pltpu.CompilerParams(
        dimension_semantics=("parallel",) * n_parallel,
        vmem_limit_bytes=VMEM_LIMIT)


# --------------------- kernel 1: fused conv + BN + ReLU (both parities) ------

def conv_pair_kernel(p_odd_ref, p_even_ref, w_odd_ref, w_even_ref,
                     sh_odd_ref, sh_even_ref, o_odd_ref, o_even_ref):
    # one batch element per grid step
    # p_odd: (1, L, C*5) bf16, w_odd: (C*5, 2H) bf16 (BN + bias folded),
    # sh_*: (1, 2H) f32, outputs f32.
    yo = jnp.dot(p_odd_ref[0], w_odd_ref[...], preferred_element_type=jnp.float32)
    o_odd_ref[0] = jnp.maximum(yo + sh_odd_ref[...], 0.0)
    ye = jnp.dot(p_even_ref[0], w_even_ref[...], preferred_element_type=jnp.float32)
    o_even_ref[0] = jnp.maximum(ye + sh_even_ref[...], 0.0)


# --------------------- kernel 2: fused bidirectional GRU ---------------------

def bigru_kernel(x_ref, wi_f_ref, wi_b_ref, wh_f_ref, wh_b_ref,
                 bi_f_ref, bi_b_ref, bh_f_ref, bh_b_ref, out_ref):
    # x: (1, L, I) f32.  wi_*: (I, 3H) bf16.  wh_*: (H, 3H) f32.  b*: (1, 3H).
    # out: (1, L, 2H) f32 with [:, :, :H] = forward, [:, :, H:] = backward.
    L = x_ref.shape[1]
    H = wh_f_ref.shape[0]
    x = x_ref[0].astype(BF16)                                   # (L, I)
    # hoisted input projections: one fat MXU matmul per direction
    gi_f = jnp.dot(x, wi_f_ref[...], preferred_element_type=jnp.float32) + bi_f_ref[...]
    gi_b = jnp.dot(x, wi_b_ref[...], preferred_element_type=jnp.float32) + bi_b_ref[...]
    wh_f, wh_b = wh_f_ref[...], wh_b_ref[...]
    bh_f, bh_b = bh_f_ref[...], bh_b_ref[...]

    def cell(gi_t, h, wh, bh):
        gh = jnp.dot(h, wh, preferred_element_type=jnp.float32) + bh
        r = jax.nn.sigmoid(gi_t[:, :H] + gh[:, :H])
        z = jax.nn.sigmoid(gi_t[:, H:2 * H] + gh[:, H:2 * H])
        n = jnp.tanh(gi_t[:, 2 * H:] + r * gh[:, 2 * H:])
        return (1.0 - z) * n + z * h

    h_f = jnp.zeros((1, H), jnp.float32)
    h_b = jnp.zeros((1, H), jnp.float32)
    fwd = [None] * L
    bwd = [None] * L
    for s in range(L):                       # statically unrolled (short fixed L)
        h_f = cell(gi_f[s:s + 1, :], h_f, wh_f, bh_f)
        fwd[s] = h_f
        t_rev = L - 1 - s                    # backward dir: index reversed time
        h_b = cell(gi_b[t_rev:t_rev + 1, :], h_b, wh_b, bh_b)
        bwd[t_rev] = h_b
    rows = [jnp.concatenate([fwd[t], bwd[t]], axis=-1) for t in range(L)]
    out_ref[0] = jnp.concatenate(rows, axis=0)                  # single (L, 2H) store


# --------------------- kernel 3: fused tail (LN + attn + pools + FM + FC) ----

def tail_kernel(xc_odd_ref, xc_even_ref, xg_odd_ref, xg_even_ref,
                ln_og_ref, ln_ob_ref, ln_eg_ref, ln_eb_ref,
                aw_co_ref, ab_co_ref, aw_ce_ref, ab_ce_ref,
                aw_go_ref, ab_go_ref, aw_ge_ref, ab_ge_ref,
                fcw_ref, fcb_ref, ow_ref, ob_ref, out_ref):
    # one batch element per grid step; x* blocks are (1, L, F).
    def layer_norm(x, g, b):
        mu = jnp.mean(x, axis=-1, keepdims=True)
        var = jnp.mean(jnp.square(x - mu), axis=-1, keepdims=True)
        return (x - mu) * jax.lax.rsqrt(var + 1e-5) * g + b

    def att_pool(x, w, b):
        # x: (L, F), w: (1, F), b: (L, 1)
        e = jnp.tanh(jnp.sum(x * w, axis=-1, keepdims=True) + b)       # (L, 1)
        a = jnp.exp(e)                                                 # tanh-bounded
        a = a * pl.reciprocal(jnp.sum(a, axis=0, keepdims=True) + 1e-10,
                              approx=True)
        return jnp.sum(x * a, axis=0, keepdims=True)                   # (1, F)

    xc_o = xc_odd_ref[0]
    xc_e = xc_even_ref[0]
    xg_o = layer_norm(xg_odd_ref[0], ln_og_ref[...], ln_ob_ref[...])
    xg_e = layer_norm(xg_even_ref[0], ln_eg_ref[...], ln_eb_ref[...])

    fm_first = [
        att_pool(xc_o, aw_co_ref[...], ab_co_ref[...]),
        att_pool(xc_e, aw_ce_ref[...], ab_ce_ref[...]),
        att_pool(xg_o, aw_go_ref[...], ab_go_ref[...]),
        att_pool(xg_e, aw_ge_ref[...], ab_ge_ref[...]),
        jnp.mean(xg_o, axis=0, keepdims=True),
        jnp.max(xg_o, axis=0, keepdims=True),
        jnp.mean(xg_e, axis=0, keepdims=True),
        jnp.max(xg_e, axis=0, keepdims=True),
    ]
    fm_second = [a * b for a, b in itertools.combinations(fm_first, 2)]
    slab = jnp.concatenate(fm_first + fm_second, axis=-1)              # (1, 36F)
    h = jnp.dot(slab.astype(BF16), fcw_ref[...],
                preferred_element_type=jnp.float32) + fcb_ref[...]
    h = jnp.maximum(h, 0.0)
    out = jnp.dot(h, ow_ref[...], preferred_element_type=jnp.float32) + ob_ref[...]
    out_ref[0] = out                                                   # (1, 1)


# --------------------------- glue / wrappers ---------------------------------

def _fold_conv_bn(cp):
    scale = cp['gamma'] / jnp.sqrt(cp['var'] + 1e-5)
    w = cp['w'] * scale[:, None, None]
    shift = (cp['b'] - cp['mean']) * scale + cp['beta']
    return w, shift


def _fused_conv_weights(cp_small, k_small, cp_big, k_big):
    # Embed the (centered) small kernel inside the big kernel's window and
    # concatenate output channels [small | big] to match torch.cat order.
    w_s, sh_s = _fold_conv_bn(cp_small)
    w_b, sh_b = _fold_conv_bn(cp_big)
    H, C, _ = w_b.shape
    off = (k_big - k_small) // 2
    w_s_pad = jnp.zeros((H, C, k_big), F32).at[:, :, off:off + k_small].set(w_s)
    w_mat = jnp.concatenate([w_s_pad.reshape(H, C * k_big),
                             w_b.reshape(H, C * k_big)], axis=0).T     # (C*k_big, 2H)
    shift = jnp.concatenate([sh_s, sh_b])[None, :]                     # (1, 2H)
    return w_mat, shift


def _im2col(x_nch, k, pad):
    B, C, L = x_nch.shape
    Lout = L + 2 * pad - k + 1
    xp = jnp.pad(x_nch, ((0, 0), (0, 0), (pad, pad)))
    win = jnp.stack([xp[:, :, j:j + Lout] for j in range(k)], axis=-1)  # (B,C,Lout,k)
    return jnp.transpose(win, (0, 2, 1, 3)).reshape(B, Lout, C * k)


def conv_branches(x_nch, params):
    B, C, L = x_nch.shape
    H2 = 2 * params['conv_odd'][0]['w'].shape[0]
    w_odd, sh_odd = _fused_conv_weights(params['conv_odd'][0], 3,
                                        params['conv_odd'][1], 5)
    w_even, sh_even = _fused_conv_weights(params['conv_even'][0], 2,
                                          params['conv_even'][1], 4)
    p_odd = _im2col(x_nch, 5, 2).astype(BF16)            # (B, L,   C*5)
    p_even = _im2col(x_nch, 4, 1).astype(BF16)           # (B, L-1, C*4)
    Lo, Le = L, L - 1
    x_cnn_odd, x_cnn_even = pl.pallas_call(
        conv_pair_kernel,
        out_shape=(jax.ShapeDtypeStruct((B, Lo, H2), F32),
                   jax.ShapeDtypeStruct((B, Le, H2), F32)),
        grid=(B,),
        in_specs=[
            pl.BlockSpec((1, Lo, C * 5), lambda b: (b, 0, 0)),
            pl.BlockSpec((1, Le, C * 4), lambda b: (b, 0, 0)),
            pl.BlockSpec((C * 5, H2), lambda b: (0, 0)),
            pl.BlockSpec((C * 4, H2), lambda b: (0, 0)),
            pl.BlockSpec((1, H2), lambda b: (0, 0)),
            pl.BlockSpec((1, H2), lambda b: (0, 0)),
        ],
        out_specs=(
            pl.BlockSpec((1, Lo, H2), lambda b: (b, 0, 0)),
            pl.BlockSpec((1, Le, H2), lambda b: (b, 0, 0)),
        ),
        compiler_params=_cparams(1),
    )(p_odd, p_even, w_odd.astype(BF16), w_even.astype(BF16), sh_odd, sh_even)
    return x_cnn_odd, x_cnn_even


def _gru_dir_weights(p):
    # fused [r|z|n] layout:  Wi: (I, 3H) bf16,  Wh: (H, 3H) f32,  biases (1, 3H)
    return (p['w_ih'].T.astype(BF16), p['w_hh'].T.astype(F32),
            p['b_ih'][None, :].astype(F32), p['b_hh'][None, :].astype(F32))


def bigru(x_cnn, p_fwd, p_bwd):
    B, L, I = x_cnn.shape
    H = p_fwd['w_hh'].shape[1]
    wi_f, wh_f, bi_f, bh_f = _gru_dir_weights(p_fwd)
    wi_b, wh_b, bi_b, bh_b = _gru_dir_weights(p_bwd)
    const2 = lambda b: (0, 0)
    return pl.pallas_call(
        bigru_kernel,
        out_shape=jax.ShapeDtypeStruct((B, L, 2 * H), F32),
        grid=(B,),
        in_specs=[
            pl.BlockSpec((1, L, I), lambda b: (b, 0, 0)),
            pl.BlockSpec((I, 3 * H), const2),
            pl.BlockSpec((I, 3 * H), const2),
            pl.BlockSpec((H, 3 * H), const2),
            pl.BlockSpec((H, 3 * H), const2),
            pl.BlockSpec((1, 3 * H), const2),
            pl.BlockSpec((1, 3 * H), const2),
            pl.BlockSpec((1, 3 * H), const2),
            pl.BlockSpec((1, 3 * H), const2),
        ],
        out_specs=pl.BlockSpec((1, L, 2 * H), lambda b: (b, 0, 0)),
        compiler_params=_cparams(1),
    )(x_cnn, wi_f, wi_b, wh_f, wh_b, bi_f, bi_b, bh_f, bh_b)


def tail_head(x_cnn_odd, x_cnn_even, x_gru_odd, x_gru_even, params):
    B, Lo, Fd = x_cnn_odd.shape
    Le = x_cnn_even.shape[1]
    D = params['fc_b'].shape[0]
    const2 = lambda b: (0, 0)
    row = lambda s: s[None, :].astype(F32)
    col = lambda s: s[:, None].astype(F32)
    args = (
        x_cnn_odd, x_cnn_even, x_gru_odd, x_gru_even,
        row(params['ln_odd_g']), row(params['ln_odd_b']),
        row(params['ln_even_g']), row(params['ln_even_b']),
        row(params['att_cnn_odd_w']), col(params['att_cnn_odd_b']),
        row(params['att_cnn_even_w']), col(params['att_cnn_even_b']),
        row(params['att_gru_odd_w']), col(params['att_gru_odd_b']),
        row(params['att_gru_even_w']), col(params['att_gru_even_b']),
        params['fc_w'].T.astype(BF16), row(params['fc_b']),
        params['out_w'].T.astype(F32), params['out_b'][None, :].astype(F32),
    )
    in_specs = [
        pl.BlockSpec((1, Lo, Fd), lambda b: (b, 0, 0)),
        pl.BlockSpec((1, Le, Fd), lambda b: (b, 0, 0)),
        pl.BlockSpec((1, Lo, Fd), lambda b: (b, 0, 0)),
        pl.BlockSpec((1, Le, Fd), lambda b: (b, 0, 0)),
        pl.BlockSpec((1, Fd), const2), pl.BlockSpec((1, Fd), const2),
        pl.BlockSpec((1, Fd), const2), pl.BlockSpec((1, Fd), const2),
        pl.BlockSpec((1, Fd), const2), pl.BlockSpec((Lo, 1), const2),
        pl.BlockSpec((1, Fd), const2), pl.BlockSpec((Le, 1), const2),
        pl.BlockSpec((1, Fd), const2), pl.BlockSpec((Lo, 1), const2),
        pl.BlockSpec((1, Fd), const2), pl.BlockSpec((Le, 1), const2),
        pl.BlockSpec((36 * Fd, D), const2), pl.BlockSpec((1, D), const2),
        pl.BlockSpec((D, 1), const2), pl.BlockSpec((1, 1), const2),
    ]
    out = pl.pallas_call(
        tail_kernel,
        out_shape=jax.ShapeDtypeStruct((B, 1, 1), F32),
        grid=(B,),
        in_specs=in_specs,
        out_specs=pl.BlockSpec((1, 1, 1), lambda b: (b, 0, 0)),
        compiler_params=_cparams(1),
    )(*args)
    return out.reshape(B, 1)


@jax.jit
def forward(ids, params):
    # TODO(synk): embedding gather stays in XLA glue; all Dropout/Dropout2d
    # layers are identity (inference mode).
    emb = jnp.take(params['embedding'], ids, axis=0)         # (B, L, E)
    x_nch = jnp.transpose(emb, (0, 2, 1))                    # (B, E, L)
    x_cnn_odd, x_cnn_even = conv_branches(x_nch, params)     # (B,L,2H), (B,L-1,2H)
    x_gru_odd = bigru(x_cnn_odd, params['gru_odd_fwd'], params['gru_odd_bwd'])
    x_gru_even = bigru(x_cnn_even, params['gru_even_fwd'], params['gru_even_bwd'])
    return tail_head(x_cnn_odd, x_cnn_even, x_gru_odd, x_gru_even, params)


# --------------------------- pure-JAX reference ------------------------------

def reference_forward(ids, params):
    emb = jnp.take(params['embedding'], ids, axis=0)
    x = jnp.transpose(emb, (0, 2, 1))

    def conv_branch(cp, k, pad):
        y = jax.lax.conv_general_dilated(
            x, cp['w'], (1,), [(pad, pad)],
            dimension_numbers=('NCH', 'OIH', 'NCH'),
            precision=jax.lax.Precision.HIGHEST)
        y = y + cp['b'][None, :, None]
        y = (y - cp['mean'][None, :, None]) / jnp.sqrt(cp['var'][None, :, None] + 1e-5)
        y = y * cp['gamma'][None, :, None] + cp['beta'][None, :, None]
        return jnp.maximum(y, 0.0)

    x_cnn_odd = jnp.transpose(jnp.concatenate(
        [conv_branch(cp, k, k // 2) for cp, k in zip(params['conv_odd'], (3, 5))], axis=1), (0, 2, 1))
    x_cnn_even = jnp.transpose(jnp.concatenate(
        [conv_branch(cp, k, k // 2 - 1) for cp, k in zip(params['conv_even'], (2, 4))], axis=1), (0, 2, 1))

    H = params['gru_odd_fwd']['w_hh'].shape[1]

    def gru_dir(xx, p):
        def cell(h, xt):
            gi = xt @ p['w_ih'].T + p['b_ih']
            gh = h @ p['w_hh'].T + p['b_hh']
            r = jax.nn.sigmoid(gi[:, :H] + gh[:, :H])
            z = jax.nn.sigmoid(gi[:, H:2 * H] + gh[:, H:2 * H])
            n = jnp.tanh(gi[:, 2 * H:] + r * gh[:, 2 * H:])
            hn = (1 - z) * n + z * h
            return hn, hn
        h0 = jnp.zeros((xx.shape[0], H), F32)
        _, ys = jax.lax.scan(cell, h0, jnp.transpose(xx, (1, 0, 2)))
        return jnp.transpose(ys, (1, 0, 2))

    def bigru_r(xx, pf, pb):
        return jnp.concatenate([gru_dir(xx, pf), gru_dir(xx[:, ::-1], pb)[:, ::-1]], axis=-1)

    x_gru_odd = bigru_r(x_cnn_odd, params['gru_odd_fwd'], params['gru_odd_bwd'])
    x_gru_even = bigru_r(x_cnn_even, params['gru_even_fwd'], params['gru_even_bwd'])

    def ln(xx, g, b):
        mu = xx.mean(-1, keepdims=True)
        var = ((xx - mu) ** 2).mean(-1, keepdims=True)
        return (xx - mu) / jnp.sqrt(var + 1e-5) * g + b

    x_gru_odd = ln(x_gru_odd, params['ln_odd_g'], params['ln_odd_b'])
    x_gru_even = ln(x_gru_even, params['ln_even_g'], params['ln_even_b'])

    def att(xx, w, b):
        e = jnp.tanh(xx @ w + b)
        a = jnp.exp(e)
        a = a / (a.sum(1, keepdims=True) + 1e-10)
        return (xx * a[:, :, None]).sum(1)

    fm_first = [att(x_cnn_odd, params['att_cnn_odd_w'], params['att_cnn_odd_b']),
                att(x_cnn_even, params['att_cnn_even_w'], params['att_cnn_even_b']),
                att(x_gru_odd, params['att_gru_odd_w'], params['att_gru_odd_b']),
                att(x_gru_even, params['att_gru_even_w'], params['att_gru_even_b']),
                x_gru_odd.mean(1), x_gru_odd.max(1),
                x_gru_even.mean(1), x_gru_even.max(1)]
    fm_second = [a_ * b_ for a_, b_ in itertools.combinations(fm_first, 2)]
    feats = jnp.concatenate(fm_first + fm_second, axis=1)
    h = jnp.maximum(feats @ params['fc_w'].T + params['fc_b'], 0.0)
    return h @ params['out_w'].T + params['out_b']


# --------------------------- parameter init ----------------------------------

def init_params(key, vocab, emb_dim, seq_len, hidden, out_hidden=32):
    keys = iter(jax.random.split(key, 80))

    def nrm(shape, scale):
        return (scale * jax.random.normal(next(keys), shape)).astype(F32)

    def conv_p(k):
        return dict(w=nrm((hidden, emb_dim, k), 0.2), b=nrm((hidden,), 0.1),
                    gamma=1.0 + nrm((hidden,), 0.1), beta=nrm((hidden,), 0.1),
                    mean=nrm((hidden,), 0.1),
                    var=0.8 + 0.4 * jax.random.uniform(next(keys), (hidden,), F32))

    def gru_p(in_dim):
        return dict(w_ih=nrm((3 * hidden, in_dim), 0.15),
                    w_hh=nrm((3 * hidden, hidden), 0.15),
                    b_ih=nrm((3 * hidden,), 0.1), b_hh=nrm((3 * hidden,), 0.1))

    F = 2 * hidden
    return dict(
        embedding=nrm((vocab, emb_dim), 0.5),
        conv_odd=[conv_p(3), conv_p(5)],
        conv_even=[conv_p(2), conv_p(4)],
        gru_odd_fwd=gru_p(F), gru_odd_bwd=gru_p(F),
        gru_even_fwd=gru_p(F), gru_even_bwd=gru_p(F),
        ln_odd_g=1.0 + nrm((F,), 0.1), ln_odd_b=nrm((F,), 0.1),
        ln_even_g=1.0 + nrm((F,), 0.1), ln_even_b=nrm((F,), 0.1),
        att_cnn_odd_w=nrm((F,), 0.3), att_cnn_odd_b=nrm((seq_len,), 0.1),
        att_cnn_even_w=nrm((F,), 0.3), att_cnn_even_b=nrm((seq_len - 1,), 0.1),
        att_gru_odd_w=nrm((F,), 0.3), att_gru_odd_b=nrm((seq_len,), 0.1),
        att_gru_even_w=nrm((F,), 0.3), att_gru_even_b=nrm((seq_len - 1,), 0.1),
        fc_w=nrm((out_hidden, F * 36), 0.05), fc_b=nrm((out_hidden,), 0.1),
        out_w=nrm((1, out_hidden), 0.2), out_b=nrm((1,), 0.1),
    )


# --------------------------- main ---------------------------------------------

if __name__ == "__main__":
    B, SEQ_LEN, VOCAB, EMB, HIDDEN = 2, 8, 50, 16, 32
    root = jax.random.PRNGKey(0)
    pkey, ikey = jax.random.split(root)
    params = init_params(pkey, VOCAB, EMB, SEQ_LEN, HIDDEN)
    ids = jax.random.randint(ikey, (B, SEQ_LEN), 0, VOCAB, dtype=jnp.int32)

    out = jax.block_until_ready(forward(ids, params))
    ref = jax.block_until_ready(reference_forward(ids, params))

    assert out.shape == (B, 1), out.shape
    # bf16 MXU operands (per perf review) vs the all-f32 reference => slightly
    # looser tolerance than a pure-f32 comparison.
    assert np.allclose(np.asarray(out), np.asarray(ref), rtol=4e-2, atol=4e-2), (out, ref)
    print("KERNEL_OK")
</pallas_src>

<mosaic_0001>
module attributes {stable_mosaic.version = 11 : i64} {
  func.func @bigru_kernel(%arg0: i32, %arg1: memref<1x8x64xf32, #tpu.memory_space<vmem>>, %arg2: memref<64x96xbf16, #tpu.memory_space<vmem>>, %arg3: memref<64x96xbf16, #tpu.memory_space<vmem>>, %arg4: memref<32x96xf32, #tpu.memory_space<vmem>>, %arg5: memref<32x96xf32, #tpu.memory_space<vmem>>, %arg6: memref<1x96xf32, #tpu.memory_space<vmem>>, %arg7: memref<1x96xf32, #tpu.memory_space<vmem>>, %arg8: memref<1x96xf32, #tpu.memory_space<vmem>>, %arg9: memref<1x96xf32, #tpu.memory_space<vmem>>, %arg10: memref<1x8x64xf32, #tpu.memory_space<vmem>>) attributes {dimension_semantics = [#tpu.dimension_semantics<parallel>], iteration_bounds = array<i64: 2>, scalar_prefetch = 0 : i64, scratch_operands = 0 : i64, tpu.core_type = #tpu.core_type<tc>, window_params = [{transform_indices = @transform_0, window_bounds = array<i64: 1, 8, 64>}, {pipeline_mode = #tpu.pipeline_mode<synchronous>, transform_indices = @transform_1, window_bounds = array<i64: 64, 96>}, {pipeline_mode = #tpu.pipeline_mode<synchronous>, transform_indices = @transform_2, window_bounds = array<i64: 64, 96>}, {pipeline_mode = #tpu.pipeline_mode<synchronous>, transform_indices = @transform_3, window_bounds = array<i64: 32, 96>}, {pipeline_mode = #tpu.pipeline_mode<synchronous>, transform_indices = @transform_4, window_bounds = array<i64: 32, 96>}, {pipeline_mode = #tpu.pipeline_mode<synchronous>, transform_indices = @transform_5, window_bounds = array<i64: 1, 96>}, {pipeline_mode = #tpu.pipeline_mode<synchronous>, transform_indices = @transform_6, window_bounds = array<i64: 1, 96>}, {pipeline_mode = #tpu.pipeline_mode<synchronous>, transform_indices = @transform_7, window_bounds = array<i64: 1, 96>}, {pipeline_mode = #tpu.pipeline_mode<synchronous>, transform_indices = @transform_8, window_bounds = array<i64: 1, 96>}, {transform_indices = @transform_9, window_bounds = array<i64: 1, 8, 64>}]} {
    %c0 = arith.constant 0 : index
    %c0_0 = arith.constant 0 : index
    %c0_1 = arith.constant 0 : index
    %0 = vector.load %arg1[%c0, %c0_0, %c0_1] : memref<1x8x64xf32, #tpu.memory_space<vmem>>, vector<1x8x64xf32>
    %1 = vector.shape_cast %0 : vector<1x8x64xf32> to vector<8x64xf32>
    %2 = arith.truncf %1 : vector<8x64xf32> to vector<8x64xbf16>
    %c0_2 = arith.constant 0 : index
    %c0_3 = arith.constant 0 : index
    %3 = vector.load %arg2[%c0_2, %c0_3] : memref<64x96xbf16, #tpu.memory_space<vmem>>, vector<64x96xbf16>
    %cst = arith.constant dense<0.000000e+00> : vector<8x96xf32>
    %4 = tpu.matmul %2, %3, %cst {dimension_numbers = #tpu.dot_dimension_numbers<[1], [0], [0], [1], [0, 0, 1, 1], [], []>} : vector<8x64xbf16>, vector<64x96xbf16>, vector<8x96xf32> -> vector<8x96xf32>
    %c0_4 = arith.constant 0 : index
    %c0_5 = arith.constant 0 : index
    %5 = vector.load %arg6[%c0_4, %c0_5] : memref<1x96xf32, #tpu.memory_space<vmem>>, vector<1x96xf32>
    %6 = vector.broadcast %5 : vector<1x96xf32> to vector<8x96xf32>
    %7 = arith.addf %4, %6 : vector<8x96xf32>
    %c0_6 = arith.constant 0 : index
    %c0_7 = arith.constant 0 : index
    %8 = vector.load %arg3[%c0_6, %c0_7] : memref<64x96xbf16, #tpu.memory_space<vmem>>, vector<64x96xbf16>
    %cst_8 = arith.constant dense<0.000000e+00> : vector<8x96xf32>
    %9 = tpu.matmul %2, %8, %cst_8 {dimension_numbers = #tpu.dot_dimension_numbers<[1], [0], [0], [1], [0, 0, 1, 1], [], []>} : vector<8x64xbf16>, vector<64x96xbf16>, vector<8x96xf32> -> vector<8x96xf32>
    %c0_9 = arith.constant 0 : index
    %c0_10 = arith.constant 0 : index
    %10 = vector.load %arg7[%c0_9, %c0_10] : memref<1x96xf32, #tpu.memory_space<vmem>>, vector<1x96xf32>
    %11 = vector.broadcast %10 : vector<1x96xf32> to vector<8x96xf32>
    %12 = arith.addf %9, %11 : vector<8x96xf32>
    %c0_11 = arith.constant 0 : index
    %c0_12 = arith.constant 0 : index
    %13 = vector.load %arg4[%c0_11, %c0_12] : memref<32x96xf32, #tpu.memory_space<vmem>>, vector<32x96xf32>
    %c0_13 = arith.constant 0 : index
    %c0_14 = arith.constant 0 : index
    %14 = vector.load %arg5[%c0_13, %c0_14] : memref<32x96xf32, #tpu.memory_space<vmem>>, vector<32x96xf32>
    %c0_15 = arith.constant 0 : index
    %c0_16 = arith.constant 0 : index
    %15 = vector.load %arg8[%c0_15, %c0_16] : memref<1x96xf32, #tpu.memory_space<vmem>>, vector<1x96xf32>
    %c0_17 = arith.constant 0 : index
    %c0_18 = arith.constant 0 : index
    %16 = vector.load %arg9[%c0_17, %c0_18] : memref<1x96xf32, #tpu.memory_space<vmem>>, vector<1x96xf32>
    %cst_19 = arith.constant 0.000000e+00 : f32
    %17 = vector.broadcast %cst_19 : f32 to vector<1x32xf32>
    %cst_20 = arith.constant 0.000000e+00 : f32
    %18 = vector.broadcast %cst_20 : f32 to vector<1x32xf32>
    %19 = vector.extract_strided_slice %7 {offsets = [0, 0], sizes = [1, 96], strides = [1, 1]} : vector<8x96xf32> to vector<1x96xf32>
    %cst_21 = arith.constant dense<0.000000e+00> : vector<1x96xf32>
    %20 = tpu.matmul %17, %13, %cst_21 {dimension_numbers = #tpu.dot_dimension_numbers<[1], [0], [0], [1], [0, 0, 1, 1], [], []>} : vector<1x32xf32>, vector<32x96xf32>, vector<1x96xf32> -> vector<1x96xf32>
    %21 = arith.addf %20, %15 : vector<1x96xf32>
    %22 = vector.extract_strided_slice %19 {offsets = [0, 0], sizes = [1, 32], strides = [1, 1]} : vector<1x96xf32> to vector<1x32xf32>
    %23 = vector.extract_strided_slice %21 {offsets = [0, 0], sizes = [1, 32], strides = [1, 1]} : vector<1x96xf32> to vector<1x32xf32>
    %24 = arith.addf %22, %23 : vector<1x32xf32>
    %25 = arith.negf %24 : vector<1x32xf32>
    %26 = math.exp %25 : vector<1x32xf32>
    %cst_22 = arith.constant 1.000000e+00 : f32
    %27 = vector.broadcast %cst_22 : f32 to vector<1x32xf32>
    %28 = arith.addf %27, %26 : vector<1x32xf32>
    %29 = arith.divf %27, %28 : vector<1x32xf32>
    %30 = vector.extract_strided_slice %19 {offsets = [0, 32], sizes = [1, 32], strides = [1, 1]} : vector<1x96xf32> to vector<1x32xf32>
    %31 = vector.extract_strided_slice %21 {offsets = [0, 32], sizes = [1, 32], strides = [1, 1]} : vector<1x96xf32> to vector<1x32xf32>
    %32 = arith.addf %30, %31 : vector<1x32xf32>
    %33 = arith.negf %32 : vector<1x32xf32>
    %34 = math.exp %33 : vector<1x32xf32>
    %cst_23 = arith.constant 1.000000e+00 : f32
    %35 = vector.broadcast %cst_23 : f32 to vector<1x32xf32>
    %36 = arith.addf %35, %34 : vector<1x32xf32>
    %37 = arith.divf %35, %36 : vector<1x32xf32>
    %38 = vector.extract_strided_slice %19 {offsets = [0, 64], sizes = [1, 32], strides = [1, 1]} : vector<1x96xf32> to vector<1x32xf32>
    %39 = vector.extract_strided_slice %21 {offsets = [0, 64], sizes = [1, 32], strides = [1, 1]} : vector<1x96xf32> to vector<1x32xf32>
    %40 = arith.mulf %29, %39 : vector<1x32xf32>
    %41 = arith.addf %38, %40 : vector<1x32xf32>
    %42 = math.tanh %41 : vector<1x32xf32>
    %cst_24 = arith.constant 1.000000e+00 : f32
    %43 = vector.broadcast %cst_24 : f32 to vector<1x32xf32>
    %44 = arith.subf %43, %37 : vector<1x32xf32>
    %45 = arith.mulf %44, %42 : vector<1x32xf32>
    %46 = arith.mulf %37, %17 : vector<1x32xf32>
    %47 = arith.addf %45, %46 : vector<1x32xf32>
    %48 = vector.extract_strided_slice %12 {offsets = [7, 0], sizes = [1, 96], strides = [1, 1]} : vector<8x96xf32> to vector<1x96xf32>
    %cst_25 = arith.constant dense<0.000000e+00> : vector<1x96xf32>
    %49 = tpu.matmul %18, %14, %cst_25 {dimension_numbers = #tpu.dot_dimension_numbers<[1], [0], [0], [1], [0, 0, 1, 1], [], []>} : vector<1x32xf32>, vector<32x96xf32>, vector<1x96xf32> -> vector<1x96xf32>
    %50 = arith.addf %49, %16 : vector<1x96xf32>
    %51 = vector.extract_strided_slice %48 {offsets = [0, 0], sizes = [1, 32], strides = [1, 1]} : vector<1x96xf32> to vector<1x32xf32>
    %52 = vector.extract_strided_slice %50 {offsets = [0, 0], sizes = [1, 32], strides = [1, 1]} : vector<1x96xf32> to vector<1x32xf32>
    %53 = arith.addf %51, %52 : vector<1x32xf32>
    %54 = arith.negf %53 : vector<1x32xf32>
    %55 = math.exp %54 : vector<1x32xf32>
    %cst_26 = arith.constant 1.000000e+00 : f32
    %56 = vector.broadcast %cst_26 : f32 to vector<1x32xf32>
    %57 = arith.addf %56, %55 : vector<1x32xf32>
    %58 = arith.divf %56, %57 : vector<1x32xf32>
    %59 = vector.extract_strided_slice %48 {offsets = [0, 32], sizes = [1, 32], strides = [1, 1]} : vector<1x96xf32> to vector<1x32xf32>
    %60 = vector.extract_strided_slice %50 {offsets = [0, 32], sizes = [1, 32], strides = [1, 1]} : vector<1x96xf32> to vector<1x32xf32>
    %61 = arith.addf %59, %60 : vector<1x32xf32>
    %62 = arith.negf %61 : vector<1x32xf32>
    %63 = math.exp %62 : vector<1x32xf32>
    %cst_27 = arith.constant 1.000000e+00 : f32
    %64 = vector.broadcast %cst_27 : f32 to vector<1x32xf32>
    %65 = arith.addf %64, %63 : vector<1x32xf32>
    %66 = arith.divf %64, %65 : vector<1x32xf32>
    %67 = vector.extract_strided_slice %48 {offsets = [0, 64], sizes = [1, 32], strides = [1, 1]} : vector<1x96xf32> to vector<1x32xf32>
    %68 = vector.extract_strided_slice %50 {offsets = [0, 64], sizes = [1, 32], strides = [1, 1]} : vector<1x96xf32> to vector<1x32xf32>
    %69 = arith.mulf %58, %68 : vector<1x32xf32>
    %70 = arith.addf %67, %69 : vector<1x32xf32>
    %71 = math.tanh %70 : vector<1x32xf32>
    %cst_28 = arith.constant 1.000000e+00 : f32
    %72 = vector.broadcast %cst_28 : f32 to vector<1x32xf32>
    %73 = arith.subf %72, %66 : vector<1x32xf32>
    %74 = arith.mulf %73, %71 : vector<1x32xf32>
    %75 = arith.mulf %66, %18 : vector<1x32xf32>
    %76 = arith.addf %74, %75 : vector<1x32xf32>
    %77 = vector.extract_strided_slice %7 {offsets = [1, 0], sizes = [1, 96], strides = [1, 1]} : vector<8x96xf32> to vector<1x96xf32>
    %cst_29 = arith.constant dense<0.000000e+00> : vector<1x96xf32>
    %78 = tpu.matmul %47, %13, %cst_29 {dimension_numbers = #tpu.dot_dimension_numbers<[1], [0], [0], [1], [0, 0, 1, 1], [], []>} : vector<1x32xf32>, vector<32x96xf32>, vector<1x96xf32> -> vector<1x96xf32>
    %79 = arith.addf %78, %15 : vector<1x96xf32>
    %80 = vector.extract_strided_slice %77 {offsets = [0, 0], sizes = [1, 32], strides = [1, 1]} : vector<1x96xf32> to vector<1x32xf32>
    %81 = vector.extract_strided_slice %79 {offsets = [0, 0], sizes = [1, 32], strides = [1, 1]} : vector<1x96xf32> to vector<1x32xf32>
    %82 = arith.addf %80, %81 : vector<1x32xf32>
    %83 = arith.negf %82 : vector<1x32xf32>
    %84 = math.exp %83 : vector<1x32xf32>
    %cst_30 = arith.constant 1.000000e+00 : f32
    %85 = vector.broadcast %cst_30 : f32 to vector<1x32xf32>
    %86 = arith.addf %85, %84 : vector<1x32xf32>
    %87 = arith.divf %85, %86 : vector<1x32xf32>
    %88 = vector.extract_strided_slice %77 {offsets = [0, 32], sizes = [1, 32], strides = [1, 1]} : vector<1x96xf32> to vector<1x32xf32>
    %89 = vector.extract_strided_slice %79 {offsets = [0, 32], sizes = [1, 32], strides = [1, 1]} : vector<1x96xf32> to vector<1x32xf32>
    %90 = arith.addf %88, %89 : vector<1x32xf32>
    %91 = arith.negf %90 : vector<1x32xf32>
    %92 = math.exp %91 : vector<1x32xf32>
    %cst_31 = arith.constant 1.000000e+00 : f32
    %93 = vector.broadcast %cst_31 : f32 to vector<1x32xf32>
    %94 = arith.addf %93, %92 : vector<1x32xf32>
    %95 = arith.divf %93, %94 : vector<1x32xf32>
    %96 = vector.extract_strided_slice %77 {offsets = [0, 64], sizes = [1, 32], strides = [1, 1]} : vector<1x96xf32> to vector<1x32xf32>
    %97 = vector.extract_strided_slice %79 {offsets = [0, 64], sizes = [1, 32], strides = [1, 1]} : vector<1x96xf32> to vector<1x32xf32>
    %98 = arith.mulf %87, %97 : vector<1x32xf32>
    %99 = arith.addf %96, %98 : vector<1x32xf32>
    %100 = math.tanh %99 : vector<1x32xf32>
    %cst_32 = arith.constant 1.000000e+00 : f32
    %101 = vector.broadcast %cst_32 : f32 to vector<1x32xf32>
    %102 = arith.subf %101, %95 : vector<1x32xf32>
    %103 = arith.mulf %102, %100 : vector<1x32xf32>
    %104 = arith.mulf %95, %47 : vector<1x32xf32>
    %105 = arith.addf %103, %104 : vector<1x32xf32>
    %106 = vector.extract_strided_slice %12 {offsets = [6, 0], sizes = [1, 96], strides = [1, 1]} : vector<8x96xf32> to vector<1x96xf32>
    %cst_33 = arith.constant dense<0.000000e+00> : vector<1x96xf32>
    %107 = tpu.matmul %76, %14, %cst_33 {dimension_numbers = #tpu.dot_dimension_numbers<[1], [0], [0], [1], [0, 0, 1, 1], [], []>} : vector<1x32xf32>, vector<32x96xf32>, vector<1x96xf32> -> vector<1x96xf32>
    %108 = arith.addf %107, %16 : vector<1x96xf32>
    %109 = vector.extract_strided_slice %106 {offsets = [0, 0], sizes = [1, 32], strides = [1, 1]} : vector<1x96xf32> to vector<1x32xf32>
    %110 = vector.extract_strided_slice %108 {offsets = [0, 0], sizes = [1, 32], strides = [1, 1]} : vector<1x96xf32> to vector<1x32xf32>
    %111 = arith.addf %109, %110 : vector<1x32xf32>
    %112 = arith.negf %111 : vector<1x32xf32>
    %113 = math.exp %112 : vector<1x32xf32>
    %cst_34 = arith.constant 1.000000e+00 : f32
    %114 = vector.broadcast %cst_34 : f32 to vector<1x32xf32>
    %115 = arith.addf %114, %113 : vector<1x32xf32>
    %116 = arith.divf %114, %115 : vector<1x32xf32>
    %117 = vector.extract_strided_slice %106 {offsets = [0, 32], sizes = [1, 32], strides = [1, 1]} : vector<1x96xf32> to vector<1x32xf32>
    %118 = vector.extract_strided_slice %108 {offsets = [0, 32], sizes = [1, 32], strides = [1, 1]} : vector<1x96xf32> to vector<1x32xf32>
    %119 = arith.addf %117, %118 : vector<1x32xf32>
    %120 = arith.negf %119 : vector<1x32xf32>
    %121 = math.exp %120 : vector<1x32xf32>
    %cst_35 = arith.constant 1.000000e+00 : f32
    %122 = vector.broadcast %cst_35 : f32 to vector<1x32xf32>
    %123 = arith.addf %122, %121 : vector<1x32xf32>
    %124 = arith.divf %122, %123 : vector<1x32xf32>
    %125 = vector.extract_strided_slice %106 {offsets = [0, 64], sizes = [1, 32], strides = [1, 1]} : vector<1x96xf32> to vector<1x32xf32>
    %126 = vector.extract_strided_slice %108 {offsets = [0, 64], sizes = [1, 32], strides = [1, 1]} : vector<1x96xf32> to vector<1x32xf32>
    %127 = arith.mulf %116, %126 : vector<1x32xf32>
    %128 = arith.addf %125, %127 : vector<1x32xf32>
    %129 = math.tanh %128 : vector<1x32xf32>
    %cst_36 = arith.constant 1.000000e+00 : f32
    %130 = vector.broadcast %cst_36 : f32 to vector<1x32xf32>
    %131 = arith.subf %130, %124 : vector<1x32xf32>
    %132 = arith.mulf %131, %129 : vector<1x32xf32>
    %133 = arith.mulf %124, %76 : vector<1x32xf32>
    %134 = arith.addf %132, %133 : vector<1x32xf32>
    %135 = vector.extract_strided_slice %7 {offsets = [2, 0], sizes = [1, 96], strides = [1, 1]} : vector<8x96xf32> to vector<1x96xf32>
    %cst_37 = arith.constant dense<0.000000e+00> : vector<1x96xf32>
    %136 = tpu.matmul %105, %13, %cst_37 {dimension_numbers = #tpu.dot_dimension_numbers<[1], [0], [0], [1], [0, 0, 1, 1], [], []>} : vector<1x32xf32>, vector<32x96xf32>, vector<1x96xf32> -> vector<1x96xf32>
    %137 = arith.addf %136, %15 : vector<1x96xf32>
    %138 = vector.extract_strided_slice %135 {offsets = [0, 0], sizes = [1, 32], strides = [1, 1]} : vector<1x96xf32> to vector<1x32xf32>
    %139 = vector.extract_strided_slice %137 {offsets = [0, 0], sizes = [1, 32], strides = [1, 1]} : vector<1x96xf32> to vector<1x32xf32>
    %140 = arith.addf %138, %139 : vector<1x32xf32>
    %141 = arith.negf %140 : vector<1x32xf32>
    %142 = math.exp %141 : vector<1x32xf32>
    %cst_38 = arith.constant 1.000000e+00 : f32
    %143 = vector.broadcast %cst_38 : f32 to vector<1x32xf32>
    %144 = arith.addf %143, %142 : vector<1x32xf32>
    %145 = arith.divf %143, %144 : vector<1x32xf32>
    %146 = vector.extract_strided_slice %135 {offsets = [0, 32], sizes = [1, 32], strides = [1, 1]} : vector<1x96xf32> to vector<1x32xf32>
    %147 = vector.extract_strided_slice %137 {offsets = [0, 32], sizes = [1, 32], strides = [1, 1]} : vector<1x96xf32> to vector<1x32xf32>
    %148 = arith.addf %146, %147 : vector<1x32xf32>
    %149 = arith.negf %148 : vector<1x32xf32>
    %150 = math.exp %149 : vector<1x32xf32>
    %cst_39 = arith.constant 1.000000e+00 : f32
    %151 = vector.broadcast %cst_39 : f32 to vector<1x32xf32>
    %152 = arith.addf %151, %150 : vector<1x32xf32>
    %153 = arith.divf %151, %152 : vector<1x32xf32>
    %154 = vector.extract_strided_slice %135 {offsets = [0, 64], sizes = [1, 32], strides = [1, 1]} : vector<1x96xf32> to vector<1x32xf32>
    %155 = vector.extract_strided_slice %137 {offsets = [0, 64], sizes = [1, 32], strides = [1, 1]} : vector<1x96xf32> to vector<1x32xf32>
    %156 = arith.mulf %145, %155 : vector<1x32xf32>
    %157 = arith.addf %154, %156 : vector<1x32xf32>
    %158 = math.tanh %157 : vector<1x32xf32>
    %cst_40 = arith.constant 1.000000e+00 : f32
    %159 = vector.broadcast %cst_40 : f32 to vector<1x32xf32>
    %160 = arith.subf %159, %153 : vector<1x32xf32>
    %161 = arith.mulf %160, %158 : vector<1x32xf32>
    %162 = arith.mulf %153, %105 : vector<1x32xf32>
    %163 = arith.addf %161, %162 : vector<1x32xf32>
    %164 = vector.extract_strided_slice %12 {offsets = [5, 0], sizes = [1, 96], strides = [1, 1]} : vector<8x96xf32> to vector<1x96xf32>
    %cst_41 = arith.constant dense<0.000000e+00> : vector<1x96xf32>
    %165 = tpu.matmul %134, %14, %cst_41 {dimension_numbers = #tpu.dot_dimension_numbers<[1], [0], [0], [1], [0, 0, 1, 1], [], []>} : vector<1x32xf32>, vector<32x96xf32>, vector<1x96xf32> -> vector<1x96xf32>
    %166 = arith.addf %165, %16 : vector<1x96xf32>
    %167 = vector.extract_strided_slice %164 {offsets = [0, 0], sizes = [1, 32], strides = [1, 1]} : vector<1x96xf32> to vector<1x32xf32>
    %168 = vector.extract_strided_slice %166 {offsets = [0, 0], sizes = [1, 32], strides = [1, 1]} : vector<1x96xf32> to vector<1x32xf32>
    %169 = arith.addf %167, %168 : vector<1x32xf32>
    %170 = arith.negf %169 : vector<1x32xf32>
    %171 = math.exp %170 : vector<1x32xf32>
    %cst_42 = arith.constant 1.000000e+00 : f32
    %172 = vector.broadcast %cst_42 : f32 to vector<1x32xf32>
    %173 = arith.addf %172, %171 : vector<1x32xf32>
    %174 = arith.divf %172, %173 : vector<1x32xf32>
    %175 = vector.extract_strided_slice %164 {offsets = [0, 32], sizes = [1, 32], strides = [1, 1]} : vector<1x96xf32> to vector<1x32xf32>
    %176 = vector.extract_strided_slice %166 {offsets = [0, 32], sizes = [1, 32], strides = [1, 1]} : vector<1x96xf32> to vector<1x32xf32>
    %177 = arith.addf %175, %176 : vector<1x32xf32>
    %178 = arith.negf %177 : vector<1x32xf32>
    %179 = math.exp %178 : vector<1x32xf32>
    %cst_43 = arith.constant 1.000000e+00 : f32
    %180 = vector.broadcast %cst_43 : f32 to vector<1x32xf32>
    %181 = arith.addf %180, %179 : vector<1x32xf32>
    %182 = arith.divf %180, %181 : vector<1x32xf32>
    %183 = vector.extract_strided_slice %164 {offsets = [0, 64], sizes = [1, 32], strides = [1, 1]} : vector<1x96xf32> to vector<1x32xf32>
    %184 = vector.extract_strided_slice %166 {offsets = [0, 64], sizes = [1, 32], strides = [1, 1]} : vector<1x96xf32> to vector<1x32xf32>
    %185 = arith.mulf %174, %184 : vector<1x32xf32>
    %186 = arith.addf %183, %185 : vector<1x32xf32>
    %187 = math.tanh %186 : vector<1x32xf32>
    %cst_44 = arith.constant 1.000000e+00 : f32
    %188 = vector.broadcast %cst_44 : f32 to vector<1x32xf32>
    %189 = arith.subf %188, %182 : vector<1x32xf32>
    %190 = arith.mulf %189, %187 : vector<1x32xf32>
    %191 = arith.mulf %182, %134 : vector<1x32xf32>
    %192 = arith.addf %190, %191 : vector<1x32xf32>
    %193 = vector.extract_strided_slice %7 {offsets = [3, 0], sizes = [1, 96], strides = [1, 1]} : vector<8x96xf32> to vector<1x96xf32>
    %cst_45 = arith.constant dense<0.000000e+00> : vector<1x96xf32>
    %194 = tpu.matmul %163, %13, %cst_45 {dimension_numbers = #tpu.dot_dimension_numbers<[1], [0], [0], [1], [0, 0, 1, 1], [], []>} : vector<1x32xf32>, vector<32x96xf32>, vector<1x96xf32> -> vector<1x96xf32>
    %195 = arith.addf %194, %15 : vector<1x96xf32>
    %196 = vector.extract_strided_slice %193 {offsets = [0, 0], sizes = [1, 32], strides = [1, 1]} : vector<1x96xf32> to vector<1x32xf32>
    %197 = vector.extract_strided_slice %195 {offsets = [0, 0], sizes = [1, 32], strides = [1, 1]} : vector<1x96xf32> to vector<1x32xf32>
    %198 = arith.addf %196, %197 : vector<1x32xf32>
    %199 = arith.negf %198 : vector<1x32xf32>
    %200 = math.exp %199 : vector<1x32xf32>
    %cst_46 = arith.constant 1.000000e+00 : f32
    %201 = vector.broadcast %cst_46 : f32 to vector<1x32xf32>
    %202 = arith.addf %201, %200 : vector<1x32xf32>
    %203 = arith.divf %201, %202 : vector<1x32xf32>
    %204 = vector.extract_strided_slice %193 {offsets = [0, 32], sizes = [1, 32], strides = [1, 1]} : vector<1x96xf32> to vector<1x32xf32>
    %205 = vector.extract_strided_slice %195 {offsets = [0, 32], sizes = [1, 32], strides = [1, 1]} : vector<1x96xf32> to vector<1x32xf32>
    %206 = arith.addf %204, %205 : vector<1x32xf32>
    %207 = arith.negf %206 : vector<1x32xf32>
    %208 = math.exp %207 : vector<1x32xf32>
    %cst_47 = arith.constant 1.000000e+00 : f32
    %209 = vector.broadcast %cst_47 : f32 to vector<1x32xf32>
    %210 = arith.addf %209, %208 : vector<1x32xf32>
    %211 = arith.divf %209, %210 : vector<1x32xf32>
    %212 = vector.extract_strided_slice %193 {offsets = [0, 64], sizes = [1, 32], strides = [1, 1]} : vector<1x96xf32> to vector<1x32xf32>
    %213 = vector.extract_strided_slice %195 {offsets = [0, 64], sizes = [1, 32], strides = [1, 1]} : vector<1x96xf32> to vector<1x32xf32>
    %214 = arith.mulf %203, %213 : vector<1x32xf32>
    %215 = arith.addf %212, %214 : vector<1x32xf32>
    %216 = math.tanh %215 : vector<1x32xf32>
    %cst_48 = arith.constant 1.000000e+00 : f32
    %217 = vector.broadcast %cst_48 : f32 to vector<1x32xf32>
    %218 = arith.subf %217, %211 : vector<1x32xf32>
    %219 = arith.mulf %218, %216 : vector<1x32xf32>
    %220 = arith.mulf %211, %163 : vector<1x32xf32>
    %221 = arith.addf %219, %220 : vector<1x32xf32>
    %222 = vector.extract_strided_slice %12 {offsets = [4, 0], sizes = [1, 96], strides = [1, 1]} : vector<8x96xf32> to vector<1x96xf32>
    %cst_49 = arith.constant dense<0.000000e+00> : vector<1x96xf32>
    %223 = tpu.matmul %192, %14, %cst_49 {dimension_numbers = #tpu.dot_dimension_numbers<[1], [0], [0], [1], [0, 0, 1, 1], [], []>} : vector<1x32xf32>, vector<32x96xf32>, vector<1x96xf32> -> vector<1x96xf32>
    %224 = arith.addf %223, %16 : vector<1x96xf32>
    %225 = vector.extract_strided_slice %222 {offsets = [0, 0], sizes = [1, 32], strides = [1, 1]} : vector<1x96xf32> to vector<1x32xf32>
    %226 = vector.extract_strided_slice %224 {offsets = [0, 0], sizes = [1, 32], strides = [1, 1]} : vector<1x96xf32> to vector<1x32xf32>
    %227 = arith.addf %225, %226 : vector<1x32xf32>
    %228 = arith.negf %227 : vector<1x32xf32>
    %229 = math.exp %228 : vector<1x32xf32>
    %cst_50 = arith.constant 1.000000e+00 : f32
    %230 = vector.broadcast %cst_50 : f32 to vector<1x32xf32>
    %231 = arith.addf %230, %229 : vector<1x32xf32>
    %232 = arith.divf %230, %231 : vector<1x32xf32>
    %233 = vector.extract_strided_slice %222 {offsets = [0, 32], sizes = [1, 32], strides = [1, 1]} : vector<1x96xf32> to vector<1x32xf32>
    %234 = vector.extract_strided_slice %224 {offsets = [0, 32], sizes = [1, 32], strides = [1, 1]} : vector<1x96xf32> to vector<1x32xf32>
    %235 = arith.addf %233, %234 : vector<1x32xf32>
    %236 = arith.negf %235 : vector<1x32xf32>
    %237 = math.exp %236 : vector<1x32xf32>
    %cst_51 = arith.constant 1.000000e+00 : f32
    %238 = vector.broadcast %cst_51 : f32 to vector<1x32xf32>
    %239 = arith.addf %238, %237 : vector<1x32xf32>
    %240 = arith.divf %238, %239 : vector<1x32xf32>
    %241 = vector.extract_strided_slice %222 {offsets = [0, 64], sizes = [1, 32], strides = [1, 1]} : vector<1x96xf32> to vector<1x32xf32>
    %242 = vector.extract_strided_slice %224 {offsets = [0, 64], sizes = [1, 32], strides = [1, 1]} : vector<1x96xf32> to vector<1x32xf32>
    %243 = arith.mulf %232, %242 : vector<1x32xf32>
    %244 = arith.addf %241, %243 : vector<1x32xf32>
    %245 = math.tanh %244 : vector<1x32xf32>
    %cst_52 = arith.constant 1.000000e+00 : f32
    %246 = vector.broadcast %cst_52 : f32 to vector<1x32xf32>
    %247 = arith.subf %246, %240 : vector<1x32xf32>
    %248 = arith.mulf %247, %245 : vector<1x32xf32>
    %249 = arith.mulf %240, %192 : vector<1x32xf32>
    %250 = arith.addf %248, %249 : vector<1x32xf32>
    %251 = vector.extract_strided_slice %7 {offsets = [4, 0], sizes = [1, 96], strides = [1, 1]} : vector<8x96xf32> to vector<1x96xf32>
    %cst_53 = arith.constant dense<0.000000e+00> : vector<1x96xf32>
    %252 = tpu.matmul %221, %13, %cst_53 {dimension_numbers = #tpu.dot_dimension_numbers<[1], [0], [0], [1], [0, 0, 1, 1], [], []>} : vector<1x32xf32>, vector<32x96xf32>, vector<1x96xf32> -> vector<1x96xf32>
    %253 = arith.addf %252, %15 : vector<1x96xf32>
    %254 = vector.extract_strided_slice %251 {offsets = [0, 0], sizes = [1, 32], strides = [1, 1]} : vector<1x96xf32> to vector<1x32xf32>
    %255 = vector.extract_strided_slice %253 {offsets = [0, 0], sizes = [1, 32], strides = [1, 1]} : vector<1x96xf32> to vector<1x32xf32>
    %256 = arith.addf %254, %255 : vector<1x32xf32>
    %257 = arith.negf %256 : vector<1x32xf32>
    %258 = math.exp %257 : vector<1x32xf32>
    %cst_54 = arith.constant 1.000000e+00 : f32
    %259 = vector.broadcast %cst_54 : f32 to vector<1x32xf32>
    %260 = arith.addf %259, %258 : vector<1x32xf32>
    %261 = arith.divf %259, %260 : vector<1x32xf32>
    %262 = vector.extract_strided_slice %251 {offsets = [0, 32], sizes = [1, 32], strides = [1, 1]} : vector<1x96xf32> to vector<1x32xf32>
    %263 = vector.extract_strided_slice %253 {offsets = [0, 32], sizes = [1, 32], strides = [1, 1]} : vector<1x96xf32> to vector<1x32xf32>
    %264 = arith.addf %262, %263 : vector<1x32xf32>
    %265 = arith.negf %264 : vector<1x32xf32>
    %266 = math.exp %265 : vector<1x32xf32>
    %cst_55 = arith.constant 1.000000e+00 : f32
    %267 = vector.broadcast %cst_55 : f32 to vector<1x32xf32>
    %268 = arith.addf %267, %266 : vector<1x32xf32>
    %269 = arith.divf %267, %268 : vector<1x32xf32>
    %270 = vector.extract_strided_slice %251 {offsets = [0, 64], sizes = [1, 32], strides = [1, 1]} : vector<1x96xf32> to vector<1x32xf32>
    %271 = vector.extract_strided_slice %253 {offsets = [0, 64], sizes = [1, 32], strides = [1, 1]} : vector<1x96xf32> to vector<1x32xf32>
    %272 = arith.mulf %261, %271 : vector<1x32xf32>
    %273 = arith.addf %270, %272 : vector<1x32xf32>
    %274 = math.tanh %273 : vector<1x32xf32>
    %cst_56 = arith.constant 1.000000e+00 : f32
    %275 = vector.broadcast %cst_56 : f32 to vector<1x32xf32>
    %276 = arith.subf %275, %269 : vector<1x32xf32>
    %277 = arith.mulf %276, %274 : vector<1x32xf32>
    %278 = arith.mulf %269, %221 : vector<1x32xf32>
    %279 = arith.addf %277, %278 : vector<1x32xf32>
    %280 = vector.extract_strided_slice %12 {offsets = [3, 0], sizes = [1, 96], strides = [1, 1]} : vector<8x96xf32> to vector<1x96xf32>
    %cst_57 = arith.constant dense<0.000000e+00> : vector<1x96xf32>
    %281 = tpu.matmul %250, %14, %cst_57 {dimension_numbers = #tpu.dot_dimension_numbers<[1], [0], [0], [1], [0, 0, 1, 1], [], []>} : vector<1x32xf32>, vector<32x96xf32>, vector<1x96xf32> -> vector<1x96xf32>
    %282 = arith.addf %281, %16 : vector<1x96xf32>
    %283 = vector.extract_strided_slice %280 {offsets = [0, 0], sizes = [1, 32], strides = [1, 1]} : vector<1x96xf32> to vector<1x32xf32>
    %284 = vector.extract_strided_slice %282 {offsets = [0, 0], sizes = [1, 32], strides = [1, 1]} : vector<1x96xf32> to vector<1x32xf32>
    %285 = arith.addf %283, %284 : vector<1x32xf32>
    %286 = arith.negf %285 : vector<1x32xf32>
    %287 = math.exp %286 : vector<1x32xf32>
    %cst_58 = arith.constant 1.000000e+00 : f32
    %288 = vector.broadcast %cst_58 : f32 to vector<1x32xf32>
    %289 = arith.addf %288, %287 : vector<1x32xf32>
    %290 = arith.divf %288, %289 : vector<1x32xf32>
    %291 = vector.extract_strided_slice %280 {offsets = [0, 32], sizes = [1, 32], strides = [1, 1]} : vector<1x96xf32> to vector<1x32xf32>
    %292 = vector.extract_strided_slice %282 {offsets = [0, 32], sizes = [1, 32], strides = [1, 1]} : vector<1x96xf32> to vector<1x32xf32>
    %293 = arith.addf %291, %292 : vector<1x32xf32>
    %294 = arith.negf %293 : vector<1x32xf32>
    %295 = math.exp %294 : vector<1x32xf32>
    %cst_59 = arith.constant 1.000000e+00 : f32
    %296 = vector.broadcast %cst_59 : f32 to vector<1x32xf32>
    %297 = arith.addf %296, %295 : vector<1x32xf32>
    %298 = arith.divf %296, %297 : vector<1x32xf32>
    %299 = vector.extract_strided_slice %280 {offsets = [0, 64], sizes = [1, 32], strides = [1, 1]} : vector<1x96xf32> to vector<1x32xf32>
    %300 = vector.extract_strided_slice %282 {offsets = [0, 64], sizes = [1, 32], strides = [1, 1]} : vector<1x96xf32> to vector<1x32xf32>
    %301 = arith.mulf %290, %300 : vector<1x32xf32>
    %302 = arith.addf %299, %301 : vector<1x32xf32>
    %303 = math.tanh %302 : vector<1x32xf32>
    %cst_60 = arith.constant 1.000000e+00 : f32
    %304 = vector.broadcast %cst_60 : f32 to vector<1x32xf32>
    %305 = arith.subf %304, %298 : vector<1x32xf32>
    %306 = arith.mulf %305, %303 : vector<1x32xf32>
    %307 = arith.mulf %298, %250 : vector<1x32xf32>
    %308 = arith.addf %306, %307 : vector<1x32xf32>
    %309 = vector.extract_strided_slice %7 {offsets = [5, 0], sizes = [1, 96], strides = [1, 1]} : vector<8x96xf32> to vector<1x96xf32>
    %cst_61 = arith.constant dense<0.000000e+00> : vector<1x96xf32>
    %310 = tpu.matmul %279, %13, %cst_61 {dimension_numbers = #tpu.dot_dimension_numbers<[1], [0], [0], [1], [0, 0, 1, 1], [], []>} : vector<1x32xf32>, vector<32x96xf32>, vector<1x96xf32> -> vector<1x96xf32>
    %311 = arith.addf %310, %15 : vector<1x96xf32>
    %312 = vector.extract_strided_slice %309 {offsets = [0, 0], sizes = [1, 32], strides = [1, 1]} : vector<1x96xf32> to vector<1x32xf32>
    %313 = vector.extract_strided_slice %311 {offsets = [0, 0], sizes = [1, 32], strides = [1, 1]} : vector<1x96xf32> to vector<1x32xf32>
    %314 = arith.addf %312, %313 : vector<1x32xf32>
    %315 = arith.negf %314 : vector<1x32xf32>
    %316 = math.exp %315 : vector<1x32xf32>
    %cst_62 = arith.constant 1.000000e+00 : f32
    %317 = vector.broadcast %cst_62 : f32 to vector<1x32xf32>
    %318 = arith.addf %317, %316 : vector<1x32xf32>
    %319 = arith.divf %317, %318 : vector<1x32xf32>
    %320 = vector.extract_strided_slice %309 {offsets = [0, 32], sizes = [1, 32], strides = [1, 1]} : vector<1x96xf32> to vector<1x32xf32>
    %321 = vector.extract_strided_slice %311 {offsets = [0, 32], sizes = [1, 32], strides = [1, 1]} : vector<1x96xf32> to vector<1x32xf32>
    %322 = arith.addf %320, %321 : vector<1x32xf32>
    %323 = arith.negf %322 : vector<1x32xf32>
    %324 = math.exp %323 : vector<1x32xf32>
    %cst_63 = arith.constant 1.000000e+00 : f32
    %325 = vector.broadcast %cst_63 : f32 to vector<1x32xf32>
    %326 = arith.addf %325, %324 : vector<1x32xf32>
    %327 = arith.divf %325, %326 : vector<1x32xf32>
    %328 = vector.extract_strided_slice %309 {offsets = [0, 64], sizes = [1, 32], strides = [1, 1]} : vector<1x96xf32> to vector<1x32xf32>
    %329 = vector.extract_strided_slice %311 {offsets = [0, 64], sizes = [1, 32], strides = [1, 1]} : vector<1x96xf32> to vector<1x32xf32>
    %330 = arith.mulf %319, %329 : vector<1x32xf32>
    %331 = arith.addf %328, %330 : vector<1x32xf32>
    %332 = math.tanh %331 : vector<1x32xf32>
    %cst_64 = arith.constant 1.000000e+00 : f32
    %333 = vector.broadcast %cst_64 : f32 to vector<1x32xf32>
    %334 = arith.subf %333, %327 : vector<1x32xf32>
    %335 = arith.mulf %334, %332 : vector<1x32xf32>
    %336 = arith.mulf %327, %279 : vector<1x32xf32>
    %337 = arith.addf %335, %336 : vector<1x32xf32>
    %338 = vector.extract_strided_slice %12 {offsets = [2, 0], sizes = [1, 96], strides = [1, 1]} : vector<8x96xf32> to vector<1x96xf32>
    %cst_65 = arith.constant dense<0.000000e+00> : vector<1x96xf32>
    %339 = tpu.matmul %308, %14, %cst_65 {dimension_numbers = #tpu.dot_dimension_numbers<[1], [0], [0], [1], [0, 0, 1, 1], [], []>} : vector<1x32xf32>, vector<32x96xf32>, vector<1x96xf32> -> vector<1x96xf32>
    %340 = arith.addf %339, %16 : vector<1x96xf32>
    %341 = vector.extract_strided_slice %338 {offsets = [0, 0], sizes = [1, 32], strides = [1, 1]} : vector<1x96xf32> to vector<1x32xf32>
    %342 = vector.extract_strided_slice %340 {offsets = [0, 0], sizes = [1, 32], strides = [1, 1]} : vector<1x96xf32> to vector<1x32xf32>
    %343 = arith.addf %341, %342 : vector<1x32xf32>
    %344 = arith.negf %343 : vector<1x32xf32>
    %345 = math.exp %344 : vector<1x32xf32>
    %cst_66 = arith.constant 1.000000e+00 : f32
    %346 = vector.broadcast %cst_66 : f32 to vector<1x32xf32>
    %347 = arith.addf %346, %345 : vector<1x32xf32>
    %348 = arith.divf %346, %347 : vector<1x32xf32>
    %349 = vector.extract_strided_slice %338 {offsets = [0, 32], sizes = [1, 32], strides = [1, 1]} : vector<1x96xf32> to vector<1x32xf32>
    %350 = vector.extract_strided_slice %340 {offsets = [0, 32], sizes = [1, 32], strides = [1, 1]} : vector<1x96xf32> to vector<1x32xf32>
    %351 = arith.addf %349, %350 : vector<1x32xf32>
    %352 = arith.negf %351 : vector<1x32xf32>
    %353 = math.exp %352 : vector<1x32xf32>
    %cst_67 = arith.constant 1.000000e+00 : f32
    %354 = vector.broadcast %cst_67 : f32 to vector<1x32xf32>
    %355 = arith.addf %354, %353 : vector<1x32xf32>
    %356 = arith.divf %354, %355 : vector<1x32xf32>
    %357 = vector.extract_strided_slice %338 {offsets = [0, 64], sizes = [1, 32], strides = [1, 1]} : vector<1x96xf32> to vector<1x32xf32>
    %358 = vector.extract_strided_slice %340 {offsets = [0, 64], sizes = [1, 32], strides = [1, 1]} : vector<1x96xf32> to vector<1x32xf32>
    %359 = arith.mulf %348, %358 : vector<1x32xf32>
    %360 = arith.addf %357, %359 : vector<1x32xf32>
    %361 = math.tanh %360 : vector<1x32xf32>
    %cst_68 = arith.constant 1.000000e+00 : f32
    %362 = vector.broadcast %cst_68 : f32 to vector<1x32xf32>
    %363 = arith.subf %362, %356 : vector<1x32xf32>
    %364 = arith.mulf %363, %361 : vector<1x32xf32>
    %365 = arith.mulf %356, %308 : vector<1x32xf32>
    %366 = arith.addf %364, %365 : vector<1x32xf32>
    %367 = vector.extract_strided_slice %7 {offsets = [6, 0], sizes = [1, 96], strides = [1, 1]} : vector<8x96xf32> to vector<1x96xf32>
    %cst_69 = arith.constant dense<0.000000e+00> : vector<1x96xf32>
    %368 = tpu.matmul %337, %13, %cst_69 {dimension_numbers = #tpu.dot_dimension_numbers<[1], [0], [0], [1], [0, 0, 1, 1], [], []>} : vector<1x32xf32>, vector<32x96xf32>, vector<1x96xf32> -> vector<1x96xf32>
    %369 = arith.addf %368, %15 : vector<1x96xf32>
    %370 = vector.extract_strided_slice %367 {offsets = [0, 0], sizes = [1, 32], strides = [1, 1]} : vector<1x96xf32> to vector<1x32xf32>
    %371 = vector.extract_strided_slice %369 {offsets = [0, 0], sizes = [1, 32], strides = [1, 1]} : vector<1x96xf32> to vector<1x32xf32>
    %372 = arith.addf %370, %371 : vector<1x32xf32>
    %373 = arith.negf %372 : vector<1x32xf32>
    %374 = math.exp %373 : vector<1x32xf32>
    %cst_70 = arith.constant 1.000000e+00 : f32
    %375 = vector.broadcast %cst_70 : f32 to vector<1x32xf32>
    %376 = arith.addf %375, %374 : vector<1x32xf32>
    %377 = arith.divf %375, %376 : vector<1x32xf32>
    %378 = vector.extract_strided_slice %367 {offsets = [0, 32], sizes = [1, 32], strides = [1, 1]} : vector<1x96xf32> to vector<1x32xf32>
    %379 = vector.extract_strided_slice %369 {offsets = [0, 32], sizes = [1, 32], strides = [1, 1]} : vector<1x96xf32> to vector<1x32xf32>
    %380 = arith.addf %378, %379 : vector<1x32xf32>
    %381 = arith.negf %380 : vector<1x32xf32>
    %382 = math.exp %381 : vector<1x32xf32>
    %cst_71 = arith.constant 1.000000e+00 : f32
    %383 = vector.broadcast %cst_71 : f32 to vector<1x32xf32>
    %384 = arith.addf %383, %382 : vector<1x32xf32>
    %385 = arith.divf %383, %384 : vector<1x32xf32>
    %386 = vector.extract_strided_slice %367 {offsets = [0, 64], sizes = [1, 32], strides = [1, 1]} : vector<1x96xf32> to vector<1x32xf32>
    %387 = vector.extract_strided_slice %369 {offsets = [0, 64], sizes = [1, 32], strides = [1, 1]} : vector<1x96xf32> to vector<1x32xf32>
    %388 = arith.mulf %377, %387 : vector<1x32xf32>
    %389 = arith.addf %386, %388 : vector<1x32xf32>
    %390 = math.tanh %389 : vector<1x32xf32>
    %cst_72 = arith.constant 1.000000e+00 : f32
    %391 = vector.broadcast %cst_72 : f32 to vector<1x32xf32>
    %392 = arith.subf %391, %385 : vector<1x32xf32>
    %393 = arith.mulf %392, %390 : vector<1x32xf32>
    %394 = arith.mulf %385, %337 : vector<1x32xf32>
    %395 = arith.addf %393, %394 : vector<1x32xf32>
    %396 = vector.extract_strided_slice %12 {offsets = [1, 0], sizes = [1, 96], strides = [1, 1]} : vector<8x96xf32> to vector<1x96xf32>
    %cst_73 = arith.constant dense<0.000000e+00> : vector<1x96xf32>
    %397 = tpu.matmul %366, %14, %cst_73 {dimension_numbers = #tpu.dot_dimension_numbers<[1], [0], [0], [1], [0, 0, 1, 1], [], []>} : vector<1x32xf32>, vector<32x96xf32>, vector<1x96xf32> -> vector<1x96xf32>
    %398 = arith.addf %397, %16 : vector<1x96xf32>
    %399 = vector.extract_strided_slice %396 {offsets = [0, 0], sizes = [1, 32], strides = [1, 1]} : vector<1x96xf32> to vector<1x32xf32>
    %400 = vector.extract_strided_slice %398 {offsets = [0, 0], sizes = [1, 32], strides = [1, 1]} : vector<1x96xf32> to vector<1x32xf32>
    %401 = arith.addf %399, %400 : vector<1x32xf32>
    %402 = arith.negf %401 : vector<1x32xf32>
    %403 = math.exp %402 : vector<1x32xf32>
    %cst_74 = arith.constant 1.000000e+00 : f32
    %404 = vector.broadcast %cst_74 : f32 to vector<1x32xf32>
    %405 = arith.addf %404, %403 : vector<1x32xf32>
    %406 = arith.divf %404, %405 : vector<1x32xf32>
    %407 = vector.extract_strided_slice %396 {offsets = [0, 32], sizes = [1, 32], strides = [1, 1]} : vector<1x96xf32> to vector<1x32xf32>
    %408 = vector.extract_strided_slice %398 {offsets = [0, 32], sizes = [1, 32], strides = [1, 1]} : vector<1x96xf32> to vector<1x32xf32>
    %409 = arith.addf %407, %408 : vector<1x32xf32>
    %410 = arith.negf %409 : vector<1x32xf32>
    %411 = math.exp %410 : vector<1x32xf32>
    %cst_75 = arith.constant 1.000000e+00 : f32
    %412 = vector.broadcast %cst_75 : f32 to vector<1x32xf32>
    %413 = arith.addf %412, %411 : vector<1x32xf32>
    %414 = arith.divf %412, %413 : vector<1x32xf32>
    %415 = vector.extract_strided_slice %396 {offsets = [0, 64], sizes = [1, 32], strides = [1, 1]} : vector<1x96xf32> to vector<1x32xf32>
    %416 = vector.extract_strided_slice %398 {offsets = [0, 64], sizes = [1, 32], strides = [1, 1]} : vector<1x96xf32> to vector<1x32xf32>
    %417 = arith.mulf %406, %416 : vector<1x32xf32>
    %418 = arith.addf %415, %417 : vector<1x32xf32>
    %419 = math.tanh %418 : vector<1x32xf32>
    %cst_76 = arith.constant 1.000000e+00 : f32
    %420 = vector.broadcast %cst_76 : f32 to vector<1x32xf32>
    %421 = arith.subf %420, %414 : vector<1x32xf32>
    %422 = arith.mulf %421, %419 : vector<1x32xf32>
    %423 = arith.mulf %414, %366 : vector<1x32xf32>
    %424 = arith.addf %422, %423 : vector<1x32xf32>
    %425 = vector.extract_strided_slice %7 {offsets = [7, 0], sizes = [1, 96], strides = [1, 1]} : vector<8x96xf32> to vector<1x96xf32>
    %cst_77 = arith.constant dense<0.000000e+00> : vector<1x96xf32>
    %426 = tpu.matmul %395, %13, %cst_77 {dimension_numbers = #tpu.dot_dimension_numbers<[1], [0], [0], [1], [0, 0, 1, 1], [], []>} : vector<1x32xf32>, vector<32x96xf32>, vector<1x96xf32> -> vector<1x96xf32>
    %427 = arith.addf %426, %15 : vector<1x96xf32>
    %428 = vector.extract_strided_slice %425 {offsets = [0, 0], sizes = [1, 32], strides = [1, 1]} : vector<1x96xf32> to vector<1x32xf32>
    %429 = vector.extract_strided_slice %427 {offsets = [0, 0], sizes = [1, 32], strides = [1, 1]} : vector<1x96xf32> to vector<1x32xf32>
    %430 = arith.addf %428, %429 : vector<1x32xf32>
    %431 = arith.negf %430 : vector<1x32xf32>
    %432 = math.exp %431 : vector<1x32xf32>
    %cst_78 = arith.constant 1.000000e+00 : f32
    %433 = vector.broadcast %cst_78 : f32 to vector<1x32xf32>
    %434 = arith.addf %433, %432 : vector<1x32xf32>
    %435 = arith.divf %433, %434 : vector<1x32xf32>
    %436 = vector.extract_strided_slice %425 {offsets = [0, 32], sizes = [1, 32], strides = [1, 1]} : vector<1x96xf32> to vector<1x32xf32>
    %437 = vector.extract_strided_slice %427 {offsets = [0, 32], sizes = [1, 32], strides = [1, 1]} : vector<1x96xf32> to vector<1x32xf32>
    %438 = arith.addf %436, %437 : vector<1x32xf32>
    %439 = arith.negf %438 : vector<1x32xf32>
    %440 = math.exp %439 : vector<1x32xf32>
    %cst_79 = arith.constant 1.000000e+00 : f32
    %441 = vector.broadcast %cst_79 : f32 to vector<1x32xf32>
    %442 = arith.addf %441, %440 : vector<1x32xf32>
    %443 = arith.divf %441, %442 : vector<1x32xf32>
    %444 = vector.extract_strided_slice %425 {offsets = [0, 64], sizes = [1, 32], strides = [1, 1]} : vector<1x96xf32> to vector<1x32xf32>
    %445 = vector.extract_strided_slice %427 {offsets = [0, 64], sizes = [1, 32], strides = [1, 1]} : vector<1x96xf32> to vector<1x32xf32>
    %446 = arith.mulf %435, %445 : vector<1x32xf32>
    %447 = arith.addf %444, %446 : vector<1x32xf32>
    %448 = math.tanh %447 : vector<1x32xf32>
    %cst_80 = arith.constant 1.000000e+00 : f32
    %449 = vector.broadcast %cst_80 : f32 to vector<1x32xf32>
    %450 = arith.subf %449, %443 : vector<1x32xf32>
    %451 = arith.mulf %450, %448 : vector<1x32xf32>
    %452 = arith.mulf %443, %395 : vector<1x32xf32>
    %453 = arith.addf %451, %452 : vector<1x32xf32>
    %454 = vector.extract_strided_slice %12 {offsets = [0, 0], sizes = [1, 96], strides = [1, 1]} : vector<8x96xf32> to vector<1x96xf32>
    %cst_81 = arith.constant dense<0.000000e+00> : vector<1x96xf32>
    %455 = tpu.matmul %424, %14, %cst_81 {dimension_numbers = #tpu.dot_dimension_numbers<[1], [0], [0], [1], [0, 0, 1, 1], [], []>} : vector<1x32xf32>, vector<32x96xf32>, vector<1x96xf32> -> vector<1x96xf32>
    %456 = arith.addf %455, %16 : vector<1x96xf32>
    %457 = vector.extract_strided_slice %454 {offsets = [0, 0], sizes = [1, 32], strides = [1, 1]} : vector<1x96xf32> to vector<1x32xf32>
    %458 = vector.extract_strided_slice %456 {offsets = [0, 0], sizes = [1, 32], strides = [1, 1]} : vector<1x96xf32> to vector<1x32xf32>
    %459 = arith.addf %457, %458 : vector<1x32xf32>
    %460 = arith.negf %459 : vector<1x32xf32>
    %461 = math.exp %460 : vector<1x32xf32>
    %cst_82 = arith.constant 1.000000e+00 : f32
    %462 = vector.broadcast %cst_82 : f32 to vector<1x32xf32>
    %463 = arith.addf %462, %461 : vector<1x32xf32>
    %464 = arith.divf %462, %463 : vector<1x32xf32>
    %465 = vector.extract_strided_slice %454 {offsets = [0, 32], sizes = [1, 32], strides = [1, 1]} : vector<1x96xf32> to vector<1x32xf32>
    %466 = vector.extract_strided_slice %456 {offsets = [0, 32], sizes = [1, 32], strides = [1, 1]} : vector<1x96xf32> to vector<1x32xf32>
    %467 = arith.addf %465, %466 : vector<1x32xf32>
    %468 = arith.negf %467 : vector<1x32xf32>
    %469 = math.exp %468 : vector<1x32xf32>
    %cst_83 = arith.constant 1.000000e+00 : f32
    %470 = vector.broadcast %cst_83 : f32 to vector<1x32xf32>
    %471 = arith.addf %470, %469 : vector<1x32xf32>
    %472 = arith.divf %470, %471 : vector<1x32xf32>
    %473 = vector.extract_strided_slice %454 {offsets = [0, 64], sizes = [1, 32], strides = [1, 1]} : vector<1x96xf32> to vector<1x32xf32>
    %474 = vector.extract_strided_slice %456 {offsets = [0, 64], sizes = [1, 32], strides = [1, 1]} : vector<1x96xf32> to vector<1x32xf32>
    %475 = arith.mulf %464, %474 : vector<1x32xf32>
    %476 = arith.addf %473, %475 : vector<1x32xf32>
    %477 = math.tanh %476 : vector<1x32xf32>
    %cst_84 = arith.constant 1.000000e+00 : f32
    %478 = vector.broadcast %cst_84 : f32 to vector<1x32xf32>
    %479 = arith.subf %478, %472 : vector<1x32xf32>
    %480 = arith.mulf %479, %477 : vector<1x32xf32>
    %481 = arith.mulf %472, %424 : vector<1x32xf32>
    %482 = arith.addf %480, %481 : vector<1x32xf32>
    %483 = tpu.concatenate %47, %482 in 1 : vector<1x32xf32>, vector<1x32xf32> -> vector<1x64xf32>
    %484 = tpu.concatenate %105, %424 in 1 : vector<1x32xf32>, vector<1x32xf32> -> vector<1x64xf32>
    %485 = tpu.concatenate %163, %366 in 1 : vector<1x32xf32>, vector<1x32xf32> -> vector<1x64xf32>
    %486 = tpu.concatenate %221, %308 in 1 : vector<1x32xf32>, vector<1x32xf32> -> vector<1x64xf32>
    %487 = tpu.concatenate %279, %250 in 1 : vector<1x32xf32>, vector<1x32xf32> -> vector<1x64xf32>
    %488 = tpu.concatenate %337, %192 in 1 : vector<1x32xf32>, vector<1x32xf32> -> vector<1x64xf32>
    %489 = tpu.concatenate %395, %134 in 1 : vector<1x32xf32>, vector<1x32xf32> -> vector<1x64xf32>
    %490 = tpu.concatenate %453, %76 in 1 : vector<1x32xf32>, vector<1x32xf32> -> vector<1x64xf32>
    %491 = tpu.concatenate %483, %484, %485, %486, %487, %488, %489, %490 in 0 : vector<1x64xf32>, vector<1x64xf32>, vector<1x64xf32>, vector<1x64xf32>, vector<1x64xf32>, vector<1x64xf32>, vector<1x64xf32>, vector<1x64xf32> -> vector<8x64xf32>
    %c0_85 = arith.constant 0 : index
    %c0_86 = arith.constant 0 : index
    %c0_87 = arith.constant 0 : index
    %492 = vector.load %arg10[%c0_85, %c0_86, %c0_87] : memref<1x8x64xf32, #tpu.memory_space<vmem>>, vector<1x8x64xf32>
    %493 = vector.shape_cast %492 : vector<1x8x64xf32> to vector<8x64xf32>
    %494 = vector.shape_cast %491 : vector<8x64xf32> to vector<1x8x64xf32>
    tpu.vector_store %arg10[%c0_85, %c0_86, %c0_87], %494 {strides = array<i32>} : memref<1x8x64xf32, #tpu.memory_space<vmem>>, vector<1x8x64xf32>,
    return
  }
  func.func @transform_0(%arg0: i32) -> (i32, i32, i32) {
    %c0_i32 = arith.constant 0 : i32
    %c0_i32_0 = arith.constant 0 : i32
    %c0_i32_1 = arith.constant 0 : i32
    return %arg0, %c0_i32, %c0_i32_0 : i32, i32, i32
  }
  func.func @transform_1(%arg0: i32) -> (i32, i32) {
    %c0_i32 = arith.constant 0 : i32
    %c0_i32_0 = arith.constant 0 : i32
    %c0_i32_1 = arith.constant 0 : i32
    return %c0_i32, %c0_i32_0 : i32, i32
  }
  func.func @transform_2(%arg0: i32) -> (i32, i32) {
    %c0_i32 = arith.constant 0 : i32
    %c0_i32_0 = arith.constant 0 : i32
    %c0_i32_1 = arith.constant 0 : i32
    return %c0_i32, %c0_i32_0 : i32, i32
  }
  func.func @transform_3(%arg0: i32) -> (i32, i32) {
    %c0_i32 = arith.constant 0 : i32
    %c0_i32_0 = arith.constant 0 : i32
    %c0_i32_1 = arith.constant 0 : i32
    return %c0_i32, %c0_i32_0 : i32, i32
  }
  func.func @transform_4(%arg0: i32) -> (i32, i32) {
    %c0_i32 = arith.constant 0 : i32
    %c0_i32_0 = arith.constant 0 : i32
    %c0_i32_1 = arith.constant 0 : i32
    return %c0_i32, %c0_i32_0 : i32, i32
  }
  func.func @transform_5(%arg0: i32) -> (i32, i32) {
    %c0_i32 = arith.constant 0 : i32
    %c0_i32_0 = arith.constant 0 : i32
    %c0_i32_1 = arith.constant 0 : i32
    return %c0_i32, %c0_i32_0 : i32, i32
  }
  func.func @transform_6(%arg0: i32) -> (i32, i32) {
    %c0_i32 = arith.constant 0 : i32
    %c0_i32_0 = arith.constant 0 : i32
    %c0_i32_1 = arith.constant 0 : i32
    return %c0_i32, %c0_i32_0 : i32, i32
  }
  func.func @transform_7(%arg0: i32) -> (i32, i32) {
    %c0_i32 = arith.constant 0 : i32
    %c0_i32_0 = arith.constant 0 : i32
    %c0_i32_1 = arith.constant 0 : i32
    return %c0_i32, %c0_i32_0 : i32, i32
  }
  func.func @transform_8(%arg0: i32) -> (i32, i32) {
    %c0_i32 = arith.constant 0 : i32
    %c0_i32_0 = arith.constant 0 : i32
    %c0_i32_1 = arith.constant 0 : i32
    return %c0_i32, %c0_i32_0 : i32, i32
  }
  func.func @transform_9(%arg0: i32) -> (i32, i32, i32) {
    %c0_i32 = arith.constant 0 : i32
    %c0_i32_0 = arith.constant 0 : i32
    %c0_i32_1 = arith.constant 0 : i32
    return %arg0, %c0_i32, %c0_i32_0 : i32, i32, i32
  }
}

module attributes {stable_mosaic.version = 11 : i64} {
  func.func @conv_pair_kernel(%arg0: i32, %arg1: memref<1x8x80xbf16, #tpu.memory_space<vmem>>, %arg2: memref<1x7x64xbf16, #tpu.memory_space<vmem>>, %arg3: memref<80x64xbf16, #tpu.memory_space<vmem>>, %arg4: memref<64x64xbf16, #tpu.memory_space<vmem>>, %arg5: memref<1x64xf32, #tpu.memory_space<vmem>>, %arg6: memref<1x64xf32, #tpu.memory_space<vmem>>, %arg7: memref<1x8x64xf32, #tpu.memory_space<vmem>>, %arg8: memref<1x7x64xf32, #tpu.memory_space<vmem>>) attributes {dimension_semantics = [#tpu.dimension_semantics<parallel>], iteration_bounds = array<i64: 2>, scalar_prefetch = 0 : i64, scratch_operands = 0 : i64, tpu.core_type = #tpu.core_type<tc>, window_params = [{transform_indices = @transform_0, window_bounds = array<i64: 1, 8, 80>}, {transform_indices = @transform_1, window_bounds = array<i64: 1, 7, 64>}, {pipeline_mode = #tpu.pipeline_mode<synchronous>, transform_indices = @transform_2, window_bounds = array<i64: 80, 64>}, {pipeline_mode = #tpu.pipeline_mode<synchronous>, transform_indices = @transform_3, window_bounds = array<i64: 64, 64>}, {pipeline_mode = #tpu.pipeline_mode<synchronous>, transform_indices = @transform_4, window_bounds = array<i64: 1, 64>}, {pipeline_mode = #tpu.pipeline_mode<synchronous>, transform_indices = @transform_5, window_bounds = array<i64: 1, 64>}, {transform_indices = @transform_6, window_bounds = array<i64: 1, 8, 64>}, {transform_indices = @transform_7, window_bounds = array<i64: 1, 7, 64>}]} {
    %c0 = arith.constant 0 : index
    %c0_0 = arith.constant 0 : index
    %c0_1 = arith.constant 0 : index
    %0 = vector.load %arg1[%c0, %c0_0, %c0_1] : memref<1x8x80xbf16, #tpu.memory_space<vmem>>, vector<1x8x80xbf16>
    %1 = vector.shape_cast %0 : vector<1x8x80xbf16> to vector<8x80xbf16>
    %c0_2 = arith.constant 0 : index
    %c0_3 = arith.constant 0 : index
    %2 = vector.load %arg3[%c0_2, %c0_3] : memref<80x64xbf16, #tpu.memory_space<vmem>>, vector<80x64xbf16>
    %cst = arith.constant dense<0.000000e+00> : vector<8x64xf32>
    %3 = tpu.matmul %1, %2, %cst {dimension_numbers = #tpu.dot_dimension_numbers<[1], [0], [0], [1], [0, 0, 1, 1], [], []>} : vector<8x80xbf16>, vector<80x64xbf16>, vector<8x64xf32> -> vector<8x64xf32>
    %c0_4 = arith.constant 0 : index
    %c0_5 = arith.constant 0 : index
    %4 = vector.load %arg5[%c0_4, %c0_5] : memref<1x64xf32, #tpu.memory_space<vmem>>, vector<1x64xf32>
    %5 = vector.broadcast %4 : vector<1x64xf32> to vector<8x64xf32>
    %6 = arith.addf %3, %5 : vector<8x64xf32>
    %cst_6 = arith.constant 0.000000e+00 : f32
    %7 = vector.broadcast %cst_6 : f32 to vector<8x64xf32>
    %8 = arith.maximumf %6, %7 : vector<8x64xf32>
    %c0_7 = arith.constant 0 : index
    %c0_8 = arith.constant 0 : index
    %c0_9 = arith.constant 0 : index
    %9 = vector.load %arg7[%c0_7, %c0_8, %c0_9] : memref<1x8x64xf32, #tpu.memory_space<vmem>>, vector<1x8x64xf32>
    %10 = vector.shape_cast %9 : vector<1x8x64xf32> to vector<8x64xf32>
    %11 = vector.shape_cast %8 : vector<8x64xf32> to vector<1x8x64xf32>
    tpu.vector_store %arg7[%c0_7, %c0_8, %c0_9], %11 {strides = array<i32>} : memref<1x8x64xf32, #tpu.memory_space<vmem>>, vector<1x8x64xf32>,
    %c0_10 = arith.constant 0 : index
    %c0_11 = arith.constant 0 : index
    %c0_12 = arith.constant 0 : index
    %12 = vector.load %arg2[%c0_10, %c0_11, %c0_12] : memref<1x7x64xbf16, #tpu.memory_space<vmem>>, vector<1x7x64xbf16>
    %13 = vector.shape_cast %12 : vector<1x7x64xbf16> to vector<7x64xbf16>
    %c0_13 = arith.constant 0 : index
    %c0_14 = arith.constant 0 : index
    %14 = vector.load %arg4[%c0_13, %c0_14] : memref<64x64xbf16, #tpu.memory_space<vmem>>, vector<64x64xbf16>
    %cst_15 = arith.constant dense<0.000000e+00> : vector<7x64xf32>
    %15 = tpu.matmul %13, %14, %cst_15 {dimension_numbers = #tpu.dot_dimension_numbers<[1], [0], [0], [1], [0, 0, 1, 1], [], []>} : vector<7x64xbf16>, vector<64x64xbf16>, vector<7x64xf32> -> vector<7x64xf32>
    %c0_16 = arith.constant 0 : index
    %c0_17 = arith.constant 0 : index
    %16 = vector.load %arg6[%c0_16, %c0_17] : memref<1x64xf32, #tpu.memory_space<vmem>>, vector<1x64xf32>
    %17 = vector.broadcast %16 : vector<1x64xf32> to vector<7x64xf32>
    %18 = arith.addf %15, %17 : vector<7x64xf32>
    %cst_18 = arith.constant 0.000000e+00 : f32
    %19 = vector.broadcast %cst_18 : f32 to vector<7x64xf32>
    %20 = arith.maximumf %18, %19 : vector<7x64xf32>
    %c0_19 = arith.constant 0 : index
    %c0_20 = arith.constant 0 : index
    %c0_21 = arith.constant 0 : index
    %21 = vector.load %arg8[%c0_19, %c0_20, %c0_21] : memref<1x7x64xf32, #tpu.memory_space<vmem>>, vector<1x7x64xf32>
    %22 = vector.shape_cast %21 : vector<1x7x64xf32> to vector<7x64xf32>
    %23 = vector.shape_cast %20 : vector<7x64xf32> to vector<1x7x64xf32>
    tpu.vector_store %arg8[%c0_19, %c0_20, %c0_21], %23 {strides = array<i32>} : memref<1x7x64xf32, #tpu.memory_space<vmem>>, vector<1x7x64xf32>,
    return
  }
  func.func @transform_0(%arg0: i32) -> (i32, i32, i32) {
    %c0_i32 = arith.constant 0 : i32
    %c0_i32_0 = arith.constant 0 : i32
    %c0_i32_1 = arith.constant 0 : i32
    return %arg0, %c0_i32, %c0_i32_0 : i32, i32, i32
  }
  func.func @transform_1(%arg0: i32) -> (i32, i32, i32) {
    %c0_i32 = arith.constant 0 : i32
    %c0_i32_0 = arith.constant 0 : i32
    %c0_i32_1 = arith.constant 0 : i32
    return %arg0, %c0_i32, %c0_i32_0 : i32, i32, i32
  }
  func.func @transform_2(%arg0: i32) -> (i32, i32) {
    %c0_i32 = arith.constant 0 : i32
    %c0_i32_0 = arith.constant 0 : i32
    %c0_i32_1 = arith.constant 0 : i32
    return %c0_i32, %c0_i32_0 : i32, i32
  }
  func.func @transform_3(%arg0: i32) -> (i32, i32) {
    %c0_i32 = arith.constant 0 : i32
    %c0_i32_0 = arith.constant 0 : i32
    %c0_i32_1 = arith.constant 0 : i32
    return %c0_i32, %c0_i32_0 : i32, i32
  }
  func.func @transform_4(%arg0: i32) -> (i32, i32) {
    %c0_i32 = arith.constant 0 : i32
    %c0_i32_0 = arith.constant 0 : i32
    %c0_i32_1 = arith.constant 0 : i32
    return %c0_i32, %c0_i32_0 : i32, i32
  }
  func.func @transform_5(%arg0: i32) -> (i32, i32) {
    %c0_i32 = arith.constant 0 : i32
    %c0_i32_0 = arith.constant 0 : i32
    %c0_i32_1 = arith.constant 0 : i32
    return %c0_i32, %c0_i32_0 : i32, i32
  }
  func.func @transform_6(%arg0: i32) -> (i32, i32, i32) {
    %c0_i32 = arith.constant 0 : i32
    %c0_i32_0 = arith.constant 0 : i32
    %c0_i32_1 = arith.constant 0 : i32
    return %arg0, %c0_i32, %c0_i32_0 : i32, i32, i32
  }
  func.func @transform_7(%arg0: i32) -> (i32, i32, i32) {
    %c0_i32 = arith.constant 0 : i32
    %c0_i32_0 = arith.constant 0 : i32
    %c0_i32_1 = arith.constant 0 : i32
    return %arg0, %c0_i32, %c0_i32_0 : i32, i32, i32
  }
}

module attributes {stable_mosaic.version = 11 : i64} {
  func.func @bigru_kernel(%arg0: i32, %arg1: memref<1x7x64xf32, #tpu.memory_space<vmem>>, %arg2: memref<64x96xbf16, #tpu.memory_space<vmem>>, %arg3: memref<64x96xbf16, #tpu.memory_space<vmem>>, %arg4: memref<32x96xf32, #tpu.memory_space<vmem>>, %arg5: memref<32x96xf32, #tpu.memory_space<vmem>>, %arg6: memref<1x96xf32, #tpu.memory_space<vmem>>, %arg7: memref<1x96xf32, #tpu.memory_space<vmem>>, %arg8: memref<1x96xf32, #tpu.memory_space<vmem>>, %arg9: memref<1x96xf32, #tpu.memory_space<vmem>>, %arg10: memref<1x7x64xf32, #tpu.memory_space<vmem>>) attributes {dimension_semantics = [#tpu.dimension_semantics<parallel>], iteration_bounds = array<i64: 2>, scalar_prefetch = 0 : i64, scratch_operands = 0 : i64, tpu.core_type = #tpu.core_type<tc>, window_params = [{transform_indices = @transform_0, window_bounds = array<i64: 1, 7, 64>}, {pipeline_mode = #tpu.pipeline_mode<synchronous>, transform_indices = @transform_1, window_bounds = array<i64: 64, 96>}, {pipeline_mode = #tpu.pipeline_mode<synchronous>, transform_indices = @transform_2, window_bounds = array<i64: 64, 96>}, {pipeline_mode = #tpu.pipeline_mode<synchronous>, transform_indices = @transform_3, window_bounds = array<i64: 32, 96>}, {pipeline_mode = #tpu.pipeline_mode<synchronous>, transform_indices = @transform_4, window_bounds = array<i64: 32, 96>}, {pipeline_mode = #tpu.pipeline_mode<synchronous>, transform_indices = @transform_5, window_bounds = array<i64: 1, 96>}, {pipeline_mode = #tpu.pipeline_mode<synchronous>, transform_indices = @transform_6, window_bounds = array<i64: 1, 96>}, {pipeline_mode = #tpu.pipeline_mode<synchronous>, transform_indices = @transform_7, window_bounds = array<i64: 1, 96>}, {pipeline_mode = #tpu.pipeline_mode<synchronous>, transform_indices = @transform_8, window_bounds = array<i64: 1, 96>}, {transform_indices = @transform_9, window_bounds = array<i64: 1, 7, 64>}]} {
    %c0 = arith.constant 0 : index
    %c0_0 = arith.constant 0 : index
    %c0_1 = arith.constant 0 : index
    %0 = vector.load %arg1[%c0, %c0_0, %c0_1] : memref<1x7x64xf32, #tpu.memory_space<vmem>>, vector<1x7x64xf32>
    %1 = vector.shape_cast %0 : vector<1x7x64xf32> to vector<7x64xf32>
    %2 = arith.truncf %1 : vector<7x64xf32> to vector<7x64xbf16>
    %c0_2 = arith.constant 0 : index
    %c0_3 = arith.constant 0 : index
    %3 = vector.load %arg2[%c0_2, %c0_3] : memref<64x96xbf16, #tpu.memory_space<vmem>>, vector<64x96xbf16>
    %cst = arith.constant dense<0.000000e+00> : vector<7x96xf32>
    %4 = tpu.matmul %2, %3, %cst {dimension_numbers = #tpu.dot_dimension_numbers<[1], [0], [0], [1], [0, 0, 1, 1], [], []>} : vector<7x64xbf16>, vector<64x96xbf16>, vector<7x96xf32> -> vector<7x96xf32>
    %c0_4 = arith.constant 0 : index
    %c0_5 = arith.constant 0 : index
    %5 = vector.load %arg6[%c0_4, %c0_5] : memref<1x96xf32, #tpu.memory_space<vmem>>, vector<1x96xf32>
    %6 = vector.broadcast %5 : vector<1x96xf32> to vector<7x96xf32>
    %7 = arith.addf %4, %6 : vector<7x96xf32>
    %c0_6 = arith.constant 0 : index
    %c0_7 = arith.constant 0 : index
    %8 = vector.load %arg3[%c0_6, %c0_7] : memref<64x96xbf16, #tpu.memory_space<vmem>>, vector<64x96xbf16>
    %cst_8 = arith.constant dense<0.000000e+00> : vector<7x96xf32>
    %9 = tpu.matmul %2, %8, %cst_8 {dimension_numbers = #tpu.dot_dimension_numbers<[1], [0], [0], [1], [0, 0, 1, 1], [], []>} : vector<7x64xbf16>, vector<64x96xbf16>, vector<7x96xf32> -> vector<7x96xf32>
    %c0_9 = arith.constant 0 : index
    %c0_10 = arith.constant 0 : index
    %10 = vector.load %arg7[%c0_9, %c0_10] : memref<1x96xf32, #tpu.memory_space<vmem>>, vector<1x96xf32>
    %11 = vector.broadcast %10 : vector<1x96xf32> to vector<7x96xf32>
    %12 = arith.addf %9, %11 : vector<7x96xf32>
    %c0_11 = arith.constant 0 : index
    %c0_12 = arith.constant 0 : index
    %13 = vector.load %arg4[%c0_11, %c0_12] : memref<32x96xf32, #tpu.memory_space<vmem>>, vector<32x96xf32>
    %c0_13 = arith.constant 0 : index
    %c0_14 = arith.constant 0 : index
    %14 = vector.load %arg5[%c0_13, %c0_14] : memref<32x96xf32, #tpu.memory_space<vmem>>, vector<32x96xf32>
    %c0_15 = arith.constant 0 : index
    %c0_16 = arith.constant 0 : index
    %15 = vector.load %arg8[%c0_15, %c0_16] : memref<1x96xf32, #tpu.memory_space<vmem>>, vector<1x96xf32>
    %c0_17 = arith.constant 0 : index
    %c0_18 = arith.constant 0 : index
    %16 = vector.load %arg9[%c0_17, %c0_18] : memref<1x96xf32, #tpu.memory_space<vmem>>, vector<1x96xf32>
    %cst_19 = arith.constant 0.000000e+00 : f32
    %17 = vector.broadcast %cst_19 : f32 to vector<1x32xf32>
    %cst_20 = arith.constant 0.000000e+00 : f32
    %18 = vector.broadcast %cst_20 : f32 to vector<1x32xf32>
    %19 = vector.extract_strided_slice %7 {offsets = [0, 0], sizes = [1, 96], strides = [1, 1]} : vector<7x96xf32> to vector<1x96xf32>
    %cst_21 = arith.constant dense<0.000000e+00> : vector<1x96xf32>
    %20 = tpu.matmul %17, %13, %cst_21 {dimension_numbers = #tpu.dot_dimension_numbers<[1], [0], [0], [1], [0, 0, 1, 1], [], []>} : vector<1x32xf32>, vector<32x96xf32>, vector<1x96xf32> -> vector<1x96xf32>
    %21 = arith.addf %20, %15 : vector<1x96xf32>
    %22 = vector.extract_strided_slice %19 {offsets = [0, 0], sizes = [1, 32], strides = [1, 1]} : vector<1x96xf32> to vector<1x32xf32>
    %23 = vector.extract_strided_slice %21 {offsets = [0, 0], sizes = [1, 32], strides = [1, 1]} : vector<1x96xf32> to vector<1x32xf32>
    %24 = arith.addf %22, %23 : vector<1x32xf32>
    %25 = arith.negf %24 : vector<1x32xf32>
    %26 = math.exp %25 : vector<1x32xf32>
    %cst_22 = arith.constant 1.000000e+00 : f32
    %27 = vector.broadcast %cst_22 : f32 to vector<1x32xf32>
    %28 = arith.addf %27, %26 : vector<1x32xf32>
    %29 = arith.divf %27, %28 : vector<1x32xf32>
    %30 = vector.extract_strided_slice %19 {offsets = [0, 32], sizes = [1, 32], strides = [1, 1]} : vector<1x96xf32> to vector<1x32xf32>
    %31 = vector.extract_strided_slice %21 {offsets = [0, 32], sizes = [1, 32], strides = [1, 1]} : vector<1x96xf32> to vector<1x32xf32>
    %32 = arith.addf %30, %31 : vector<1x32xf32>
    %33 = arith.negf %32 : vector<1x32xf32>
    %34 = math.exp %33 : vector<1x32xf32>
    %cst_23 = arith.constant 1.000000e+00 : f32
    %35 = vector.broadcast %cst_23 : f32 to vector<1x32xf32>
    %36 = arith.addf %35, %34 : vector<1x32xf32>
    %37 = arith.divf %35, %36 : vector<1x32xf32>
    %38 = vector.extract_strided_slice %19 {offsets = [0, 64], sizes = [1, 32], strides = [1, 1]} : vector<1x96xf32> to vector<1x32xf32>
    %39 = vector.extract_strided_slice %21 {offsets = [0, 64], sizes = [1, 32], strides = [1, 1]} : vector<1x96xf32> to vector<1x32xf32>
    %40 = arith.mulf %29, %39 : vector<1x32xf32>
    %41 = arith.addf %38, %40 : vector<1x32xf32>
    %42 = math.tanh %41 : vector<1x32xf32>
    %cst_24 = arith.constant 1.000000e+00 : f32
    %43 = vector.broadcast %cst_24 : f32 to vector<1x32xf32>
    %44 = arith.subf %43, %37 : vector<1x32xf32>
    %45 = arith.mulf %44, %42 : vector<1x32xf32>
    %46 = arith.mulf %37, %17 : vector<1x32xf32>
    %47 = arith.addf %45, %46 : vector<1x32xf32>
    %48 = vector.extract_strided_slice %12 {offsets = [6, 0], sizes = [1, 96], strides = [1, 1]} : vector<7x96xf32> to vector<1x96xf32>
    %cst_25 = arith.constant dense<0.000000e+00> : vector<1x96xf32>
    %49 = tpu.matmul %18, %14, %cst_25 {dimension_numbers = #tpu.dot_dimension_numbers<[1], [0], [0], [1], [0, 0, 1, 1], [], []>} : vector<1x32xf32>, vector<32x96xf32>, vector<1x96xf32> -> vector<1x96xf32>
    %50 = arith.addf %49, %16 : vector<1x96xf32>
    %51 = vector.extract_strided_slice %48 {offsets = [0, 0], sizes = [1, 32], strides = [1, 1]} : vector<1x96xf32> to vector<1x32xf32>
    %52 = vector.extract_strided_slice %50 {offsets = [0, 0], sizes = [1, 32], strides = [1, 1]} : vector<1x96xf32> to vector<1x32xf32>
    %53 = arith.addf %51, %52 : vector<1x32xf32>
    %54 = arith.negf %53 : vector<1x32xf32>
    %55 = math.exp %54 : vector<1x32xf32>
    %cst_26 = arith.constant 1.000000e+00 : f32
    %56 = vector.broadcast %cst_26 : f32 to vector<1x32xf32>
    %57 = arith.addf %56, %55 : vector<1x32xf32>
    %58 = arith.divf %56, %57 : vector<1x32xf32>
    %59 = vector.extract_strided_slice %48 {offsets = [0, 32], sizes = [1, 32], strides = [1, 1]} : vector<1x96xf32> to vector<1x32xf32>
    %60 = vector.extract_strided_slice %50 {offsets = [0, 32], sizes = [1, 32], strides = [1, 1]} : vector<1x96xf32> to vector<1x32xf32>
    %61 = arith.addf %59, %60 : vector<1x32xf32>
    %62 = arith.negf %61 : vector<1x32xf32>
    %63 = math.exp %62 : vector<1x32xf32>
    %cst_27 = arith.constant 1.000000e+00 : f32
    %64 = vector.broadcast %cst_27 : f32 to vector<1x32xf32>
    %65 = arith.addf %64, %63 : vector<1x32xf32>
    %66 = arith.divf %64, %65 : vector<1x32xf32>
    %67 = vector.extract_strided_slice %48 {offsets = [0, 64], sizes = [1, 32], strides = [1, 1]} : vector<1x96xf32> to vector<1x32xf32>
    %68 = vector.extract_strided_slice %50 {offsets = [0, 64], sizes = [1, 32], strides = [1, 1]} : vector<1x96xf32> to vector<1x32xf32>
    %69 = arith.mulf %58, %68 : vector<1x32xf32>
    %70 = arith.addf %67, %69 : vector<1x32xf32>
    %71 = math.tanh %70 : vector<1x32xf32>
    %cst_28 = arith.constant 1.000000e+00 : f32
    %72 = vector.broadcast %cst_28 : f32 to vector<1x32xf32>
    %73 = arith.subf %72, %66 : vector<1x32xf32>
    %74 = arith.mulf %73, %71 : vector<1x32xf32>
    %75 = arith.mulf %66, %18 : vector<1x32xf32>
    %76 = arith.addf %74, %75 : vector<1x32xf32>
    %77 = vector.extract_strided_slice %7 {offsets = [1, 0], sizes = [1, 96], strides = [1, 1]} : vector<7x96xf32> to vector<1x96xf32>
    %cst_29 = arith.constant dense<0.000000e+00> : vector<1x96xf32>
    %78 = tpu.matmul %47, %13, %cst_29 {dimension_numbers = #tpu.dot_dimension_numbers<[1], [0], [0], [1], [0, 0, 1, 1], [], []>} : vector<1x32xf32>, vector<32x96xf32>, vector<1x96xf32> -> vector<1x96xf32>
    %79 = arith.addf %78, %15 : vector<1x96xf32>
    %80 = vector.extract_strided_slice %77 {offsets = [0, 0], sizes = [1, 32], strides = [1, 1]} : vector<1x96xf32> to vector<1x32xf32>
    %81 = vector.extract_strided_slice %79 {offsets = [0, 0], sizes = [1, 32], strides = [1, 1]} : vector<1x96xf32> to vector<1x32xf32>
    %82 = arith.addf %80, %81 : vector<1x32xf32>
    %83 = arith.negf %82 : vector<1x32xf32>
    %84 = math.exp %83 : vector<1x32xf32>
    %cst_30 = arith.constant 1.000000e+00 : f32
    %85 = vector.broadcast %cst_30 : f32 to vector<1x32xf32>
    %86 = arith.addf %85, %84 : vector<1x32xf32>
    %87 = arith.divf %85, %86 : vector<1x32xf32>
    %88 = vector.extract_strided_slice %77 {offsets = [0, 32], sizes = [1, 32], strides = [1, 1]} : vector<1x96xf32> to vector<1x32xf32>
    %89 = vector.extract_strided_slice %79 {offsets = [0, 32], sizes = [1, 32], strides = [1, 1]} : vector<1x96xf32> to vector<1x32xf32>
    %90 = arith.addf %88, %89 : vector<1x32xf32>
    %91 = arith.negf %90 : vector<1x32xf32>
    %92 = math.exp %91 : vector<1x32xf32>
    %cst_31 = arith.constant 1.000000e+00 : f32
    %93 = vector.broadcast %cst_31 : f32 to vector<1x32xf32>
    %94 = arith.addf %93, %92 : vector<1x32xf32>
    %95 = arith.divf %93, %94 : vector<1x32xf32>
    %96 = vector.extract_strided_slice %77 {offsets = [0, 64], sizes = [1, 32], strides = [1, 1]} : vector<1x96xf32> to vector<1x32xf32>
    %97 = vector.extract_strided_slice %79 {offsets = [0, 64], sizes = [1, 32], strides = [1, 1]} : vector<1x96xf32> to vector<1x32xf32>
    %98 = arith.mulf %87, %97 : vector<1x32xf32>
    %99 = arith.addf %96, %98 : vector<1x32xf32>
    %100 = math.tanh %99 : vector<1x32xf32>
    %cst_32 = arith.constant 1.000000e+00 : f32
    %101 = vector.broadcast %cst_32 : f32 to vector<1x32xf32>
    %102 = arith.subf %101, %95 : vector<1x32xf32>
    %103 = arith.mulf %102, %100 : vector<1x32xf32>
    %104 = arith.mulf %95, %47 : vector<1x32xf32>
    %105 = arith.addf %103, %104 : vector<1x32xf32>
    %106 = vector.extract_strided_slice %12 {offsets = [5, 0], sizes = [1, 96], strides = [1, 1]} : vector<7x96xf32> to vector<1x96xf32>
    %cst_33 = arith.constant dense<0.000000e+00> : vector<1x96xf32>
    %107 = tpu.matmul %76, %14, %cst_33 {dimension_numbers = #tpu.dot_dimension_numbers<[1], [0], [0], [1], [0, 0, 1, 1], [], []>} : vector<1x32xf32>, vector<32x96xf32>, vector<1x96xf32> -> vector<1x96xf32>
    %108 = arith.addf %107, %16 : vector<1x96xf32>
    %109 = vector.extract_strided_slice %106 {offsets = [0, 0], sizes = [1, 32], strides = [1, 1]} : vector<1x96xf32> to vector<1x32xf32>
    %110 = vector.extract_strided_slice %108 {offsets = [0, 0], sizes = [1, 32], strides = [1, 1]} : vector<1x96xf32> to vector<1x32xf32>
    %111 = arith.addf %109, %110 : vector<1x32xf32>
    %112 = arith.negf %111 : vector<1x32xf32>
    %113 = math.exp %112 : vector<1x32xf32>
    %cst_34 = arith.constant 1.000000e+00 : f32
    %114 = vector.broadcast %cst_34 : f32 to vector<1x32xf32>
    %115 = arith.addf %114, %113 : vector<1x32xf32>
    %116 = arith.divf %114, %115 : vector<1x32xf32>
    %117 = vector.extract_strided_slice %106 {offsets = [0, 32], sizes = [1, 32], strides = [1, 1]} : vector<1x96xf32> to vector<1x32xf32>
    %118 = vector.extract_strided_slice %108 {offsets = [0, 32], sizes = [1, 32], strides = [1, 1]} : vector<1x96xf32> to vector<1x32xf32>
    %119 = arith.addf %117, %118 : vector<1x32xf32>
    %120 = arith.negf %119 : vector<1x32xf32>
    %121 = math.exp %120 : vector<1x32xf32>
    %cst_35 = arith.constant 1.000000e+00 : f32
    %122 = vector.broadcast %cst_35 : f32 to vector<1x32xf32>
    %123 = arith.addf %122, %121 : vector<1x32xf32>
    %124 = arith.divf %122, %123 : vector<1x32xf32>
    %125 = vector.extract_strided_slice %106 {offsets = [0, 64], sizes = [1, 32], strides = [1, 1]} : vector<1x96xf32> to vector<1x32xf32>
    %126 = vector.extract_strided_slice %108 {offsets = [0, 64], sizes = [1, 32], strides = [1, 1]} : vector<1x96xf32> to vector<1x32xf32>
    %127 = arith.mulf %116, %126 : vector<1x32xf32>
    %128 = arith.addf %125, %127 : vector<1x32xf32>
    %129 = math.tanh %128 : vector<1x32xf32>
    %cst_36 = arith.constant 1.000000e+00 : f32
    %130 = vector.broadcast %cst_36 : f32 to vector<1x32xf32>
    %131 = arith.subf %130, %124 : vector<1x32xf32>
    %132 = arith.mulf %131, %129 : vector<1x32xf32>
    %133 = arith.mulf %124, %76 : vector<1x32xf32>
    %134 = arith.addf %132, %133 : vector<1x32xf32>
    %135 = vector.extract_strided_slice %7 {offsets = [2, 0], sizes = [1, 96], strides = [1, 1]} : vector<7x96xf32> to vector<1x96xf32>
    %cst_37 = arith.constant dense<0.000000e+00> : vector<1x96xf32>
    %136 = tpu.matmul %105, %13, %cst_37 {dimension_numbers = #tpu.dot_dimension_numbers<[1], [0], [0], [1], [0, 0, 1, 1], [], []>} : vector<1x32xf32>, vector<32x96xf32>, vector<1x96xf32> -> vector<1x96xf32>
    %137 = arith.addf %136, %15 : vector<1x96xf32>
    %138 = vector.extract_strided_slice %135 {offsets = [0, 0], sizes = [1, 32], strides = [1, 1]} : vector<1x96xf32> to vector<1x32xf32>
    %139 = vector.extract_strided_slice %137 {offsets = [0, 0], sizes = [1, 32], strides = [1, 1]} : vector<1x96xf32> to vector<1x32xf32>
    %140 = arith.addf %138, %139 : vector<1x32xf32>
    %141 = arith.negf %140 : vector<1x32xf32>
    %142 = math.exp %141 : vector<1x32xf32>
    %cst_38 = arith.constant 1.000000e+00 : f32
    %143 = vector.broadcast %cst_38 : f32 to vector<1x32xf32>
    %144 = arith.addf %143, %142 : vector<1x32xf32>
    %145 = arith.divf %143, %144 : vector<1x32xf32>
    %146 = vector.extract_strided_slice %135 {offsets = [0, 32], sizes = [1, 32], strides = [1, 1]} : vector<1x96xf32> to vector<1x32xf32>
    %147 = vector.extract_strided_slice %137 {offsets = [0, 32], sizes = [1, 32], strides = [1, 1]} : vector<1x96xf32> to vector<1x32xf32>
    %148 = arith.addf %146, %147 : vector<1x32xf32>
    %149 = arith.negf %148 : vector<1x32xf32>
    %150 = math.exp %149 : vector<1x32xf32>
    %cst_39 = arith.constant 1.000000e+00 : f32
    %151 = vector.broadcast %cst_39 : f32 to vector<1x32xf32>
    %152 = arith.addf %151, %150 : vector<1x32xf32>
    %153 = arith.divf %151, %152 : vector<1x32xf32>
    %154 = vector.extract_strided_slice %135 {offsets = [0, 64], sizes = [1, 32], strides = [1, 1]} : vector<1x96xf32> to vector<1x32xf32>
    %155 = vector.extract_strided_slice %137 {offsets = [0, 64], sizes = [1, 32], strides = [1, 1]} : vector<1x96xf32> to vector<1x32xf32>
    %156 = arith.mulf %145, %155 : vector<1x32xf32>
    %157 = arith.addf %154, %156 : vector<1x32xf32>
    %158 = math.tanh %157 : vector<1x32xf32>
    %cst_40 = arith.constant 1.000000e+00 : f32
    %159 = vector.broadcast %cst_40 : f32 to vector<1x32xf32>
    %160 = arith.subf %159, %153 : vector<1x32xf32>
    %161 = arith.mulf %160, %158 : vector<1x32xf32>
    %162 = arith.mulf %153, %105 : vector<1x32xf32>
    %163 = arith.addf %161, %162 : vector<1x32xf32>
    %164 = vector.extract_strided_slice %12 {offsets = [4, 0], sizes = [1, 96], strides = [1, 1]} : vector<7x96xf32> to vector<1x96xf32>
    %cst_41 = arith.constant dense<0.000000e+00> : vector<1x96xf32>
    %165 = tpu.matmul %134, %14, %cst_41 {dimension_numbers = #tpu.dot_dimension_numbers<[1], [0], [0], [1], [0, 0, 1, 1], [], []>} : vector<1x32xf32>, vector<32x96xf32>, vector<1x96xf32> -> vector<1x96xf32>
    %166 = arith.addf %165, %16 : vector<1x96xf32>
    %167 = vector.extract_strided_slice %164 {offsets = [0, 0], sizes = [1, 32], strides = [1, 1]} : vector<1x96xf32> to vector<1x32xf32>
    %168 = vector.extract_strided_slice %166 {offsets = [0, 0], sizes = [1, 32], strides = [1, 1]} : vector<1x96xf32> to vector<1x32xf32>
    %169 = arith.addf %167, %168 : vector<1x32xf32>
    %170 = arith.negf %169 : vector<1x32xf32>
    %171 = math.exp %170 : vector<1x32xf32>
    %cst_42 = arith.constant 1.000000e+00 : f32
    %172 = vector.broadcast %cst_42 : f32 to vector<1x32xf32>
    %173 = arith.addf %172, %171 : vector<1x32xf32>
    %174 = arith.divf %172, %173 : vector<1x32xf32>
    %175 = vector.extract_strided_slice %164 {offsets = [0, 32], sizes = [1, 32], strides = [1, 1]} : vector<1x96xf32> to vector<1x32xf32>
    %176 = vector.extract_strided_slice %166 {offsets = [0, 32], sizes = [1, 32], strides = [1, 1]} : vector<1x96xf32> to vector<1x32xf32>
    %177 = arith.addf %175, %176 : vector<1x32xf32>
    %178 = arith.negf %177 : vector<1x32xf32>
    %179 = math.exp %178 : vector<1x32xf32>
    %cst_43 = arith.constant 1.000000e+00 : f32
    %180 = vector.broadcast %cst_43 : f32 to vector<1x32xf32>
    %181 = arith.addf %180, %179 : vector<1x32xf32>
    %182 = arith.divf %180, %181 : vector<1x32xf32>
    %183 = vector.extract_strided_slice %164 {offsets = [0, 64], sizes = [1, 32], strides = [1, 1]} : vector<1x96xf32> to vector<1x32xf32>
    %184 = vector.extract_strided_slice %166 {offsets = [0, 64], sizes = [1, 32], strides = [1, 1]} : vector<1x96xf32> to vector<1x32xf32>
    %185 = arith.mulf %174, %184 : vector<1x32xf32>
    %186 = arith.addf %183, %185 : vector<1x32xf32>
    %187 = math.tanh %186 : vector<1x32xf32>
    %cst_44 = arith.constant 1.000000e+00 : f32
    %188 = vector.broadcast %cst_44 : f32 to vector<1x32xf32>
    %189 = arith.subf %188, %182 : vector<1x32xf32>
    %190 = arith.mulf %189, %187 : vector<1x32xf32>
    %191 = arith.mulf %182, %134 : vector<1x32xf32>
    %192 = arith.addf %190, %191 : vector<1x32xf32>
    %193 = vector.extract_strided_slice %7 {offsets = [3, 0], sizes = [1, 96], strides = [1, 1]} : vector<7x96xf32> to vector<1x96xf32>
    %cst_45 = arith.constant dense<0.000000e+00> : vector<1x96xf32>
    %194 = tpu.matmul %163, %13, %cst_45 {dimension_numbers = #tpu.dot_dimension_numbers<[1], [0], [0], [1], [0, 0, 1, 1], [], []>} : vector<1x32xf32>, vector<32x96xf32>, vector<1x96xf32> -> vector<1x96xf32>
    %195 = arith.addf %194, %15 : vector<1x96xf32>
    %196 = vector.extract_strided_slice %193 {offsets = [0, 0], sizes = [1, 32], strides = [1, 1]} : vector<1x96xf32> to vector<1x32xf32>
    %197 = vector.extract_strided_slice %195 {offsets = [0, 0], sizes = [1, 32], strides = [1, 1]} : vector<1x96xf32> to vector<1x32xf32>
    %198 = arith.addf %196, %197 : vector<1x32xf32>
    %199 = arith.negf %198 : vector<1x32xf32>
    %200 = math.exp %199 : vector<1x32xf32>
    %cst_46 = arith.constant 1.000000e+00 : f32
    %201 = vector.broadcast %cst_46 : f32 to vector<1x32xf32>
    %202 = arith.addf %201, %200 : vector<1x32xf32>
    %203 = arith.divf %201, %202 : vector<1x32xf32>
    %204 = vector.extract_strided_slice %193 {offsets = [0, 32], sizes = [1, 32], strides = [1, 1]} : vector<1x96xf32> to vector<1x32xf32>
    %205 = vector.extract_strided_slice %195 {offsets = [0, 32], sizes = [1, 32], strides = [1, 1]} : vector<1x96xf32> to vector<1x32xf32>
    %206 = arith.addf %204, %205 : vector<1x32xf32>
    %207 = arith.negf %206 : vector<1x32xf32>
    %208 = math.exp %207 : vector<1x32xf32>
    %cst_47 = arith.constant 1.000000e+00 : f32
    %209 = vector.broadcast %cst_47 : f32 to vector<1x32xf32>
    %210 = arith.addf %209, %208 : vector<1x32xf32>
    %211 = arith.divf %209, %210 : vector<1x32xf32>
    %212 = vector.extract_strided_slice %193 {offsets = [0, 64], sizes = [1, 32], strides = [1, 1]} : vector<1x96xf32> to vector<1x32xf32>
    %213 = vector.extract_strided_slice %195 {offsets = [0, 64], sizes = [1, 32], strides = [1, 1]} : vector<1x96xf32> to vector<1x32xf32>
    %214 = arith.mulf %203, %213 : vector<1x32xf32>
    %215 = arith.addf %212, %214 : vector<1x32xf32>
    %216 = math.tanh %215 : vector<1x32xf32>
    %cst_48 = arith.constant 1.000000e+00 : f32
    %217 = vector.broadcast %cst_48 : f32 to vector<1x32xf32>
    %218 = arith.subf %217, %211 : vector<1x32xf32>
    %219 = arith.mulf %218, %216 : vector<1x32xf32>
    %220 = arith.mulf %211, %163 : vector<1x32xf32>
    %221 = arith.addf %219, %220 : vector<1x32xf32>
    %222 = vector.extract_strided_slice %12 {offsets = [3, 0], sizes = [1, 96], strides = [1, 1]} : vector<7x96xf32> to vector<1x96xf32>
    %cst_49 = arith.constant dense<0.000000e+00> : vector<1x96xf32>
    %223 = tpu.matmul %192, %14, %cst_49 {dimension_numbers = #tpu.dot_dimension_numbers<[1], [0], [0], [1], [0, 0, 1, 1], [], []>} : vector<1x32xf32>, vector<32x96xf32>, vector<1x96xf32> -> vector<1x96xf32>
    %224 = arith.addf %223, %16 : vector<1x96xf32>
    %225 = vector.extract_strided_slice %222 {offsets = [0, 0], sizes = [1, 32], strides = [1, 1]} : vector<1x96xf32> to vector<1x32xf32>
    %226 = vector.extract_strided_slice %224 {offsets = [0, 0], sizes = [1, 32], strides = [1, 1]} : vector<1x96xf32> to vector<1x32xf32>
    %227 = arith.addf %225, %226 : vector<1x32xf32>
    %228 = arith.negf %227 : vector<1x32xf32>
    %229 = math.exp %228 : vector<1x32xf32>
    %cst_50 = arith.constant 1.000000e+00 : f32
    %230 = vector.broadcast %cst_50 : f32 to vector<1x32xf32>
    %231 = arith.addf %230, %229 : vector<1x32xf32>
    %232 = arith.divf %230, %231 : vector<1x32xf32>
    %233 = vector.extract_strided_slice %222 {offsets = [0, 32], sizes = [1, 32], strides = [1, 1]} : vector<1x96xf32> to vector<1x32xf32>
    %234 = vector.extract_strided_slice %224 {offsets = [0, 32], sizes = [1, 32], strides = [1, 1]} : vector<1x96xf32> to vector<1x32xf32>
    %235 = arith.addf %233, %234 : vector<1x32xf32>
    %236 = arith.negf %235 : vector<1x32xf32>
    %237 = math.exp %236 : vector<1x32xf32>
    %cst_51 = arith.constant 1.000000e+00 : f32
    %238 = vector.broadcast %cst_51 : f32 to vector<1x32xf32>
    %239 = arith.addf %238, %237 : vector<1x32xf32>
    %240 = arith.divf %238, %239 : vector<1x32xf32>
    %241 = vector.extract_strided_slice %222 {offsets = [0, 64], sizes = [1, 32], strides = [1, 1]} : vector<1x96xf32> to vector<1x32xf32>
    %242 = vector.extract_strided_slice %224 {offsets = [0, 64], sizes = [1, 32], strides = [1, 1]} : vector<1x96xf32> to vector<1x32xf32>
    %243 = arith.mulf %232, %242 : vector<1x32xf32>
    %244 = arith.addf %241, %243 : vector<1x32xf32>
    %245 = math.tanh %244 : vector<1x32xf32>
    %cst_52 = arith.constant 1.000000e+00 : f32
    %246 = vector.broadcast %cst_52 : f32 to vector<1x32xf32>
    %247 = arith.subf %246, %240 : vector<1x32xf32>
    %248 = arith.mulf %247, %245 : vector<1x32xf32>
    %249 = arith.mulf %240, %192 : vector<1x32xf32>
    %250 = arith.addf %248, %249 : vector<1x32xf32>
    %251 = vector.extract_strided_slice %7 {offsets = [4, 0], sizes = [1, 96], strides = [1, 1]} : vector<7x96xf32> to vector<1x96xf32>
    %cst_53 = arith.constant dense<0.000000e+00> : vector<1x96xf32>
    %252 = tpu.matmul %221, %13, %cst_53 {dimension_numbers = #tpu.dot_dimension_numbers<[1], [0], [0], [1], [0, 0, 1, 1], [], []>} : vector<1x32xf32>, vector<32x96xf32>, vector<1x96xf32> -> vector<1x96xf32>
    %253 = arith.addf %252, %15 : vector<1x96xf32>
    %254 = vector.extract_strided_slice %251 {offsets = [0, 0], sizes = [1, 32], strides = [1, 1]} : vector<1x96xf32> to vector<1x32xf32>
    %255 = vector.extract_strided_slice %253 {offsets = [0, 0], sizes = [1, 32], strides = [1, 1]} : vector<1x96xf32> to vector<1x32xf32>
    %256 = arith.addf %254, %255 : vector<1x32xf32>
    %257 = arith.negf %256 : vector<1x32xf32>
    %258 = math.exp %257 : vector<1x32xf32>
    %cst_54 = arith.constant 1.000000e+00 : f32
    %259 = vector.broadcast %cst_54 : f32 to vector<1x32xf32>
    %260 = arith.addf %259, %258 : vector<1x32xf32>
    %261 = arith.divf %259, %260 : vector<1x32xf32>
    %262 = vector.extract_strided_slice %251 {offsets = [0, 32], sizes = [1, 32], strides = [1, 1]} : vector<1x96xf32> to vector<1x32xf32>
    %263 = vector.extract_strided_slice %253 {offsets = [0, 32], sizes = [1, 32], strides = [1, 1]} : vector<1x96xf32> to vector<1x32xf32>
    %264 = arith.addf %262, %263 : vector<1x32xf32>
    %265 = arith.negf %264 : vector<1x32xf32>
    %266 = math.exp %265 : vector<1x32xf32>
    %cst_55 = arith.constant 1.000000e+00 : f32
    %267 = vector.broadcast %cst_55 : f32 to vector<1x32xf32>
    %268 = arith.addf %267, %266 : vector<1x32xf32>
    %269 = arith.divf %267, %268 : vector<1x32xf32>
    %270 = vector.extract_strided_slice %251 {offsets = [0, 64], sizes = [1, 32], strides = [1, 1]} : vector<1x96xf32> to vector<1x32xf32>
    %271 = vector.extract_strided_slice %253 {offsets = [0, 64], sizes = [1, 32], strides = [1, 1]} : vector<1x96xf32> to vector<1x32xf32>
    %272 = arith.mulf %261, %271 : vector<1x32xf32>
    %273 = arith.addf %270, %272 : vector<1x32xf32>
    %274 = math.tanh %273 : vector<1x32xf32>
    %cst_56 = arith.constant 1.000000e+00 : f32
    %275 = vector.broadcast %cst_56 : f32 to vector<1x32xf32>
    %276 = arith.subf %275, %269 : vector<1x32xf32>
    %277 = arith.mulf %276, %274 : vector<1x32xf32>
    %278 = arith.mulf %269, %221 : vector<1x32xf32>
    %279 = arith.addf %277, %278 : vector<1x32xf32>
    %280 = vector.extract_strided_slice %12 {offsets = [2, 0], sizes = [1, 96], strides = [1, 1]} : vector<7x96xf32> to vector<1x96xf32>
    %cst_57 = arith.constant dense<0.000000e+00> : vector<1x96xf32>
    %281 = tpu.matmul %250, %14, %cst_57 {dimension_numbers = #tpu.dot_dimension_numbers<[1], [0], [0], [1], [0, 0, 1, 1], [], []>} : vector<1x32xf32>, vector<32x96xf32>, vector<1x96xf32> -> vector<1x96xf32>
    %282 = arith.addf %281, %16 : vector<1x96xf32>
    %283 = vector.extract_strided_slice %280 {offsets = [0, 0], sizes = [1, 32], strides = [1, 1]} : vector<1x96xf32> to vector<1x32xf32>
    %284 = vector.extract_strided_slice %282 {offsets = [0, 0], sizes = [1, 32], strides = [1, 1]} : vector<1x96xf32> to vector<1x32xf32>
    %285 = arith.addf %283, %284 : vector<1x32xf32>
    %286 = arith.negf %285 : vector<1x32xf32>
    %287 = math.exp %286 : vector<1x32xf32>
    %cst_58 = arith.constant 1.000000e+00 : f32
    %288 = vector.broadcast %cst_58 : f32 to vector<1x32xf32>
    %289 = arith.addf %288, %287 : vector<1x32xf32>
    %290 = arith.divf %288, %289 : vector<1x32xf32>
    %291 = vector.extract_strided_slice %280 {offsets = [0, 32], sizes = [1, 32], strides = [1, 1]} : vector<1x96xf32> to vector<1x32xf32>
    %292 = vector.extract_strided_slice %282 {offsets = [0, 32], sizes = [1, 32], strides = [1, 1]} : vector<1x96xf32> to vector<1x32xf32>
    %293 = arith.addf %291, %292 : vector<1x32xf32>
    %294 = arith.negf %293 : vector<1x32xf32>
    %295 = math.exp %294 : vector<1x32xf32>
    %cst_59 = arith.constant 1.000000e+00 : f32
    %296 = vector.broadcast %cst_59 : f32 to vector<1x32xf32>
    %297 = arith.addf %296, %295 : vector<1x32xf32>
    %298 = arith.divf %296, %297 : vector<1x32xf32>
    %299 = vector.extract_strided_slice %280 {offsets = [0, 64], sizes = [1, 32], strides = [1, 1]} : vector<1x96xf32> to vector<1x32xf32>
    %300 = vector.extract_strided_slice %282 {offsets = [0, 64], sizes = [1, 32], strides = [1, 1]} : vector<1x96xf32> to vector<1x32xf32>
    %301 = arith.mulf %290, %300 : vector<1x32xf32>
    %302 = arith.addf %299, %301 : vector<1x32xf32>
    %303 = math.tanh %302 : vector<1x32xf32>
    %cst_60 = arith.constant 1.000000e+00 : f32
    %304 = vector.broadcast %cst_60 : f32 to vector<1x32xf32>
    %305 = arith.subf %304, %298 : vector<1x32xf32>
    %306 = arith.mulf %305, %303 : vector<1x32xf32>
    %307 = arith.mulf %298, %250 : vector<1x32xf32>
    %308 = arith.addf %306, %307 : vector<1x32xf32>
    %309 = vector.extract_strided_slice %7 {offsets = [5, 0], sizes = [1, 96], strides = [1, 1]} : vector<7x96xf32> to vector<1x96xf32>
    %cst_61 = arith.constant dense<0.000000e+00> : vector<1x96xf32>
    %310 = tpu.matmul %279, %13, %cst_61 {dimension_numbers = #tpu.dot_dimension_numbers<[1], [0], [0], [1], [0, 0, 1, 1], [], []>} : vector<1x32xf32>, vector<32x96xf32>, vector<1x96xf32> -> vector<1x96xf32>
    %311 = arith.addf %310, %15 : vector<1x96xf32>
    %312 = vector.extract_strided_slice %309 {offsets = [0, 0], sizes = [1, 32], strides = [1, 1]} : vector<1x96xf32> to vector<1x32xf32>
    %313 = vector.extract_strided_slice %311 {offsets = [0, 0], sizes = [1, 32], strides = [1, 1]} : vector<1x96xf32> to vector<1x32xf32>
    %314 = arith.addf %312, %313 : vector<1x32xf32>
    %315 = arith.negf %314 : vector<1x32xf32>
    %316 = math.exp %315 : vector<1x32xf32>
    %cst_62 = arith.constant 1.000000e+00 : f32
    %317 = vector.broadcast %cst_62 : f32 to vector<1x32xf32>
    %318 = arith.addf %317, %316 : vector<1x32xf32>
    %319 = arith.divf %317, %318 : vector<1x32xf32>
    %320 = vector.extract_strided_slice %309 {offsets = [0, 32], sizes = [1, 32], strides = [1, 1]} : vector<1x96xf32> to vector<1x32xf32>
    %321 = vector.extract_strided_slice %311 {offsets = [0, 32], sizes = [1, 32], strides = [1, 1]} : vector<1x96xf32> to vector<1x32xf32>
    %322 = arith.addf %320, %321 : vector<1x32xf32>
    %323 = arith.negf %322 : vector<1x32xf32>
    %324 = math.exp %323 : vector<1x32xf32>
    %cst_63 = arith.constant 1.000000e+00 : f32
    %325 = vector.broadcast %cst_63 : f32 to vector<1x32xf32>
    %326 = arith.addf %325, %324 : vector<1x32xf32>
    %327 = arith.divf %325, %326 : vector<1x32xf32>
    %328 = vector.extract_strided_slice %309 {offsets = [0, 64], sizes = [1, 32], strides = [1, 1]} : vector<1x96xf32> to vector<1x32xf32>
    %329 = vector.extract_strided_slice %311 {offsets = [0, 64], sizes = [1, 32], strides = [1, 1]} : vector<1x96xf32> to vector<1x32xf32>
    %330 = arith.mulf %319, %329 : vector<1x32xf32>
    %331 = arith.addf %328, %330 : vector<1x32xf32>
    %332 = math.tanh %331 : vector<1x32xf32>
    %cst_64 = arith.constant 1.000000e+00 : f32
    %333 = vector.broadcast %cst_64 : f32 to vector<1x32xf32>
    %334 = arith.subf %333, %327 : vector<1x32xf32>
    %335 = arith.mulf %334, %332 : vector<1x32xf32>
    %336 = arith.mulf %327, %279 : vector<1x32xf32>
    %337 = arith.addf %335, %336 : vector<1x32xf32>
    %338 = vector.extract_strided_slice %12 {offsets = [1, 0], sizes = [1, 96], strides = [1, 1]} : vector<7x96xf32> to vector<1x96xf32>
    %cst_65 = arith.constant dense<0.000000e+00> : vector<1x96xf32>
    %339 = tpu.matmul %308, %14, %cst_65 {dimension_numbers = #tpu.dot_dimension_numbers<[1], [0], [0], [1], [0, 0, 1, 1], [], []>} : vector<1x32xf32>, vector<32x96xf32>, vector<1x96xf32> -> vector<1x96xf32>
    %340 = arith.addf %339, %16 : vector<1x96xf32>
    %341 = vector.extract_strided_slice %338 {offsets = [0, 0], sizes = [1, 32], strides = [1, 1]} : vector<1x96xf32> to vector<1x32xf32>
    %342 = vector.extract_strided_slice %340 {offsets = [0, 0], sizes = [1, 32], strides = [1, 1]} : vector<1x96xf32> to vector<1x32xf32>
    %343 = arith.addf %341, %342 : vector<1x32xf32>
    %344 = arith.negf %343 : vector<1x32xf32>
    %345 = math.exp %344 : vector<1x32xf32>
    %cst_66 = arith.constant 1.000000e+00 : f32
    %346 = vector.broadcast %cst_66 : f32 to vector<1x32xf32>
    %347 = arith.addf %346, %345 : vector<1x32xf32>
    %348 = arith.divf %346, %347 : vector<1x32xf32>
    %349 = vector.extract_strided_slice %338 {offsets = [0, 32], sizes = [1, 32], strides = [1, 1]} : vector<1x96xf32> to vector<1x32xf32>
    %350 = vector.extract_strided_slice %340 {offsets = [0, 32], sizes = [1, 32], strides = [1, 1]} : vector<1x96xf32> to vector<1x32xf32>
    %351 = arith.addf %349, %350 : vector<1x32xf32>
    %352 = arith.negf %351 : vector<1x32xf32>
    %353 = math.exp %352 : vector<1x32xf32>
    %cst_67 = arith.constant 1.000000e+00 : f32
    %354 = vector.broadcast %cst_67 : f32 to vector<1x32xf32>
    %355 = arith.addf %354, %353 : vector<1x32xf32>
    %356 = arith.divf %354, %355 : vector<1x32xf32>
    %357 = vector.extract_strided_slice %338 {offsets = [0, 64], sizes = [1, 32], strides = [1, 1]} : vector<1x96xf32> to vector<1x32xf32>
    %358 = vector.extract_strided_slice %340 {offsets = [0, 64], sizes = [1, 32], strides = [1, 1]} : vector<1x96xf32> to vector<1x32xf32>
    %359 = arith.mulf %348, %358 : vector<1x32xf32>
    %360 = arith.addf %357, %359 : vector<1x32xf32>
    %361 = math.tanh %360 : vector<1x32xf32>
    %cst_68 = arith.constant 1.000000e+00 : f32
    %362 = vector.broadcast %cst_68 : f32 to vector<1x32xf32>
    %363 = arith.subf %362, %356 : vector<1x32xf32>
    %364 = arith.mulf %363, %361 : vector<1x32xf32>
    %365 = arith.mulf %356, %308 : vector<1x32xf32>
    %366 = arith.addf %364, %365 : vector<1x32xf32>
    %367 = vector.extract_strided_slice %7 {offsets = [6, 0], sizes = [1, 96], strides = [1, 1]} : vector<7x96xf32> to vector<1x96xf32>
    %cst_69 = arith.constant dense<0.000000e+00> : vector<1x96xf32>
    %368 = tpu.matmul %337, %13, %cst_69 {dimension_numbers = #tpu.dot_dimension_numbers<[1], [0], [0], [1], [0, 0, 1, 1], [], []>} : vector<1x32xf32>, vector<32x96xf32>, vector<1x96xf32> -> vector<1x96xf32>
    %369 = arith.addf %368, %15 : vector<1x96xf32>
    %370 = vector.extract_strided_slice %367 {offsets = [0, 0], sizes = [1, 32], strides = [1, 1]} : vector<1x96xf32> to vector<1x32xf32>
    %371 = vector.extract_strided_slice %369 {offsets = [0, 0], sizes = [1, 32], strides = [1, 1]} : vector<1x96xf32> to vector<1x32xf32>
    %372 = arith.addf %370, %371 : vector<1x32xf32>
    %373 = arith.negf %372 : vector<1x32xf32>
    %374 = math.exp %373 : vector<1x32xf32>
    %cst_70 = arith.constant 1.000000e+00 : f32
    %375 = vector.broadcast %cst_70 : f32 to vector<1x32xf32>
    %376 = arith.addf %375, %374 : vector<1x32xf32>
    %377 = arith.divf %375, %376 : vector<1x32xf32>
    %378 = vector.extract_strided_slice %367 {offsets = [0, 32], sizes = [1, 32], strides = [1, 1]} : vector<1x96xf32> to vector<1x32xf32>
    %379 = vector.extract_strided_slice %369 {offsets = [0, 32], sizes = [1, 32], strides = [1, 1]} : vector<1x96xf32> to vector<1x32xf32>
    %380 = arith.addf %378, %379 : vector<1x32xf32>
    %381 = arith.negf %380 : vector<1x32xf32>
    %382 = math.exp %381 : vector<1x32xf32>
    %cst_71 = arith.constant 1.000000e+00 : f32
    %383 = vector.broadcast %cst_71 : f32 to vector<1x32xf32>
    %384 = arith.addf %383, %382 : vector<1x32xf32>
    %385 = arith.divf %383, %384 : vector<1x32xf32>
    %386 = vector.extract_strided_slice %367 {offsets = [0, 64], sizes = [1, 32], strides = [1, 1]} : vector<1x96xf32> to vector<1x32xf32>
    %387 = vector.extract_strided_slice %369 {offsets = [0, 64], sizes = [1, 32], strides = [1, 1]} : vector<1x96xf32> to vector<1x32xf32>
    %388 = arith.mulf %377, %387 : vector<1x32xf32>
    %389 = arith.addf %386, %388 : vector<1x32xf32>
    %390 = math.tanh %389 : vector<1x32xf32>
    %cst_72 = arith.constant 1.000000e+00 : f32
    %391 = vector.broadcast %cst_72 : f32 to vector<1x32xf32>
    %392 = arith.subf %391, %385 : vector<1x32xf32>
    %393 = arith.mulf %392, %390 : vector<1x32xf32>
    %394 = arith.mulf %385, %337 : vector<1x32xf32>
    %395 = arith.addf %393, %394 : vector<1x32xf32>
    %396 = vector.extract_strided_slice %12 {offsets = [0, 0], sizes = [1, 96], strides = [1, 1]} : vector<7x96xf32> to vector<1x96xf32>
    %cst_73 = arith.constant dense<0.000000e+00> : vector<1x96xf32>
    %397 = tpu.matmul %366, %14, %cst_73 {dimension_numbers = #tpu.dot_dimension_numbers<[1], [0], [0], [1], [0, 0, 1, 1], [], []>} : vector<1x32xf32>, vector<32x96xf32>, vector<1x96xf32> -> vector<1x96xf32>
    %398 = arith.addf %397, %16 : vector<1x96xf32>
    %399 = vector.extract_strided_slice %396 {offsets = [0, 0], sizes = [1, 32], strides = [1, 1]} : vector<1x96xf32> to vector<1x32xf32>
    %400 = vector.extract_strided_slice %398 {offsets = [0, 0], sizes = [1, 32], strides = [1, 1]} : vector<1x96xf32> to vector<1x32xf32>
    %401 = arith.addf %399, %400 : vector<1x32xf32>
    %402 = arith.negf %401 : vector<1x32xf32>
    %403 = math.exp %402 : vector<1x32xf32>
    %cst_74 = arith.constant 1.000000e+00 : f32
    %404 = vector.broadcast %cst_74 : f32 to vector<1x32xf32>
    %405 = arith.addf %404, %403 : vector<1x32xf32>
    %406 = arith.divf %404, %405 : vector<1x32xf32>
    %407 = vector.extract_strided_slice %396 {offsets = [0, 32], sizes = [1, 32], strides = [1, 1]} : vector<1x96xf32> to vector<1x32xf32>
    %408 = vector.extract_strided_slice %398 {offsets = [0, 32], sizes = [1, 32], strides = [1, 1]} : vector<1x96xf32> to vector<1x32xf32>
    %409 = arith.addf %407, %408 : vector<1x32xf32>
    %410 = arith.negf %409 : vector<1x32xf32>
    %411 = math.exp %410 : vector<1x32xf32>
    %cst_75 = arith.constant 1.000000e+00 : f32
    %412 = vector.broadcast %cst_75 : f32 to vector<1x32xf32>
    %413 = arith.addf %412, %411 : vector<1x32xf32>
    %414 = arith.divf %412, %413 : vector<1x32xf32>
    %415 = vector.extract_strided_slice %396 {offsets = [0, 64], sizes = [1, 32], strides = [1, 1]} : vector<1x96xf32> to vector<1x32xf32>
    %416 = vector.extract_strided_slice %398 {offsets = [0, 64], sizes = [1, 32], strides = [1, 1]} : vector<1x96xf32> to vector<1x32xf32>
    %417 = arith.mulf %406, %416 : vector<1x32xf32>
    %418 = arith.addf %415, %417 : vector<1x32xf32>
    %419 = math.tanh %418 : vector<1x32xf32>
    %cst_76 = arith.constant 1.000000e+00 : f32
    %420 = vector.broadcast %cst_76 : f32 to vector<1x32xf32>
    %421 = arith.subf %420, %414 : vector<1x32xf32>
    %422 = arith.mulf %421, %419 : vector<1x32xf32>
    %423 = arith.mulf %414, %366 : vector<1x32xf32>
    %424 = arith.addf %422, %423 : vector<1x32xf32>
    %425 = tpu.concatenate %47, %424 in 1 : vector<1x32xf32>, vector<1x32xf32> -> vector<1x64xf32>
    %426 = tpu.concatenate %105, %366 in 1 : vector<1x32xf32>, vector<1x32xf32> -> vector<1x64xf32>
    %427 = tpu.concatenate %163, %308 in 1 : vector<1x32xf32>, vector<1x32xf32> -> vector<1x64xf32>
    %428 = tpu.concatenate %221, %250 in 1 : vector<1x32xf32>, vector<1x32xf32> -> vector<1x64xf32>
    %429 = tpu.concatenate %279, %192 in 1 : vector<1x32xf32>, vector<1x32xf32> -> vector<1x64xf32>
    %430 = tpu.concatenate %337, %134 in 1 : vector<1x32xf32>, vector<1x32xf32> -> vector<1x64xf32>
    %431 = tpu.concatenate %395, %76 in 1 : vector<1x32xf32>, vector<1x32xf32> -> vector<1x64xf32>
    %432 = tpu.concatenate %425, %426, %427, %428, %429, %430, %431 in 0 : vector<1x64xf32>, vector<1x64xf32>, vector<1x64xf32>, vector<1x64xf32>, vector<1x64xf32>, vector<1x64xf32>, vector<1x64xf32> -> vector<7x64xf32>
    %c0_77 = arith.constant 0 : index
    %c0_78 = arith.constant 0 : index
    %c0_79 = arith.constant 0 : index
    %433 = vector.load %arg10[%c0_77, %c0_78, %c0_79] : memref<1x7x64xf32, #tpu.memory_space<vmem>>, vector<1x7x64xf32>
    %434 = vector.shape_cast %433 : vector<1x7x64xf32> to vector<7x64xf32>
    %435 = vector.shape_cast %432 : vector<7x64xf32> to vector<1x7x64xf32>
    tpu.vector_store %arg10[%c0_77, %c0_78, %c0_79], %435 {strides = array<i32>} : memref<1x7x64xf32, #tpu.memory_space<vmem>>, vector<1x7x64xf32>,
    return
  }
  func.func @transform_0(%arg0: i32) -> (i32, i32, i32) {
    %c0_i32 = arith.constant 0 : i32
    %c0_i32_0 = arith.constant 0 : i32
    %c0_i32_1 = arith.constant 0 : i32
    return %arg0, %c0_i32, %c0_i32_0 : i32, i32, i32
  }
  func.func @transform_1(%arg0: i32) -> (i32, i32) {
    %c0_i32 = arith.constant 0 : i32
    %c0_i32_0 = arith.constant 0 : i32
    %c0_i32_1 = arith.constant 0 : i32
    return %c0_i32, %c0_i32_0 : i32, i32
  }
  func.func @transform_2(%arg0: i32) -> (i32, i32) {
    %c0_i32 = arith.constant 0 : i32
    %c0_i32_0 = arith.constant 0 : i32
    %c0_i32_1 = arith.constant 0 : i32
    return %c0_i32, %c0_i32_0 : i32, i32
  }
  func.func @transform_3(%arg0: i32) -> (i32, i32) {
    %c0_i32 = arith.constant 0 : i32
    %c0_i32_0 = arith.constant 0 : i32
    %c0_i32_1 = arith.constant 0 : i32
    return %c0_i32, %c0_i32_0 : i32, i32
  }
  func.func @transform_4(%arg0: i32) -> (i32, i32) {
    %c0_i32 = arith.constant 0 : i32
    %c0_i32_0 = arith.constant 0 : i32
    %c0_i32_1 = arith.constant 0 : i32
    return %c0_i32, %c0_i32_0 : i32, i32
  }
  func.func @transform_5(%arg0: i32) -> (i32, i32) {
    %c0_i32 = arith.constant 0 : i32
    %c0_i32_0 = arith.constant 0 : i32
    %c0_i32_1 = arith.constant 0 : i32
    return %c0_i32, %c0_i32_0 : i32, i32
  }
  func.func @transform_6(%arg0: i32) -> (i32, i32) {
    %c0_i32 = arith.constant 0 : i32
    %c0_i32_0 = arith.constant 0 : i32
    %c0_i32_1 = arith.constant 0 : i32
    return %c0_i32, %c0_i32_0 : i32, i32
  }
  func.func @transform_7(%arg0: i32) -> (i32, i32) {
    %c0_i32 = arith.constant 0 : i32
    %c0_i32_0 = arith.constant 0 : i32
    %c0_i32_1 = arith.constant 0 : i32
    return %c0_i32, %c0_i32_0 : i32, i32
  }
  func.func @transform_8(%arg0: i32) -> (i32, i32) {
    %c0_i32 = arith.constant 0 : i32
    %c0_i32_0 = arith.constant 0 : i32
    %c0_i32_1 = arith.constant 0 : i32
    return %c0_i32, %c0_i32_0 : i32, i32
  }
  func.func @transform_9(%arg0: i32) -> (i32, i32, i32) {
    %c0_i32 = arith.constant 0 : i32
    %c0_i32_0 = arith.constant 0 : i32
    %c0_i32_1 = arith.constant 0 : i32
    return %arg0, %c0_i32, %c0_i32_0 : i32, i32, i32
  }
}

module attributes {stable_mosaic.version = 11 : i64} {
  func.func @tail_kernel(%arg0: i32, %arg1: memref<1x8x64xf32, #tpu.memory_space<vmem>>, %arg2: memref<1x7x64xf32, #tpu.memory_space<vmem>>, %arg3: memref<1x8x64xf32, #tpu.memory_space<vmem>>, %arg4: memref<1x7x64xf32, #tpu.memory_space<vmem>>, %arg5: memref<1x64xf32, #tpu.memory_space<vmem>>, %arg6: memref<1x64xf32, #tpu.memory_space<vmem>>, %arg7: memref<1x64xf32, #tpu.memory_space<vmem>>, %arg8: memref<1x64xf32, #tpu.memory_space<vmem>>, %arg9: memref<1x64xf32, #tpu.memory_space<vmem>>, %arg10: memref<8x1xf32, #tpu.memory_space<vmem>>, %arg11: memref<1x64xf32, #tpu.memory_space<vmem>>, %arg12: memref<7x1xf32, #tpu.memory_space<vmem>>, %arg13: memref<1x64xf32, #tpu.memory_space<vmem>>, %arg14: memref<8x1xf32, #tpu.memory_space<vmem>>, %arg15: memref<1x64xf32, #tpu.memory_space<vmem>>, %arg16: memref<7x1xf32, #tpu.memory_space<vmem>>, %arg17: memref<2304x32xbf16, #tpu.memory_space<vmem>>, %arg18: memref<1x32xf32, #tpu.memory_space<vmem>>, %arg19: memref<32x1xf32, #tpu.memory_space<vmem>>, %arg20: memref<1x1xf32, #tpu.memory_space<vmem>>, %arg21: memref<1x1x1xf32, #tpu.memory_space<vmem>>) attributes {dimension_semantics = [#tpu.dimension_semantics<parallel>], iteration_bounds = array<i64: 2>, scalar_prefetch = 0 : i64, scratch_operands = 0 : i64, tpu.core_type = #tpu.core_type<tc>, window_params = [{transform_indices = @transform_0, window_bounds = array<i64: 1, 8, 64>}, {transform_indices = @transform_1, window_bounds = array<i64: 1, 7, 64>}, {transform_indices = @transform_2, window_bounds = array<i64: 1, 8, 64>}, {transform_indices = @transform_3, window_bounds = array<i64: 1, 7, 64>}, {pipeline_mode = #tpu.pipeline_mode<synchronous>, transform_indices = @transform_4, window_bounds = array<i64: 1, 64>}, {pipeline_mode = #tpu.pipeline_mode<synchronous>, transform_indices = @transform_5, window_bounds = array<i64: 1, 64>}, {pipeline_mode = #tpu.pipeline_mode<synchronous>, transform_indices = @transform_6, window_bounds = array<i64: 1, 64>}, {pipeline_mode = #tpu.pipeline_mode<synchronous>, transform_indices = @transform_7, window_bounds = array<i64: 1, 64>}, {pipeline_mode = #tpu.pipeline_mode<synchronous>, transform_indices = @transform_8, window_bounds = array<i64: 1, 64>}, {pipeline_mode = #tpu.pipeline_mode<synchronous>, transform_indices = @transform_9, window_bounds = array<i64: 8, 1>}, {pipeline_mode = #tpu.pipeline_mode<synchronous>, transform_indices = @transform_10, window_bounds = array<i64: 1, 64>}, {pipeline_mode = #tpu.pipeline_mode<synchronous>, transform_indices = @transform_11, window_bounds = array<i64: 7, 1>}, {pipeline_mode = #tpu.pipeline_mode<synchronous>, transform_indices = @transform_12, window_bounds = array<i64: 1, 64>}, {pipeline_mode = #tpu.pipeline_mode<synchronous>, transform_indices = @transform_13, window_bounds = array<i64: 8, 1>}, {pipeline_mode = #tpu.pipeline_mode<synchronous>, transform_indices = @transform_14, window_bounds = array<i64: 1, 64>}, {pipeline_mode = #tpu.pipeline_mode<synchronous>, transform_indices = @transform_15, window_bounds = array<i64: 7, 1>}, {pipeline_mode = #tpu.pipeline_mode<synchronous>, transform_indices = @transform_16, window_bounds = array<i64: 2304, 32>}, {pipeline_mode = #tpu.pipeline_mode<synchronous>, transform_indices = @transform_17, window_bounds = array<i64: 1, 32>}, {pipeline_mode = #tpu.pipeline_mode<synchronous>, transform_indices = @transform_18, window_bounds = array<i64: 32, 1>}, {pipeline_mode = #tpu.pipeline_mode<synchronous>, transform_indices = @transform_19, window_bounds = array<i64: 1, 1>}, {transform_indices = @transform_20, window_bounds = array<i64: 1, 1, 1>}]} {
    %c0 = arith.constant 0 : index
    %c0_0 = arith.constant 0 : index
    %c0_1 = arith.constant 0 : index
    %0 = vector.load %arg1[%c0, %c0_0, %c0_1] : memref<1x8x64xf32, #tpu.memory_space<vmem>>, vector<1x8x64xf32>
    %1 = vector.shape_cast %0 : vector<1x8x64xf32> to vector<8x64xf32>
    %c0_2 = arith.constant 0 : index
    %c0_3 = arith.constant 0 : index
    %c0_4 = arith.constant 0 : index
    %2 = vector.load %arg2[%c0_2, %c0_3, %c0_4] : memref<1x7x64xf32, #tpu.memory_space<vmem>>, vector<1x7x64xf32>
    %3 = vector.shape_cast %2 : vector<1x7x64xf32> to vector<7x64xf32>
    %c0_5 = arith.constant 0 : index
    %c0_6 = arith.constant 0 : index
    %c0_7 = arith.constant 0 : index
    %4 = vector.load %arg3[%c0_5, %c0_6, %c0_7] : memref<1x8x64xf32, #tpu.memory_space<vmem>>, vector<1x8x64xf32>
    %5 = vector.shape_cast %4 : vector<1x8x64xf32> to vector<8x64xf32>
    %c0_8 = arith.constant 0 : index
    %c0_9 = arith.constant 0 : index
    %6 = vector.load %arg5[%c0_8, %c0_9] : memref<1x64xf32, #tpu.memory_space<vmem>>, vector<1x64xf32>
    %c0_10 = arith.constant 0 : index
    %c0_11 = arith.constant 0 : index
    %7 = vector.load %arg6[%c0_10, %c0_11] : memref<1x64xf32, #tpu.memory_space<vmem>>, vector<1x64xf32>
    %cst = arith.constant dense<0.000000e+00> : vector<8xf32>
    %8 = vector.multi_reduction <add>, %5, %cst [1] : vector<8x64xf32> to vector<8xf32>
    %9 = vector.shape_cast %8 : vector<8xf32> to vector<8x1xf32>
    %cst_12 = arith.constant 6.400000e+01 : f32
    %10 = vector.broadcast %cst_12 : f32 to vector<8x1xf32>
    %11 = arith.divf %9, %10 : vector<8x1xf32>
    %12 = vector.broadcast %11 : vector<8x1xf32> to vector<8x64xf32>
    %13 = arith.subf %5, %12 : vector<8x64xf32>
    %14 = arith.mulf %13, %13 : vector<8x64xf32>
    %cst_13 = arith.constant dense<0.000000e+00> : vector<8xf32>
    %15 = vector.multi_reduction <add>, %14, %cst_13 [1] : vector<8x64xf32> to vector<8xf32>
    %16 = vector.shape_cast %15 : vector<8xf32> to vector<8x1xf32>
    %cst_14 = arith.constant 6.400000e+01 : f32
    %17 = vector.broadcast %cst_14 : f32 to vector<8x1xf32>
    %18 = arith.divf %16, %17 : vector<8x1xf32>
    %19 = vector.broadcast %11 : vector<8x1xf32> to vector<8x64xf32>
    %20 = arith.subf %5, %19 : vector<8x64xf32>
    %cst_15 = arith.constant 9.99999974E-6 : f32
    %21 = vector.broadcast %cst_15 : f32 to vector<8x1xf32>
    %22 = arith.addf %18, %21 : vector<8x1xf32>
    %23 = math.rsqrt %22 : vector<8x1xf32>
    %24 = vector.broadcast %23 : vector<8x1xf32> to vector<8x64xf32>
    %25 = arith.mulf %20, %24 : vector<8x64xf32>
    %26 = vector.broadcast %6 : vector<1x64xf32> to vector<8x64xf32>
    %27 = arith.mulf %25, %26 : vector<8x64xf32>
    %28 = vector.broadcast %7 : vector<1x64xf32> to vector<8x64xf32>
    %29 = arith.addf %27, %28 : vector<8x64xf32>
    %c0_16 = arith.constant 0 : index
    %c0_17 = arith.constant 0 : index
    %c0_18 = arith.constant 0 : index
    %30 = vector.load %arg4[%c0_16, %c0_17, %c0_18] : memref<1x7x64xf32, #tpu.memory_space<vmem>>, vector<1x7x64xf32>
    %31 = vector.shape_cast %30 : vector<1x7x64xf32> to vector<7x64xf32>
    %c0_19 = arith.constant 0 : index
    %c0_20 = arith.constant 0 : index
    %32 = vector.load %arg7[%c0_19, %c0_20] : memref<1x64xf32, #tpu.memory_space<vmem>>, vector<1x64xf32>
    %c0_21 = arith.constant 0 : index
    %c0_22 = arith.constant 0 : index
    %33 = vector.load %arg8[%c0_21, %c0_22] : memref<1x64xf32, #tpu.memory_space<vmem>>, vector<1x64xf32>
    %cst_23 = arith.constant dense<0.000000e+00> : vector<7xf32>
    %34 = vector.multi_reduction <add>, %31, %cst_23 [1] : vector<7x64xf32> to vector<7xf32>
    %35 = vector.shape_cast %34 : vector<7xf32> to vector<7x1xf32>
    %cst_24 = arith.constant 6.400000e+01 : f32
    %36 = vector.broadcast %cst_24 : f32 to vector<7x1xf32>
    %37 = arith.divf %35, %36 : vector<7x1xf32>
    %38 = vector.broadcast %37 : vector<7x1xf32> to vector<7x64xf32>
    %39 = arith.subf %31, %38 : vector<7x64xf32>
    %40 = arith.mulf %39, %39 : vector<7x64xf32>
    %cst_25 = arith.constant dense<0.000000e+00> : vector<7xf32>
    %41 = vector.multi_reduction <add>, %40, %cst_25 [1] : vector<7x64xf32> to vector<7xf32>
    %42 = vector.shape_cast %41 : vector<7xf32> to vector<7x1xf32>
    %cst_26 = arith.constant 6.400000e+01 : f32
    %43 = vector.broadcast %cst_26 : f32 to vector<7x1xf32>
    %44 = arith.divf %42, %43 : vector<7x1xf32>
    %45 = vector.broadcast %37 : vector<7x1xf32> to vector<7x64xf32>
    %46 = arith.subf %31, %45 : vector<7x64xf32>
    %cst_27 = arith.constant 9.99999974E-6 : f32
    %47 = vector.broadcast %cst_27 : f32 to vector<7x1xf32>
    %48 = arith.addf %44, %47 : vector<7x1xf32>
    %49 = math.rsqrt %48 : vector<7x1xf32>
    %50 = vector.broadcast %49 : vector<7x1xf32> to vector<7x64xf32>
    %51 = arith.mulf %46, %50 : vector<7x64xf32>
    %52 = vector.broadcast %32 : vector<1x64xf32> to vector<7x64xf32>
    %53 = arith.mulf %51, %52 : vector<7x64xf32>
    %54 = vector.broadcast %33 : vector<1x64xf32> to vector<7x64xf32>
    %55 = arith.addf %53, %54 : vector<7x64xf32>
    %c0_28 = arith.constant 0 : index
    %c0_29 = arith.constant 0 : index
    %56 = vector.load %arg9[%c0_28, %c0_29] : memref<1x64xf32, #tpu.memory_space<vmem>>, vector<1x64xf32>
    %c0_30 = arith.constant 0 : index
    %c0_31 = arith.constant 0 : index
    %57 = vector.load %arg10[%c0_30, %c0_31] : memref<8x1xf32, #tpu.memory_space<vmem>>, vector<8x1xf32>
    %58 = vector.broadcast %56 : vector<1x64xf32> to vector<8x64xf32>
    %59 = arith.mulf %1, %58 : vector<8x64xf32>
    %cst_32 = arith.constant dense<0.000000e+00> : vector<8xf32>
    %60 = vector.multi_reduction <add>, %59, %cst_32 [1] : vector<8x64xf32> to vector<8xf32>
    %61 = vector.shape_cast %60 : vector<8xf32> to vector<8x1xf32>
    %62 = arith.addf %61, %57 : vector<8x1xf32>
    %63 = math.tanh %62 : vector<8x1xf32>
    %64 = math.exp %63 : vector<8x1xf32>
    %cst_33 = arith.constant dense<0.000000e+00> : vector<1xf32>
    %65 = vector.multi_reduction <add>, %64, %cst_33 [0] : vector<8x1xf32> to vector<1xf32>
    %66 = vector.shape_cast %65 : vector<1xf32> to vector<1x1xf32>
    %cst_34 = arith.constant 1.000000e-10 : f32
    %67 = vector.broadcast %cst_34 : f32 to vector<1x1xf32>
    %68 = arith.addf %66, %67 : vector<1x1xf32>
    %69 = tpu.reciprocal %68 {approx = true} : vector<1x1xf32> -> vector<1x1xf32>
    %70 = vector.broadcast %69 : vector<1x1xf32> to vector<8x1xf32>
    %71 = arith.mulf %64, %70 : vector<8x1xf32>
    %72 = vector.broadcast %71 : vector<8x1xf32> to vector<8x64xf32>
    %73 = arith.mulf %1, %72 : vector<8x64xf32>
    %cst_35 = arith.constant dense<0.000000e+00> : vector<64xf32>
    %74 = vector.multi_reduction <add>, %73, %cst_35 [0] : vector<8x64xf32> to vector<64xf32>
    %75 = vector.shape_cast %74 : vector<64xf32> to vector<1x64xf32>
    %c0_36 = arith.constant 0 : index
    %c0_37 = arith.constant 0 : index
    %76 = vector.load %arg11[%c0_36, %c0_37] : memref<1x64xf32, #tpu.memory_space<vmem>>, vector<1x64xf32>
    %c0_38 = arith.constant 0 : index
    %c0_39 = arith.constant 0 : index
    %77 = vector.load %arg12[%c0_38, %c0_39] : memref<7x1xf32, #tpu.memory_space<vmem>>, vector<7x1xf32>
    %78 = vector.broadcast %76 : vector<1x64xf32> to vector<7x64xf32>
    %79 = arith.mulf %3, %78 : vector<7x64xf32>
    %cst_40 = arith.constant dense<0.000000e+00> : vector<7xf32>
    %80 = vector.multi_reduction <add>, %79, %cst_40 [1] : vector<7x64xf32> to vector<7xf32>
    %81 = vector.shape_cast %80 : vector<7xf32> to vector<7x1xf32>
    %82 = arith.addf %81, %77 : vector<7x1xf32>
    %83 = math.tanh %82 : vector<7x1xf32>
    %84 = math.exp %83 : vector<7x1xf32>
    %cst_41 = arith.constant dense<0.000000e+00> : vector<1xf32>
    %85 = vector.multi_reduction <add>, %84, %cst_41 [0] : vector<7x1xf32> to vector<1xf32>
    %86 = vector.shape_cast %85 : vector<1xf32> to vector<1x1xf32>
    %cst_42 = arith.constant 1.000000e-10 : f32
    %87 = vector.broadcast %cst_42 : f32 to vector<1x1xf32>
    %88 = arith.addf %86, %87 : vector<1x1xf32>
    %89 = tpu.reciprocal %88 {approx = true} : vector<1x1xf32> -> vector<1x1xf32>
    %90 = vector.broadcast %89 : vector<1x1xf32> to vector<7x1xf32>
    %91 = arith.mulf %84, %90 : vector<7x1xf32>
    %92 = vector.broadcast %91 : vector<7x1xf32> to vector<7x64xf32>
    %93 = arith.mulf %3, %92 : vector<7x64xf32>
    %cst_43 = arith.constant dense<0.000000e+00> : vector<64xf32>
    %94 = vector.multi_reduction <add>, %93, %cst_43 [0] : vector<7x64xf32> to vector<64xf32>
    %95 = vector.shape_cast %94 : vector<64xf32> to vector<1x64xf32>
    %c0_44 = arith.constant 0 : index
    %c0_45 = arith.constant 0 : index
    %96 = vector.load %arg13[%c0_44, %c0_45] : memref<1x64xf32, #tpu.memory_space<vmem>>, vector<1x64xf32>
    %c0_46 = arith.constant 0 : index
    %c0_47 = arith.constant 0 : index
    %97 = vector.load %arg14[%c0_46, %c0_47] : memref<8x1xf32, #tpu.memory_space<vmem>>, vector<8x1xf32>
    %98 = vector.broadcast %96 : vector<1x64xf32> to vector<8x64xf32>
    %99 = arith.mulf %29, %98 : vector<8x64xf32>
    %cst_48 = arith.constant dense<0.000000e+00> : vector<8xf32>
    %100 = vector.multi_reduction <add>, %99, %cst_48 [1] : vector<8x64xf32> to vector<8xf32>
    %101 = vector.shape_cast %100 : vector<8xf32> to vector<8x1xf32>
    %102 = arith.addf %101, %97 : vector<8x1xf32>
    %103 = math.tanh %102 : vector<8x1xf32>
    %104 = math.exp %103 : vector<8x1xf32>
    %cst_49 = arith.constant dense<0.000000e+00> : vector<1xf32>
    %105 = vector.multi_reduction <add>, %104, %cst_49 [0] : vector<8x1xf32> to vector<1xf32>
    %106 = vector.shape_cast %105 : vector<1xf32> to vector<1x1xf32>
    %cst_50 = arith.constant 1.000000e-10 : f32
    %107 = vector.broadcast %cst_50 : f32 to vector<1x1xf32>
    %108 = arith.addf %106, %107 : vector<1x1xf32>
    %109 = tpu.reciprocal %108 {approx = true} : vector<1x1xf32> -> vector<1x1xf32>
    %110 = vector.broadcast %109 : vector<1x1xf32> to vector<8x1xf32>
    %111 = arith.mulf %104, %110 : vector<8x1xf32>
    %112 = vector.broadcast %111 : vector<8x1xf32> to vector<8x64xf32>
    %113 = arith.mulf %29, %112 : vector<8x64xf32>
    %cst_51 = arith.constant dense<0.000000e+00> : vector<64xf32>
    %114 = vector.multi_reduction <add>, %113, %cst_51 [0] : vector<8x64xf32> to vector<64xf32>
    %115 = vector.shape_cast %114 : vector<64xf32> to vector<1x64xf32>
    %c0_52 = arith.constant 0 : index
    %c0_53 = arith.constant 0 : index
    %116 = vector.load %arg15[%c0_52, %c0_53] : memref<1x64xf32, #tpu.memory_space<vmem>>, vector<1x64xf32>
    %c0_54 = arith.constant 0 : index
    %c0_55 = arith.constant 0 : index
    %117 = vector.load %arg16[%c0_54, %c0_55] : memref<7x1xf32, #tpu.memory_space<vmem>>, vector<7x1xf32>
    %118 = vector.broadcast %116 : vector<1x64xf32> to vector<7x64xf32>
    %119 = arith.mulf %55, %118 : vector<7x64xf32>
    %cst_56 = arith.constant dense<0.000000e+00> : vector<7xf32>
    %120 = vector.multi_reduction <add>, %119, %cst_56 [1] : vector<7x64xf32> to vector<7xf32>
    %121 = vector.shape_cast %120 : vector<7xf32> to vector<7x1xf32>
    %122 = arith.addf %121, %117 : vector<7x1xf32>
    %123 = math.tanh %122 : vector<7x1xf32>
    %124 = math.exp %123 : vector<7x1xf32>
    %cst_57 = arith.constant dense<0.000000e+00> : vector<1xf32>
    %125 = vector.multi_reduction <add>, %124, %cst_57 [0] : vector<7x1xf32> to vector<1xf32>
    %126 = vector.shape_cast %125 : vector<1xf32> to vector<1x1xf32>
    %cst_58 = arith.constant 1.000000e-10 : f32
    %127 = vector.broadcast %cst_58 : f32 to vector<1x1xf32>
    %128 = arith.addf %126, %127 : vector<1x1xf32>
    %129 = tpu.reciprocal %128 {approx = true} : vector<1x1xf32> -> vector<1x1xf32>
    %130 = vector.broadcast %129 : vector<1x1xf32> to vector<7x1xf32>
    %131 = arith.mulf %124, %130 : vector<7x1xf32>
    %132 = vector.broadcast %131 : vector<7x1xf32> to vector<7x64xf32>
    %133 = arith.mulf %55, %132 : vector<7x64xf32>
    %cst_59 = arith.constant dense<0.000000e+00> : vector<64xf32>
    %134 = vector.multi_reduction <add>, %133, %cst_59 [0] : vector<7x64xf32> to vector<64xf32>
    %135 = vector.shape_cast %134 : vector<64xf32> to vector<1x64xf32>
    %cst_60 = arith.constant dense<0.000000e+00> : vector<64xf32>
    %136 = vector.multi_reduction <add>, %29, %cst_60 [0] : vector<8x64xf32> to vector<64xf32>
    %137 = vector.shape_cast %136 : vector<64xf32> to vector<1x64xf32>
    %cst_61 = arith.constant 8.000000e+00 : f32
    %138 = vector.broadcast %cst_61 : f32 to vector<1x64xf32>
    %139 = arith.divf %137, %138 : vector<1x64xf32>
    %cst_62 = arith.constant dense<0xFF800000> : vector<64xf32>
    %140 = vector.multi_reduction <maximumf>, %29, %cst_62 [0] : vector<8x64xf32> to vector<64xf32>
    %141 = vector.shape_cast %140 : vector<64xf32> to vector<1x64xf32>
    %cst_63 = arith.constant dense<0.000000e+00> : vector<64xf32>
    %142 = vector.multi_reduction <add>, %55, %cst_63 [0] : vector<7x64xf32> to vector<64xf32>
    %143 = vector.shape_cast %142 : vector<64xf32> to vector<1x64xf32>
    %cst_64 = arith.constant 7.000000e+00 : f32
    %144 = vector.broadcast %cst_64 : f32 to vector<1x64xf32>
    %145 = arith.divf %143, %144 : vector<1x64xf32>
    %cst_65 = arith.constant dense<0xFF800000> : vector<64xf32>
    %146 = vector.multi_reduction <maximumf>, %55, %cst_65 [0] : vector<7x64xf32> to vector<64xf32>
    %147 = vector.shape_cast %146 : vector<64xf32> to vector<1x64xf32>
    %148 = arith.mulf %75, %95 : vector<1x64xf32>
    %149 = arith.mulf %75, %115 : vector<1x64xf32>
    %150 = arith.mulf %75, %135 : vector<1x64xf32>
    %151 = arith.mulf %75, %139 : vector<1x64xf32>
    %152 = arith.mulf %75, %141 : vector<1x64xf32>
    %153 = arith.mulf %75, %145 : vector<1x64xf32>
    %154 = arith.mulf %75, %147 : vector<1x64xf32>
    %155 = arith.mulf %95, %115 : vector<1x64xf32>
    %156 = arith.mulf %95, %135 : vector<1x64xf32>
    %157 = arith.mulf %95, %139 : vector<1x64xf32>
    %158 = arith.mulf %95, %141 : vector<1x64xf32>
    %159 = arith.mulf %95, %145 : vector<1x64xf32>
    %160 = arith.mulf %95, %147 : vector<1x64xf32>
    %161 = arith.mulf %115, %135 : vector<1x64xf32>
    %162 = arith.mulf %115, %139 : vector<1x64xf32>
    %163 = arith.mulf %115, %141 : vector<1x64xf32>
    %164 = arith.mulf %115, %145 : vector<1x64xf32>
    %165 = arith.mulf %115, %147 : vector<1x64xf32>
    %166 = arith.mulf %135, %139 : vector<1x64xf32>
    %167 = arith.mulf %135, %141 : vector<1x64xf32>
    %168 = arith.mulf %135, %145 : vector<1x64xf32>
    %169 = arith.mulf %135, %147 : vector<1x64xf32>
    %170 = arith.mulf %139, %141 : vector<1x64xf32>
    %171 = arith.mulf %139, %145 : vector<1x64xf32>
    %172 = arith.mulf %139, %147 : vector<1x64xf32>
    %173 = arith.mulf %141, %145 : vector<1x64xf32>
    %174 = arith.mulf %141, %147 : vector<1x64xf32>
    %175 = arith.mulf %145, %147 : vector<1x64xf32>
    %176 = tpu.concatenate %75, %95, %115, %135, %139, %141, %145, %147, %148, %149, %150, %151, %152, %153, %154, %155 in 1 : vector<1x64xf32>, vector<1x64xf32>, vector<1x64xf32>, vector<1x64xf32>, vector<1x64xf32>, vector<1x64xf32>, vector<1x64xf32>, vector<1x64xf32>, vector<1x64xf32>, vector<1x64xf32>, vector<1x64xf32>, vector<1x64xf32>, vector<1x64xf32>, vector<1x64xf32>, vector<1x64xf32>, vector<1x64xf32> -> vector<1x1024xf32>
    %177 = tpu.concatenate %156, %157, %158, %159, %160, %161, %162, %163, %164, %165, %166, %167, %168, %169, %170, %171 in 1 : vector<1x64xf32>, vector<1x64xf32>, vector<1x64xf32>, vector<1x64xf32>, vector<1x64xf32>, vector<1x64xf32>, vector<1x64xf32>, vector<1x64xf32>, vector<1x64xf32>, vector<1x64xf32>, vector<1x64xf32>, vector<1x64xf32>, vector<1x64xf32>, vector<1x64xf32>, vector<1x64xf32>, vector<1x64xf32> -> vector<1x1024xf32>
    %178 = tpu.concatenate %172, %173, %174, %175 in 1 : vector<1x64xf32>, vector<1x64xf32>, vector<1x64xf32>, vector<1x64xf32> -> vector<1x256xf32>
    %179 = tpu.concatenate %176, %177, %178 in 1 : vector<1x1024xf32>, vector<1x1024xf32>, vector<1x256xf32> -> vector<1x2304xf32>
    %180 = arith.truncf %179 : vector<1x2304xf32> to vector<1x2304xbf16>
    %c0_66 = arith.constant 0 : index
    %c0_67 = arith.constant 0 : index
    %181 = vector.load %arg17[%c0_66, %c0_67] : memref<2304x32xbf16, #tpu.memory_space<vmem>>, vector<2304x32xbf16>
    %cst_68 = arith.constant dense<0.000000e+00> : vector<1x32xf32>
    %182 = tpu.matmul %180, %181, %cst_68 {dimension_numbers = #tpu.dot_dimension_numbers<[1], [0], [0], [1], [0, 0, 1, 1], [], []>} : vector<1x2304xbf16>, vector<2304x32xbf16>, vector<1x32xf32> -> vector<1x32xf32>
    %c0_69 = arith.constant 0 : index
    %c0_70 = arith.constant 0 : index
    %183 = vector.load %arg18[%c0_69, %c0_70] : memref<1x32xf32, #tpu.memory_space<vmem>>, vector<1x32xf32>
    %184 = arith.addf %182, %183 : vector<1x32xf32>
    %cst_71 = arith.constant 0.000000e+00 : f32
    %185 = vector.broadcast %cst_71 : f32 to vector<1x32xf32>
    %186 = arith.maximumf %184, %185 : vector<1x32xf32>
    %c0_72 = arith.constant 0 : index
    %c0_73 = arith.constant 0 : index
    %187 = vector.load %arg19[%c0_72, %c0_73] : memref<32x1xf32, #tpu.memory_space<vmem>>, vector<32x1xf32>
    %cst_74 = arith.constant dense<0.000000e+00> : vector<1x1xf32>
    %188 = tpu.matmul %186, %187, %cst_74 {dimension_numbers = #tpu.dot_dimension_numbers<[1], [0], [0], [1], [0, 0, 1, 1], [], []>} : vector<1x32xf32>, vector<32x1xf32>, vector<1x1xf32> -> vector<1x1xf32>
    %c0_75 = arith.constant 0 : index
    %c0_76 = arith.constant 0 : index
    %189 = vector.load %arg20[%c0_75, %c0_76] : memref<1x1xf32, #tpu.memory_space<vmem>>, vector<1x1xf32>
    %190 = arith.addf %188, %189 : vector<1x1xf32>
    %c0_77 = arith.constant 0 : index
    %c0_78 = arith.constant 0 : index
    %c0_79 = arith.constant 0 : index
    %191 = vector.load %arg21[%c0_77, %c0_78, %c0_79] : memref<1x1x1xf32, #tpu.memory_space<vmem>>, vector<1x1x1xf32>
    %192 = vector.shape_cast %191 : vector<1x1x1xf32> to vector<1x1xf32>
    %193 = vector.shape_cast %190 : vector<1x1xf32> to vector<1x1x1xf32>
    tpu.vector_store %arg21[%c0_77, %c0_78, %c0_79], %193 {strides = array<i32>} : memref<1x1x1xf32, #tpu.memory_space<vmem>>, vector<1x1x1xf32>,
    return
  }
  func.func @transform_0(%arg0: i32) -> (i32, i32, i32) {
    %c0_i32 = arith.constant 0 : i32
    %c0_i32_0 = arith.constant 0 : i32
    %c0_i32_1 = arith.constant 0 : i32
    return %arg0, %c0_i32, %c0_i32_0 : i32, i32, i32
  }
  func.func @transform_1(%arg0: i32) -> (i32, i32, i32) {
    %c0_i32 = arith.constant 0 : i32
    %c0_i32_0 = arith.constant 0 : i32
    %c0_i32_1 = arith.constant 0 : i32
    return %arg0, %c0_i32, %c0_i32_0 : i32, i32, i32
  }
  func.func @transform_2(%arg0: i32) -> (i32, i32, i32) {
    %c0_i32 = arith.constant 0 : i32
    %c0_i32_0 = arith.constant 0 : i32
    %c0_i32_1 = arith.constant 0 : i32
    return %arg0, %c0_i32, %c0_i32_0 : i32, i32, i32
  }
  func.func @transform_3(%arg0: i32) -> (i32, i32, i32) {
    %c0_i32 = arith.constant 0 : i32
    %c0_i32_0 = arith.constant 0 : i32
    %c0_i32_1 = arith.constant 0 : i32
    return %arg0, %c0_i32, %c0_i32_0 : i32, i32, i32
  }
  func.func @transform_4(%arg0: i32) -> (i32, i32) {
    %c0_i32 = arith.constant 0 : i32
    %c0_i32_0 = arith.constant 0 : i32
    %c0_i32_1 = arith.constant 0 : i32
    return %c0_i32, %c0_i32_0 : i32, i32
  }
  func.func @transform_5(%arg0: i32) -> (i32, i32) {
    %c0_i32 = arith.constant 0 : i32
    %c0_i32_0 = arith.constant 0 : i32
    %c0_i32_1 = arith.constant 0 : i32
    return %c0_i32, %c0_i32_0 : i32, i32
  }
  func.func @transform_6(%arg0: i32) -> (i32, i32) {
    %c0_i32 = arith.constant 0 : i32
    %c0_i32_0 = arith.constant 0 : i32
    %c0_i32_1 = arith.constant 0 : i32
    return %c0_i32, %c0_i32_0 : i32, i32
  }
  func.func @transform_7(%arg0: i32) -> (i32, i32) {
    %c0_i32 = arith.constant 0 : i32
    %c0_i32_0 = arith.constant 0 : i32
    %c0_i32_1 = arith.constant 0 : i32
    return %c0_i32, %c0_i32_0 : i32, i32
  }
  func.func @transform_8(%arg0: i32) -> (i32, i32) {
    %c0_i32 = arith.constant 0 : i32
    %c0_i32_0 = arith.constant 0 : i32
    %c0_i32_1 = arith.constant 0 : i32
    return %c0_i32, %c0_i32_0 : i32, i32
  }
  func.func @transform_9(%arg0: i32) -> (i32, i32) {
    %c0_i32 = arith.constant 0 : i32
    %c0_i32_0 = arith.constant 0 : i32
    %c0_i32_1 = arith.constant 0 : i32
    return %c0_i32, %c0_i32_0 : i32, i32
  }
  func.func @transform_10(%arg0: i32) -> (i32, i32) {
    %c0_i32 = arith.constant 0 : i32
    %c0_i32_0 = arith.constant 0 : i32
    %c0_i32_1 = arith.constant 0 : i32
    return %c0_i32, %c0_i32_0 : i32, i32
  }
  func.func @transform_11(%arg0: i32) -> (i32, i32) {
    %c0_i32 = arith.constant 0 : i32
    %c0_i32_0 = arith.constant 0 : i32
    %c0_i32_1 = arith.constant 0 : i32
    return %c0_i32, %c0_i32_0 : i32, i32
  }
  func.func @transform_12(%arg0: i32) -> (i32, i32) {
    %c0_i32 = arith.constant 0 : i32
    %c0_i32_0 = arith.constant 0 : i32
    %c0_i32_1 = arith.constant 0 : i32
    return %c0_i32, %c0_i32_0 : i32, i32
  }
  func.func @transform_13(%arg0: i32) -> (i32, i32) {
    %c0_i32 = arith.constant 0 : i32
    %c0_i32_0 = arith.constant 0 : i32
    %c0_i32_1 = arith.constant 0 : i32
    return %c0_i32, %c0_i32_0 : i32, i32
  }
  func.func @transform_14(%arg0: i32) -> (i32, i32) {
    %c0_i32 = arith.constant 0 : i32
    %c0_i32_0 = arith.constant 0 : i32
    %c0_i32_1 = arith.constant 0 : i32
    return %c0_i32, %c0_i32_0 : i32, i32
  }
  func.func @transform_15(%arg0: i32) -> (i32, i32) {
    %c0_i32 = arith.constant 0 : i32
    %c0_i32_0 = arith.constant 0 : i32
    %c0_i32_1 = arith.constant 0 : i32
    return %c0_i32, %c0_i32_0 : i32, i32
  }
  func.func @transform_16(%arg0: i32) -> (i32, i32) {
    %c0_i32 = arith.constant 0 : i32
    %c0_i32_0 = arith.constant 0 : i32
    %c0_i32_1 = arith.constant 0 : i32
    return %c0_i32, %c0_i32_0 : i32, i32
  }
  func.func @transform_17(%arg0: i32) -> (i32, i32) {
    %c0_i32 = arith.constant 0 : i32
    %c0_i32_0 = arith.constant 0 : i32
    %c0_i32_1 = arith.constant 0 : i32
    return %c0_i32, %c0_i32_0 : i32, i32
  }
  func.func @transform_18(%arg0: i32) -> (i32, i32) {
    %c0_i32 = arith.constant 0 : i32
    %c0_i32_0 = arith.constant 0 : i32
    %c0_i32_1 = arith.constant 0 : i32
    return %c0_i32, %c0_i32_0 : i32, i32
  }
  func.func @transform_19(%arg0: i32) -> (i32, i32) {
    %c0_i32 = arith.constant 0 : i32
    %c0_i32_0 = arith.constant 0 : i32
    %c0_i32_1 = arith.constant 0 : i32
    return %c0_i32, %c0_i32_0 : i32, i32
  }
  func.func @transform_20(%arg0: i32) -> (i32, i32, i32) {
    %c0_i32 = arith.constant 0 : i32
    %c0_i32_0 = arith.constant 0 : i32
    %c0_i32_1 = arith.constant 0 : i32
    return %arg0, %c0_i32, %c0_i32_0 : i32, i32, i32
  }
}

</mosaic_0001>

<bundles_post_ra>
// kernel: forward.4
= control target key start
LH: loop header
LB: loop body
LE: loop exit
PB: predicated region body
PF: predicated region fallthrough
CT: control target
= control target key end

     0   :  { %s710_s24 = smov 0   ;;  %s772_s0 = inlined_call_operand.vmem [shape: bf16[2,8,80], index: 0, kind: input, shape index: {}]   ;;  %s773_s1 = inlined_call_operand.vmem [shape: bf16[2,7,64], index: 1, kind: input, shape index: {}]   ;;  %s774_s2 = inlined_call_operand.vmem [shape: bf16[80,64], index: 2, kind: input, shape index: {}]   ;;  %s775_s3 = inlined_call_operand.vmem [shape: bf16[64,64], index: 3, kind: input, shape index: {}]   ;;  %s776_s4 = inlined_call_operand.vmem [shape: f32[1,64], index: 4, kind: input, shape index: {}]   ;;  %s777_s5 = inlined_call_operand.vmem [shape: f32[1,64], index: 5, kind: input, shape index: {}]   ;;  %s778_s6 = inlined_call_operand.vmem [shape: f32[2,8,64], index: 6, kind: output, shape index: {0}]   ;;  %s779_s7 = inlined_call_operand.vmem [shape: f32[2,7,64], index: 7, kind: output, shape index: {1}]  }
   0x1 LB: > { %s580_s25 = sadd.s32 4294967295, %s666_s24   ;;  %p584_p0 = scmp.ge.s32.totalorder %s666_s24, 1  ;;  %s666_s24 = sphi %s710_s24, %s18_s24  }
   0x2   : > { %p248_p1 = scmp.lt.s32.totalorder %s666_s24, 3 }
   0x4   : > { %p249_p2 = pnand %p584_p0, %p248_p1 }
   0x5   : > { %v651_v0 = vld [vmem:[%s774_s2] sm:$0xff] (!%p249_p2)   ;;  %v668_v1 = vmov (!%p249_p2), 0.0   ;;  %v653_v3 = vld [vmem:[%s774_s2 + $0x8] sm:$0xff] (!%p249_p2)   ;;  %vm669_vm0 = vmmov (!%p249_p2), 0   ;;  %p286_p3 = scmp.lt.s32.totalorder (!%p249_p2), %s580_s25, 1  ;;  %v655_v5 = vld [vmem:[%s774_s2 + $0x10] sm:$0xff] (!%p249_p2)  }
   0x6   : > { %252 = sbr.rel (%p249_p2) target bundleno = 243 (0xf3), region = 44  ;;  %615 = vmatprep.subr.bf16.mxu0 (!%p249_p2), %v668_v1  ;;  %629 = vmatprep.subr.bf16.mxu1 (!%p249_p2), %v668_v1  ;;  %v652_v2 = vld [vmem:[%s775_s3] sm:$0xff] (!%p249_p2)   ;;  %v654_v4 = vld [vmem:[%s775_s3 + $0x8] sm:$0xff] (!%p249_p2)   ;;  %v656_v6 = vld [vmem:[%s775_s3 + $0x10] sm:$0xff] (!%p249_p2)   ;;  %vm396_vm1 = vcmask (!%p249_p2), 523264   ;;  %vm351_vm2 = vcmask (!%p249_p2), 654336  }
   0x7   : > { %616 = vmatpush3.bf16.msra.mxu0 (!%p249_p2), %v651_v0  ;;  %637 = vmatprep.mubr.msk.bf16.mxu1 (!%p249_p2), %vm669_vm0, %v668_v1  ;;  %v657_v7 = vld [vmem:[%s774_s2 + $0x18] sm:$0xff] (!%p249_p2)   ;;  %v659_v9 = vld [vmem:[%s774_s2 + $0x20] sm:$0xff] (!%p249_p2)   ;;  %vm482_vm3 = vcmask (!%p249_p2), 522240  }
   0x8   : > { %630 = vmatpush3.bf16.msra.mxu1 (!%p249_p2), %v652_v2  ;;  %617 = vmatprep.subr.bf16.mxu0 (!%p249_p2), %v668_v1  ;;  %v658_v8 = vld [vmem:[%s775_s3 + $0x18] sm:$0xff] (!%p249_p2)   ;;  %v596_v12 = vld [vmem:[%s777_s5] ss:$0 sm:$0xff] (!%p249_p2) }
   0x9   : > { %631 = vmatprep.subr.bf16.mxu1 (!%p249_p2), %v668_v1  ;;  %625 = vmatprep.mubr.msk.bf16.mxu0 (!%p249_p2), %vm669_vm0, %v668_v1  ;;  %v589_v16 = vld [vmem:[%s776_s4] ss:$0 sm:$0xff] (!%p249_p2) }
   0xb   : > { %618 = vmatpush3.bf16.msra.mxu0 (!%p249_p2), %v653_v3 }
   0xc   : > { %632 = vmatpush3.bf16.msra.mxu1 (!%p249_p2), %v654_v4  ;;  %619 = vmatprep.subr.bf16.mxu0 (!%p249_p2), %v668_v1 }
   0xd   : > { %s781_s25 = smov (!%p286_p3, %s580_s25), 1  ;;  %633 = vmatprep.subr.bf16.mxu1 %v668_v1 }
   0xe   : > { %s585_s15 = sshll.u32 %s781_s25, 2  ;;  %s587_s9 = sshll.u32 %s781_s25, 3 }
   0xf   : > { %620 = vmatpush3.bf16.msra.mxu0 %v655_v5  ;;  %s293_s22 = scalar_lea.vmem %s773_s1, %s585_s15  ;;  %s289_s29 = scalar_lea.vmem %s772_s0, %s585_s15 }
  0x10   : > { %634 = vmatpush3.bf16.msra.mxu1 %v656_v6  ;;  %621 = vmatprep.subr.bf16.mxu0 %v668_v1  ;;  %v398_v10 = vld [vmem:[%s293_s22] sm:$0xf]  ;;  %s301_s14 = scalar_lea.vmem %s779_s7, %s587_s9  ;;  %s297_s16 = scalar_lea.vmem %s778_s6, %s587_s9 }
  0x11   : > { %635 = vmatprep.subr.bf16.mxu1 %v668_v1  ;;  %v303_v11 = vld [vmem:[%s289_s29] sm:$0xf] }
  0x13   : > { %622 = vmatpush3.bf16.msra.mxu0 %v657_v7 }
  0x14   : > { %636 = vmatpush3.bf16.msra.mxu1 %v658_v8  ;;  %623 = vmatprep.subr.bf16.mxu0 %v668_v1 }
  0x17   : > { %624 = vmatpush3.bf16.msra.mxu0 %v659_v9  ;;  %638 = vmatmul.mubr.msk.bf16.vlgmr.msra.gmra.mrb[0].mxu1 %vm396_vm1, %v398_v10 }
  0x1a   : > { %626 = vmatmul.mubr.msk.bf16.vlgmr.msra.gmra.mrb[0].mxu0 %vm351_vm2, %v303_v11 }
  0xea   : > { %v475_v13 = vpop.f32.mrb[0].mxu1 }
  0xeb   : > { %v476_v14 = vadd.f32 %v596_v12, %v475_v13  ;;  %v639_v15 = vpop.f32.mrb[1].mxu1 }
  0xec   : > { %v478_v17 = vpop.f32.mrb[2].mxu1 }
  0xed   : > { %v481_v18 = vmax.f32 %v476_v14, 0.0  ;;  %v389_v19 = vpop.f32.mrb[0].mxu0  ;;  %v640_v20 = vpop.f32.mrb[3].mxu1 }
  0xee   : > { %v390_v21 = vadd.f32 %v589_v16, %v389_v19  ;;  %v627_v22 = vpop.f32.mrb[1].mxu0 }
  0xef   : > { %483 = vst.msk [vmem:[%s301_s14] sm:$0x7f] %vm482_vm3, %v481_v18  ;;  %v392_v23 = vpop.f32.mrb[2].mxu0 }
  0xf0   : > { %v395_v24 = vmax.f32 %v390_v21, 0.0  ;;  %v628_v25 = vpop.f32.mrb[3].mxu0 }
  0xf2   : > { %397 = vst.msk [vmem:[%s297_s16] sm:$0xff] %vm396_vm1, %v395_v24 }
  0xf3 PF: > { %s18_s24 = sadd.s32 1, %s666_s24  }
  0xf4   : > { %p15_p4 = scmp.ge.s32.totalorder %s18_s24, 4  }
  0xf6   :  { %17 = sbr.rel (!%p15_p4) target bundleno = 1 (0x1), region = 89 }

// kernel: forward.5
= control target key start
LH: loop header
LB: loop body
LE: loop exit
PB: predicated region body
PF: predicated region fallthrough
CT: control target
= control target key end

     0   :  { %s2897_s30 = smov 0   ;;  %s3321_s0 = inlined_call_operand.vmem [shape: f32[2,8,64], index: 0, kind: input, shape index: {}]   ;;  %s3322_s1 = inlined_call_operand.vmem [shape: bf16[64,96], index: 1, kind: input, shape index: {}]   ;;  %s3323_s2 = inlined_call_operand.vmem [shape: bf16[64,96], index: 2, kind: input, shape index: {}]   ;;  %s3324_s3 = inlined_call_operand.vmem [shape: f32[32,96], index: 3, kind: input, shape index: {}]   ;;  %s3325_s4 = inlined_call_operand.vmem [shape: f32[32,96], index: 4, kind: input, shape index: {}]   ;;  %s3326_s5 = inlined_call_operand.vmem [shape: f32[1,96], index: 5, kind: input, shape index: {}]   ;;  %s3327_s6 = inlined_call_operand.vmem [shape: f32[1,96], index: 6, kind: input, shape index: {}]   ;;  %s3328_s7 = inlined_call_operand.vmem [shape: f32[1,96], index: 7, kind: input, shape index: {}]   ;;  %s3329_s8 = inlined_call_operand.vmem [shape: f32[1,96], index: 8, kind: input, shape index: {}]   ;;  %s3330_s9 = inlined_call_operand.vmem [shape: f32[2,8,64], index: 9, kind: output, shape index: {}]  }
   0x1 LB: > { %s2280_s10 = sadd.s32 4294967295, %s2840_s30   ;;  %p2284_p0 = scmp.ge.s32.totalorder %s2840_s30, 1  ;;  %s2840_s30 = sphi %s2897_s30, %s19_s30  }
   0x2   : > { %p286_p1 = scmp.lt.s32.totalorder %s2840_s30, 3 }
   0x4   : > { %p287_p2 = pnand %p2284_p0, %p286_p1 }
   0x5   : > { %v2730_v0 = vld [vmem:[%s3322_s1] sm:$0xff] (!%p287_p2)   ;;  %v2842_v1 = vmov (!%p287_p2), 0.0   ;;  %v2732_v3 = vld [vmem:[%s3322_s1 + $0x8] sm:$0xff] (!%p287_p2)   ;;  %vm2843_vm0 = vmmov (!%p287_p2), 0   ;;  %p320_p3 = scmp.lt.s32.totalorder (!%p287_p2), %s2280_s10, 1  ;;  %v2734_v5 = vld [vmem:[%s3322_s1 + $0x10] sm:$0xff] (!%p287_p2)  }
   0x6   : > { %290 = sbr.rel (%p287_p2) target bundleno = 5603 (0x15e3), region = 56  ;;  %2421 = vmatprep.subr.bf16.mxu0 (!%p287_p2), %v2842_v1  ;;  %2433 = vmatprep.subr.bf16.mxu1 (!%p287_p2), %v2842_v1  ;;  %v2731_v2 = vld [vmem:[%s3323_s2] sm:$0xff] (!%p287_p2)   ;;  %v2733_v4 = vld [vmem:[%s3323_s2 + $0x8] sm:$0xff] (!%p287_p2)   ;;  %v2735_v6 = vld [vmem:[%s3323_s2 + $0x10] sm:$0xff] (!%p287_p2)   ;;  %vm370_vm1 = vcmask (!%p287_p2), 523264   ;;  %v2844_v16 = vmov (!%p287_p2), 0.0|0.0  }
   0x7   : > { %2422 = vmatpush3.bf16.msra.mxu0 (!%p287_p2), %v2730_v0  ;;  %2429 = vmatprep.mubr.msk.bf16.mxu0 (!%p287_p2), %vm2843_vm0, %v2842_v1  ;;  %v2736_v7 = vld [vmem:[%s3322_s1 + $0x18] sm:$0xff] (!%p287_p2)   ;;  %v493_v10 = vld [vmem:[%s3324_s3] sm:$0xff] (!%p287_p2)  ;;  %v494_v11 = vld [vmem:[%s3324_s3 + $0x8] sm:$0xff] (!%p287_p2)  ;;  %s2845_s14 = smov (!%p287_p2), 64   ;;  %s2846_s19 = smov (!%p287_p2), 96   ;;  %vm503_vm2 = vcmask (!%p287_p2), 261120  }
   0x8   : > { %2434 = vmatpush3.bf16.msra.mxu1 (!%p287_p2), %v2731_v2  ;;  %2423 = vmatprep.subr.bf16.mxu0 (!%p287_p2), %v2842_v1  ;;  %v2737_v9 = vld [vmem:[%s3323_s2 + $0x18] sm:$0xff] (!%p287_p2)   ;;  %v497_v12 = vld [vmem:[%s3325_s4] sm:$0xff] (!%p287_p2)  ;;  %v498_v13 = vld [vmem:[%s3325_s4 + $0x8] sm:$0xff] (!%p287_p2)  ;;  %v2961_v15 = vpack.c.bf16 (!%p287_p2), %v494_v11, %v493_v10  ;;  %vm2212_vm3 = vcmask (!%p287_p2), 1040384   ;;  %vm2214_vm4 = vcmask (!%p287_p2), 1041408   ;;  %vm2216_vm5 = vcmask (!%p287_p2), 1042432  }
   0x9   : > { %2435 = vmatprep.subr.bf16.mxu1 (!%p287_p2), %v2842_v1  ;;  %2441 = vmatprep.mubr.msk.bf16.mxu1 (!%p287_p2), %vm2843_vm0, %v2842_v1  ;;  %v2964_v17 = vpack.c.bf16 (!%p287_p2), %v498_v13, %v497_v12  ;;  %v495_v18 = vld [vmem:[%s3324_s3 + $0x10] sm:$0xff] (!%p287_p2)  ;;  %v496_v19 = vld [vmem:[%s3324_s3 + $0x18] sm:$0xff] (!%p287_p2)  ;;  %v3014_v32 = vld [vmem:[%s3328_s7] sm:$0x1] (!%p287_p2)  ;;  %vm2218_vm6 = vcmask (!%p287_p2), 1043456   ;;  %vm2220_vm7 = vcmask (!%p287_p2), 1044480  }
   0xa   : > { %v499_v20 = vld [vmem:[%s3325_s4 + $0x10] sm:$0xff] (!%p287_p2)  ;;  %v500_v21 = vld [vmem:[%s3325_s4 + $0x18] sm:$0xff] (!%p287_p2)  ;;  %v2982_v22 = vpack.c.bf16 (!%p287_p2), %v496_v19, %v495_v18  ;;  %v3019_v33 = vld [vmem:[%s3329_s8] sm:$0x1] (!%p287_p2)  ;;  %vm2222_vm8 = vcmask (!%p287_p2), 1045504   ;;  %vm2224_vm9 = vcmask (!%p287_p2), 1046528  }
   0xb   : > { %2424 = vmatpush3.bf16.msra.mxu0 (!%p287_p2), %v2732_v3  ;;  %v2986_v23 = vpack.c.bf16 (!%p287_p2), %v500_v21, %v499_v20  ;;  %v2287_v41 = vld [vmem:[%s3326_s5] ss:$0 sm:$0xff] (!%p287_p2) }
   0xc   : > { %2436 = vmatpush3.bf16.msra.mxu1 (!%p287_p2), %v2733_v4  ;;  %2425 = vmatprep.subr.bf16.mxu0 (!%p287_p2), %v2842_v1  ;;  %v2293_v42 = vld [vmem:[%s3327_s6] ss:$0 sm:$0xff] (!%p287_p2) }
   0xd   : > { %s3332_s10 = smov (!%p320_p3, %s2280_s10), 1  ;;  %2437 = vmatprep.subr.bf16.mxu1 %v2842_v1 }
   0xe   : > { %s2285_s21 = sshll.u32 %s3332_s10, 3 }
   0xf   : > { %s323_s26 = scalar_lea.vmem %s3321_s0, %s2285_s21  ;;  %2426 = vmatpush3.bf16.msra.mxu0 %v2734_v5  ;;  %s327_s23 = scalar_lea.vmem %s3330_s9, %s2285_s21 }
  0x10   : > { %v329_v8 = vld [vmem:[%s323_s26] sm:$0xff]  ;;  %2438 = vmatpush3.bf16.msra.mxu1 %v2735_v6  ;;  %2427 = vmatprep.subr.bf16.mxu0 %v2842_v1 }
  0x11   : > { %2439 = vmatprep.subr.bf16.mxu1 %v2842_v1  ;;  %v330_v14 = vpack.c.bf16 %v329_v8, %v329_v8 }
  0x13   : > { %2428 = vmatpush3.bf16.msra.mxu0 %v2736_v7 }
  0x14   : > { %2440 = vmatpush3.bf16.msra.mxu1 %v2737_v9  ;;  %2621 = vmatprep.subr.bf16.mxu0 %v2844_v16 }
  0x15   : > { %2627 = vmatprep.subr.bf16.mxu1 %v2844_v16 }
  0x16   : > { %2430 = vmatmul.mubr.msk.bf16.vlgmr.msra.gmra.mrb[0].mxu0 %vm370_vm1, %v330_v14 }
  0x17   : > { %2623 = vmatpush3.bf16.msra.mxu0 %v2961_v15  ;;  %2442 = vmatmul.mubr.msk.bf16.vlgmr.msra.gmra.mrb[0].mxu1 %vm370_vm1, %v330_v14 }
  0x18   : > { %2629 = vmatpush3.bf16.msra.mxu1 %v2964_v17  ;;  %2624 = vmatprep.subr.bf16.mxu0 %v2844_v16 }
  0x19   : > { %2630 = vmatprep.subr.bf16.mxu1 %v2844_v16  ;;  %2453 = vmatprep.mubr.msk.f32.mxu0 %vm2843_vm0, %v2842_v1 }
  0x1a   : > { %2464 = vmatprep.mubr.msk.f32.mxu1 %vm2843_vm0, %v2842_v1 }
  0x1b   : > { %2626 = vmatpush3.bf16.msra.mxu0 %v2982_v22 }
  0x1c   : > { %2632 = vmatpush3.bf16.msra.mxu1 %v2986_v23  ;;  %2633 = vmatprep.subr.bf16.mxu0 %v2844_v16 }
  0x1d   : > { %2639 = vmatprep.subr.bf16.mxu1 %v2844_v16 }
  0x1e   : > { %2454 = vmatmul.mubr.f32.vlgmr.msra.gmra.mrb[4].mxu0 %v2842_v1 }
  0x1f   : > { %2465 = vmatmul.mubr.f32.vlgmr.msra.gmra.mrb[4].mxu1 %v2842_v1  ;;  %2635 = vmatpush3.bf16.msra.mxu0 %v2961_v15 }
  0x20   : > { %2636 = vmatprep.subr.bf16.mxu0 %v2844_v16  ;;  %2475 = vmatprep.mubr.msk.f32.mxu0 %vm2843_vm0, %v2842_v1 }
  0x21   : > { %2641 = vmatpush3.bf16.msra.mxu1 %v2964_v17  ;;  %2486 = vmatprep.mubr.msk.f32.mxu1 %vm2843_vm0, %v2842_v1 }
  0x22   : > { %2642 = vmatprep.subr.bf16.mxu1 %v2844_v16 }
  0x23   : > { %2638 = vmatpush3.bf16.msra.mxu0 %v2982_v22 }
  0x24   : > { %2645 = vmatprep.subr.bf16.mxu0 %v2844_v16 }
  0x25   : > { %2644 = vmatpush3.bf16.msra.mxu1 %v2986_v23 }
  0x26   : > { %2651 = vmatprep.subr.bf16.mxu1 %v2844_v16 }
  0xe9   : > { %v408_v24 = vpop.f32.mrb[0].mxu0 }
  0xea   : > { %v2431_v25 = vpop.f32.mrb[1].mxu0  ;;  %v487_v26 = vpop.f32.mrb[0].mxu1  ;;  %v3031_v43 = vadd.f32 %v2287_v41, %v408_v24 }
  0xeb   : > { %v411_v27 = vpop.f32.mrb[2].mxu0  ;;  %v2443_v28 = vpop.f32.mrb[1].mxu1  ;;  %v3033_v44 = vadd.f32 %v2293_v42, %v487_v26 }
  0xec   : > { %v2432_v29 = vpop.f32.mrb[3].mxu0  ;;  %v490_v30 = vpop.f32.mrb[2].mxu1 }
  0xed   : > { %v2444_v31 = vpop.f32.mrb[3].mxu1 }
  0xf1   : > { %v573_v34 = vpop.f32.mrb[4].mxu0 }
  0xf2   : > { %v574_v35 = vadd.f32 %v573_v34, %v3014_v32  ;;  %v2455_v36 = vpop.f32.mrb[5].mxu0  ;;  %v669_v37 = vpop.f32.mrb[4].mxu1 }
  0xf3   : > { %v670_v38 = vadd.f32 %v669_v37, %v3019_v33  ;;  %v2466_v39 = vpop.f32.mrb[5].mxu1 }
  0xf4   : > { %585 = vrot.lane.b32.xlu0 %v574_v35, %s2845_s14  ;;  %v577_v45 = vadd.f32 %v574_v35, %v3031_v43 }
  0xf5   : > { %v674_v40 = vrot.slane %v670_v38, 1 }
  0xf6   : > { %v2299_v47 = vmul.f32 -1.442695, %v577_v45 }
  0xf7   : > { %v676_v46 = vadd.f32 %v674_v40, %v3033_v44 }
  0xf8   : > { %683 = vrot.lane.b32.xlu0 %v674_v40, %s2845_s14  ;;  %2738 = vpow2.f32 %v2299_v47 }
  0xf9   : > { %v2300_v48 = vmul.f32 -1.442695, %v676_v46 }
  0xfb   : > { %2740 = vpow2.f32 %v2300_v48 }
 0x102   : > { %v2739_v49 = vpop.eup %2738 }
 0x103   : > { %v581_v51 = vadd.f32 1.0, %v2739_v49 }
 0x105   : > { %v2741_v50 = vpop.eup %2740  ;;  %2742 = vrcp.f32 %v581_v51 }
 0x106   : > { %v680_v52 = vadd.f32 1.0, %v2741_v50 }
 0x108   : > { %2744 = vrcp.f32 %v680_v52 }
 0x10f   : > { %v2743_v53 = vpop.eup %2742 }
 0x110   : > { %v595_v2 = vsub.f32 1.0, %v2743_v53  ;;  %v601_v4 = vmul.f32 0.0, %v2743_v53 }
 0x112   : > { %v2745_v56 = vpop.eup %2744 }
 0x113   : > { %v693_v7 = vsub.f32 1.0, %v2745_v56  ;;  %v699_v9 = vmul.f32 0.0, %v2745_v56 }
 0x166   : > { %v586_v54 = vpop.permute.xlu0 %585 }
 0x167   : > { %v588_v55 = vmul.f32 %v2743_v53, %v586_v54 }
 0x169   : > { %590 = vrot.lane.b32.xlu1 %v588_v55, %s2845_s14 }
 0x16a   : > { %v684_v57 = vpop.permute.xlu0 %683 }
 0x16b   : > { %v686_v58 = vmul.f32 %v2745_v56, %v684_v57 }
 0x16d   : > { %688 = vrot.lane.b32.xlu1 %v686_v58, %s2845_s14 }
 0x1db   : > { %v591_v59 = vpop.permute.xlu1 %590 }
 0x1dc   : > { %v593_v60 = vadd.f32 %v591_v59, %v3031_v43 }
 0x1de   : > { %2746 = vtanh.f32 %v593_v60 }
 0x1df   : > { %v689_v61 = vpop.permute.xlu1 %688 }
 0x1e0   : > { %v691_v62 = vadd.f32 %v689_v61, %v3033_v44 }
 0x1e2   : > { %2748 = vtanh.f32 %v691_v62 }
 0x1e8   : > { %v2747_v63 = vpop.eup %2746 }
 0x1e9   : > { %597 = vrot.lane.b32.xlu0 %v2747_v63, %s2846_s19 }
 0x1ec   : > { %v2749_v0 = vpop.eup %2748 }
 0x1ed   : > { %695 = vrot.lane.b32.xlu1 %v2749_v0, %s2846_s19 }
 0x25b   : > { %v598_v3 = vpop.permute.xlu0 %597 }
 0x25c   : > { %v600_v5 = vmul.f32 %v598_v3, %v595_v2 }
 0x25e   : > { %v3043_v6 = vadd.f32 %v601_v4, %v600_v5 }
 0x25f   : > { %v696_v8 = vpop.permute.xlu1 %695 }
 0x260   : > { %v698_v10 = vmul.f32 %v696_v8, %v693_v7  ;;  %702 = vrot.lane.b32.xlu0 %v3043_v6, %s2846_s19  ;;  %v802_v52 = vrot.slane %v3043_v6, 7 }
 0x262   : > { %v3047_v11 = vadd.f32 %v699_v9, %v698_v10 }
 0x264   : > { %v807_v12 = vrot.slane %v3047_v11, 7  ;;  %v908_v59 = vrot.slane %v3047_v11, 1 }
 0x266   : > { %808 = vrot.lane.b32.xlu1 %v807_v12, %s2846_s19 }
 0x2d2   : > { %v3051_v13 = vpop.permute.xlu0 %702 }
 0x2d3   : > { %2476 = vmatmul.mubr.msk.f32.vlgmr.msra.gmra.mrb[6].mxu0 %vm503_vm2, %v3051_v13 }
 0x2d4   : > { %2647 = vmatpush3.bf16.msra.mxu0 %v2961_v15  ;;  %2497 = vmatprep.mubr.msk.f32.mxu0 %vm2843_vm0, %v2842_v1 }
 0x2d5   : > { %2648 = vmatprep.subr.bf16.mxu0 %v2844_v16 }
 0x2d8   : > { %v809_v14 = vpop.permute.xlu1 %808  ;;  %2650 = vmatpush3.bf16.msra.mxu0 %v2982_v22 }
 0x2d9   : > { %2487 = vmatmul.mubr.msk.f32.vlgmr.msra.gmra.mrb[6].mxu1 %vm503_vm2, %v809_v14  ;;  %2657 = vmatprep.subr.bf16.mxu0 %v2844_v16 }
 0x2da   : > { %2653 = vmatpush3.bf16.msra.mxu1 %v2964_v17  ;;  %2508 = vmatprep.mubr.msk.f32.mxu1 %vm2843_vm0, %v2842_v1 }
 0x2db   : > { %2654 = vmatprep.subr.bf16.mxu1 %v2844_v16 }
 0x2de   : > { %2656 = vmatpush3.bf16.msra.mxu1 %v2986_v23 }
 0x2df   : > { %2663 = vmatprep.subr.bf16.mxu1 %v2844_v16 }
 0x3a6   : > { %v772_v18 = vpop.f32.mrb[6].mxu0 }
 0x3a7   : > { %v773_v19 = vadd.f32 %v772_v18, %v3014_v32  ;;  %v2477_v20 = vpop.f32.mrb[7].mxu0 }
 0x3a9   : > { %v777_v21 = vrot.slane %v773_v19, 7 }
 0x3ab   : > { %786 = vrot.lane.b32.xlu0 %v777_v21, %s2845_s14  ;;  %v779_v28 = vadd.f32 %v777_v21, %v3031_v43 }
 0x3ac   : > { %v878_v24 = vpop.f32.mrb[6].mxu1 }
 0x3ad   : > { %v879_v25 = vadd.f32 %v878_v24, %v3019_v33  ;;  %v2488_v26 = vpop.f32.mrb[7].mxu1  ;;  %v2302_v29 = vmul.f32 -1.442695, %v779_v28 }
 0x3af   : > { %v883_v27 = vrot.slane %v879_v25, 2  ;;  %2750 = vpow2.f32 %v2302_v29 }
 0x3b1   : > { %892 = vrot.lane.b32.xlu1 %v883_v27, %s2845_s14  ;;  %v885_v30 = vadd.f32 %v883_v27, %v3033_v44 }
 0x3b3   : > { %v2304_v31 = vmul.f32 -1.442695, %v885_v30 }
 0x3b5   : > { %2752 = vpow2.f32 %v2304_v31 }
 0x3b9   : > { %v2751_v34 = vpop.eup %2750 }
 0x3ba   : > { %v783_v35 = vadd.f32 1.0, %v2751_v34 }
 0x3bc   : > { %2754 = vrcp.f32 %v783_v35 }
 0x3bf   : > { %v2753_v36 = vpop.eup %2752 }
 0x3c0   : > { %v889_v37 = vadd.f32 1.0, %v2753_v36 }
 0x3c2   : > { %2756 = vrcp.f32 %v889_v37 }
 0x3c6   : > { %v2755_v38 = vpop.eup %2754 }
 0x3c7   : > { %v796_v53 = vsub.f32 1.0, %v2755_v38  ;;  %v804_v55 = vmul.f32 %v2755_v38, %v802_v52 }
 0x3cc   : > { %v2757_v41 = vpop.eup %2756 }
 0x3cd   : > { %v902_v58 = vsub.f32 1.0, %v2757_v41  ;;  %v910_v62 = vmul.f32 %v2757_v41, %v908_v59 }
 0x41d   : > { %v787_v39 = vpop.permute.xlu0 %786 }
 0x41e   : > { %v789_v40 = vmul.f32 %v2755_v38, %v787_v39 }
 0x420   : > { %791 = vrot.lane.b32.xlu0 %v789_v40, %s2845_s14 }
 0x423   : > { %v893_v42 = vpop.permute.xlu1 %892 }
 0x424   : > { %v895_v45 = vmul.f32 %v2757_v41, %v893_v42 }
 0x426   : > { %897 = vrot.lane.b32.xlu1 %v895_v45, %s2845_s14 }
 0x492   : > { %v792_v46 = vpop.permute.xlu0 %791 }
 0x493   : > { %v794_v47 = vadd.f32 %v792_v46, %v3031_v43 }
 0x495   : > { %2758 = vtanh.f32 %v794_v47 }
 0x498   : > { %v898_v48 = vpop.permute.xlu1 %897 }
 0x499   : > { %v900_v49 = vadd.f32 %v898_v48, %v3033_v44 }
 0x49b   : > { %2760 = vtanh.f32 %v900_v49 }
 0x49f   : > { %v2759_v50 = vpop.eup %2758 }
 0x4a0   : > { %798 = vrot.lane.b32.xlu0 %v2759_v50, %s2846_s19 }
 0x4a5   : > { %v2761_v51 = vpop.eup %2760 }
 0x4a6   : > { %904 = vrot.lane.b32.xlu1 %v2761_v51, %s2846_s19 }
 0x512   : > { %v799_v54 = vpop.permute.xlu0 %798 }
 0x513   : > { %v801_v56 = vmul.f32 %v799_v54, %v796_v53 }
 0x515   : > { %v3081_v57 = vadd.f32 %v804_v55, %v801_v56 }
 0x517   : > { %v913_v60 = vrot.slane %v3081_v57, 1  ;;  %v1014_v45 = vrot.slane %v3081_v57, 7 }
 0x518   : > { %v905_v61 = vpop.permute.xlu1 %904 }
 0x519   : > { %v907_v63 = vmul.f32 %v905_v61, %v902_v58  ;;  %914 = vrot.lane.b32.xlu0 %v913_v60, %s2846_s19 }
 0x51b   : > { %v3086_v0 = vadd.f32 %v910_v62, %v907_v63 }
 0x51d   : > { %v1019_v2 = vrot.slane %v3086_v0, 6  ;;  %v1120_v51 = vrot.slane %v3086_v0, 1 }
 0x51f   : > { %1020 = vrot.lane.b32.xlu1 %v1019_v2, %s2846_s19 }
 0x58b   : > { %v915_v3 = vpop.permute.xlu0 %914 }
 0x58c   : > { %2498 = vmatmul.mubr.msk.f32.vlgmr.msra.gmra.mrb[8].mxu0 %vm503_vm2, %v915_v3 }
 0x58d   : > { %2659 = vmatpush3.bf16.msra.mxu0 %v2961_v15  ;;  %2519 = vmatprep.mubr.msk.f32.mxu0 %vm2843_vm0, %v2842_v1 }
 0x58e   : > { %2660 = vmatprep.subr.bf16.mxu0 %v2844_v16 }
 0x591   : > { %v1021_v4 = vpop.permute.xlu1 %1020  ;;  %2662 = vmatpush3.bf16.msra.mxu0 %v2982_v22 }
 0x592   : > { %2509 = vmatmul.mubr.msk.f32.vlgmr.msra.gmra.mrb[8].mxu1 %vm503_vm2, %v1021_v4  ;;  %2669 = vmatprep.subr.bf16.mxu0 %v2844_v16 }
 0x593   : > { %2665 = vmatpush3.bf16.msra.mxu1 %v2964_v17  ;;  %2530 = vmatprep.mubr.msk.f32.mxu1 %vm2843_vm0, %v2842_v1 }
 0x594   : > { %2666 = vmatprep.subr.bf16.mxu1 %v2844_v16 }
 0x597   : > { %2668 = vmatpush3.bf16.msra.mxu1 %v2986_v23 }
 0x598   : > { %2675 = vmatprep.subr.bf16.mxu1 %v2844_v16 }
 0x65f   : > { %v984_v5 = vpop.f32.mrb[8].mxu0 }
 0x660   : > { %v985_v6 = vadd.f32 %v984_v5, %v3014_v32  ;;  %v2499_v7 = vpop.f32.mrb[9].mxu0 }
 0x662   : > { %v989_v8 = vrot.slane %v985_v6, 6 }
 0x664   : > { %998 = vrot.lane.b32.xlu0 %v989_v8, %s2845_s14  ;;  %v991_v18 = vadd.f32 %v989_v8, %v3031_v43 }
 0x665   : > { %v1090_v9 = vpop.f32.mrb[8].mxu1 }
 0x666   : > { %v1091_v10 = vadd.f32 %v1090_v9, %v3019_v33  ;;  %v2510_v12 = vpop.f32.mrb[9].mxu1  ;;  %v2306_v19 = vmul.f32 -1.442695, %v991_v18 }
 0x668   : > { %v1095_v14 = vrot.slane %v1091_v10, 3  ;;  %2762 = vpow2.f32 %v2306_v19 }
 0x66a   : > { %1104 = vrot.lane.b32.xlu1 %v1095_v14, %s2845_s14  ;;  %v1097_v20 = vadd.f32 %v1095_v14, %v3033_v44 }
 0x66c   : > { %v2308_v21 = vmul.f32 -1.442695, %v1097_v20 }
 0x66e   : > { %2764 = vpow2.f32 %v2308_v21 }
 0x672   : > { %v2763_v24 = vpop.eup %2762 }
 0x673   : > { %v995_v25 = vadd.f32 1.0, %v2763_v24 }
 0x675   : > { %2766 = vrcp.f32 %v995_v25 }
 0x678   : > { %v2765_v26 = vpop.eup %2764 }
 0x679   : > { %v1101_v27 = vadd.f32 1.0, %v2765_v26 }
 0x67b   : > { %2768 = vrcp.f32 %v1101_v27 }
 0x67f   : > { %v2767_v28 = vpop.eup %2766 }
 0x680   : > { %v1008_v42 = vsub.f32 1.0, %v2767_v28  ;;  %v1016_v47 = vmul.f32 %v2767_v28, %v1014_v45 }
 0x685   : > { %v2769_v31 = vpop.eup %2768 }
 0x686   : > { %v1114_v50 = vsub.f32 1.0, %v2769_v31  ;;  %v1122_v54 = vmul.f32 %v2769_v31, %v1120_v51 }
 0x6d6   : > { %v999_v29 = vpop.permute.xlu0 %998 }
 0x6d7   : > { %v1001_v30 = vmul.f32 %v2767_v28, %v999_v29 }
 0x6d9   : > { %1003 = vrot.lane.b32.xlu0 %v1001_v30, %s2845_s14 }
 0x6dc   : > { %v1105_v34 = vpop.permute.xlu1 %1104 }
 0x6dd   : > { %v1107_v35 = vmul.f32 %v2769_v31, %v1105_v34 }
 0x6df   : > { %1109 = vrot.lane.b32.xlu1 %v1107_v35, %s2845_s14 }
 0x74b   : > { %v1004_v36 = vpop.permute.xlu0 %1003 }
 0x74c   : > { %v1006_v37 = vadd.f32 %v1004_v36, %v3031_v43 }
 0x74e   : > { %2770 = vtanh.f32 %v1006_v37 }
 0x751   : > { %v1110_v38 = vpop.permute.xlu1 %1109 }
 0x752   : > { %v1112_v39 = vadd.f32 %v1110_v38, %v3033_v44 }
 0x754   : > { %2772 = vtanh.f32 %v1112_v39 }
 0x758   : > { %v2771_v40 = vpop.eup %2770 }
 0x759   : > { %1010 = vrot.lane.b32.xlu0 %v2771_v40, %s2846_s19 }
 0x75e   : > { %v2773_v41 = vpop.eup %2772 }
 0x75f   : > { %1116 = vrot.lane.b32.xlu1 %v2773_v41, %s2846_s19 }
 0x7cb   : > { %v1011_v46 = vpop.permute.xlu0 %1010 }
 0x7cc   : > { %v1013_v48 = vmul.f32 %v1011_v46, %v1008_v42 }
 0x7ce   : > { %v3117_v49 = vadd.f32 %v1016_v47, %v1013_v48 }
 0x7d0   : > { %v1125_v52 = vrot.slane %v3117_v49, 2  ;;  %v1226_v37 = vrot.slane %v3117_v49, 7 }
 0x7d1   : > { %v1117_v53 = vpop.permute.xlu1 %1116 }
 0x7d2   : > { %v1119_v55 = vmul.f32 %v1117_v53, %v1114_v50  ;;  %1126 = vrot.lane.b32.xlu0 %v1125_v52, %s2846_s19 }
 0x7d4   : > { %v3122_v56 = vadd.f32 %v1122_v54, %v1119_v55 }
 0x7d6   : > { %v1231_v58 = vrot.slane %v3122_v56, 5  ;;  %v1332_v45 = vrot.slane %v3122_v56, 1 }
 0x7d8   : > { %1232 = vrot.lane.b32.xlu1 %v1231_v58, %s2846_s19 }
 0x844   : > { %v1127_v59 = vpop.permute.xlu0 %1126 }
 0x845   : > { %2520 = vmatmul.mubr.msk.f32.vlgmr.msra.gmra.mrb[10].mxu0 %vm503_vm2, %v1127_v59 }
 0x846   : > { %2671 = vmatpush3.bf16.msra.mxu0 %v2961_v15  ;;  %2541 = vmatprep.mubr.msk.f32.mxu0 %vm2843_vm0, %v2842_v1 }
 0x847   : > { %2672 = vmatprep.subr.bf16.mxu0 %v2844_v16 }
 0x84a   : > { %v1233_v60 = vpop.permute.xlu1 %1232  ;;  %2674 = vmatpush3.bf16.msra.mxu0 %v2982_v22 }
 0x84b   : > { %2531 = vmatmul.mubr.msk.f32.vlgmr.msra.gmra.mrb[10].mxu1 %vm503_vm2, %v1233_v60  ;;  %2681 = vmatprep.subr.bf16.mxu0 %v2844_v16 }
 0x84c   : > { %2677 = vmatpush3.bf16.msra.mxu1 %v2964_v17  ;;  %2552 = vmatprep.mubr.msk.f32.mxu1 %vm2843_vm0, %v2842_v1 }
 0x84d   : > { %2678 = vmatprep.subr.bf16.mxu1 %v2844_v16 }
 0x850   : > { %2680 = vmatpush3.bf16.msra.mxu1 %v2986_v23 }
 0x851   : > { %2687 = vmatprep.subr.bf16.mxu1 %v2844_v16 }
 0x918   : > { %v1196_v61 = vpop.f32.mrb[10].mxu0 }
 0x919   : > { %v1197_v62 = vadd.f32 %v1196_v61, %v3014_v32  ;;  %v2521_v63 = vpop.f32.mrb[11].mxu0 }
 0x91b   : > { %v1201_v2 = vrot.slane %v1197_v62, 5 }
 0x91d   : > { %1210 = vrot.lane.b32.xlu0 %v1201_v2, %s2845_s14  ;;  %v1203_v7 = vadd.f32 %v1201_v2, %v3031_v43 }
 0x91e   : > { %v1302_v3 = vpop.f32.mrb[10].mxu1 }
 0x91f   : > { %v1303_v4 = vadd.f32 %v1302_v3, %v3019_v33  ;;  %v2532_v5 = vpop.f32.mrb[11].mxu1  ;;  %v2310_v8 = vmul.f32 -1.442695, %v1203_v7 }
 0x921   : > { %v1307_v6 = vrot.slane %v1303_v4, 4  ;;  %2774 = vpow2.f32 %v2310_v8 }
 0x923   : > { %1316 = vrot.lane.b32.xlu1 %v1307_v6, %s2845_s14  ;;  %v1309_v9 = vadd.f32 %v1307_v6, %v3033_v44 }
 0x925   : > { %v2312_v10 = vmul.f32 -1.442695, %v1309_v9 }
 0x927   : > { %2776 = vpow2.f32 %v2312_v10 }
 0x92b   : > { %v2775_v12 = vpop.eup %2774 }
 0x92c   : > { %v1207_v14 = vadd.f32 1.0, %v2775_v12 }
 0x92e   : > { %2778 = vrcp.f32 %v1207_v14 }
 0x931   : > { %v2777_v18 = vpop.eup %2776 }
 0x932   : > { %v1313_v19 = vadd.f32 1.0, %v2777_v18 }
 0x934   : > { %2780 = vrcp.f32 %v1313_v19 }
 0x938   : > { %v2779_v20 = vpop.eup %2778 }
 0x939   : > { %v1220_v36 = vsub.f32 1.0, %v2779_v20  ;;  %v1228_v39 = vmul.f32 %v2779_v20, %v1226_v37 }
 0x93e   : > { %v2781_v25 = vpop.eup %2780 }
 0x93f   : > { %v1326_v42 = vsub.f32 1.0, %v2781_v25  ;;  %v1334_v48 = vmul.f32 %v2781_v25, %v1332_v45 }
 0x98f   : > { %v1211_v21 = vpop.permute.xlu0 %1210 }
 0x990   : > { %v1213_v24 = vmul.f32 %v2779_v20, %v1211_v21 }
 0x992   : > { %1215 = vrot.lane.b32.xlu0 %v1213_v24, %s2845_s14 }
 0x995   : > { %v1317_v26 = vpop.permute.xlu1 %1316 }
 0x996   : > { %v1319_v27 = vmul.f32 %v2781_v25, %v1317_v26 }
 0x998   : > { %1321 = vrot.lane.b32.xlu1 %v1319_v27, %s2845_s14 }
 0xa04   : > { %v1216_v28 = vpop.permute.xlu0 %1215 }
 0xa05   : > { %v1218_v29 = vadd.f32 %v1216_v28, %v3031_v43 }
 0xa07   : > { %2782 = vtanh.f32 %v1218_v29 }
 0xa0a   : > { %v1322_v30 = vpop.permute.xlu1 %1321 }
 0xa0b   : > { %v1324_v31 = vadd.f32 %v1322_v30, %v3033_v44 }
 0xa0d   : > { %2784 = vtanh.f32 %v1324_v31 }
 0xa11   : > { %v2783_v34 = vpop.eup %2782 }
 0xa12   : > { %1222 = vrot.lane.b32.xlu0 %v2783_v34, %s2846_s19 }
 0xa17   : > { %v2785_v35 = vpop.eup %2784 }
 0xa18   : > { %1328 = vrot.lane.b32.xlu1 %v2785_v35, %s2846_s19 }
 0xa84   : > { %v1223_v38 = vpop.permute.xlu0 %1222 }
 0xa85   : > { %v1225_v40 = vmul.f32 %v1223_v38, %v1220_v36 }
 0xa87   : > { %v3153_v41 = vadd.f32 %v1228_v39, %v1225_v40 }
 0xa89   : > { %v1337_v46 = vrot.slane %v3153_v41, 3  ;;  %v1438_v31 = vrot.slane %v3153_v41, 7 }
 0xa8a   : > { %v1329_v47 = vpop.permute.xlu1 %1328 }
 0xa8b   : > { %v1331_v50 = vmul.f32 %v1329_v47, %v1326_v42  ;;  %1338 = vrot.lane.b32.xlu0 %v1337_v46, %s2846_s19 }
 0xa8d   : > { %v3158_v51 = vadd.f32 %v1334_v48, %v1331_v50 }
 0xa8f   : > { %v1443_v52 = vrot.slane %v3158_v51, 4  ;;  %v1544_v39 = vrot.slane %v3158_v51, 1 }
 0xa91   : > { %1444 = vrot.lane.b32.xlu1 %v1443_v52, %s2846_s19 }
 0xafd   : > { %v1339_v53 = vpop.permute.xlu0 %1338 }
 0xafe   : > { %2542 = vmatmul.mubr.msk.f32.vlgmr.msra.gmra.mrb[12].mxu0 %vm503_vm2, %v1339_v53 }
 0xaff   : > { %2683 = vmatpush3.bf16.msra.mxu0 %v2961_v15  ;;  %2563 = vmatprep.mubr.msk.f32.mxu0 %vm2843_vm0, %v2842_v1 }
 0xb00   : > { %2684 = vmatprep.subr.bf16.mxu0 %v2844_v16 }
 0xb03   : > { %v1445_v54 = vpop.permute.xlu1 %1444  ;;  %2686 = vmatpush3.bf16.msra.mxu0 %v2982_v22 }
 0xb04   : > { %2553 = vmatmul.mubr.msk.f32.vlgmr.msra.gmra.mrb[12].mxu1 %vm503_vm2, %v1445_v54  ;;  %2693 = vmatprep.subr.bf16.mxu0 %v2844_v16 }
 0xb05   : > { %2689 = vmatpush3.bf16.msra.mxu1 %v2964_v17  ;;  %2574 = vmatprep.mubr.msk.f32.mxu1 %vm2843_vm0, %v2842_v1 }
 0xb06   : > { %2690 = vmatprep.subr.bf16.mxu1 %v2844_v16 }
 0xb09   : > { %2692 = vmatpush3.bf16.msra.mxu1 %v2986_v23 }
 0xb0a   : > { %2699 = vmatprep.subr.bf16.mxu1 %v2844_v16 }
 0xbd1   : > { %v1408_v55 = vpop.f32.mrb[12].mxu0 }
 0xbd2   : > { %v1409_v58 = vadd.f32 %v1408_v55, %v3014_v32  ;;  %v2543_v59 = vpop.f32.mrb[13].mxu0 }
 0xbd4   : > { %v1413_v60 = vrot.slane %v1409_v58, 4 }
 0xbd6   : > { %1422 = vrot.lane.b32.xlu0 %v1413_v60, %s2845_s14  ;;  %v1415_v3 = vadd.f32 %v1413_v60, %v3031_v43 }
 0xbd7   : > { %v1514_v61 = vpop.f32.mrb[12].mxu1 }
 0xbd8   : > { %v1515_v62 = vadd.f32 %v1514_v61, %v3019_v33  ;;  %v2554_v63 = vpop.f32.mrb[13].mxu1  ;;  %v2314_v4 = vmul.f32 -1.442695, %v1415_v3 }
 0xbda   : > { %v1519_v2 = vrot.slane %v1515_v62, 5  ;;  %2786 = vpow2.f32 %v2314_v4 }
 0xbdc   : > { %1528 = vrot.lane.b32.xlu1 %v1519_v2, %s2845_s14  ;;  %v1521_v5 = vadd.f32 %v1519_v2, %v3033_v44 }
 0xbde   : > { %v2316_v6 = vmul.f32 -1.442695, %v1521_v5 }
 0xbe0   : > { %2788 = vpow2.f32 %v2316_v6 }
 0xbe4   : > { %v2787_v7 = vpop.eup %2786 }
 0xbe5   : > { %v1419_v8 = vadd.f32 1.0, %v2787_v7 }
 0xbe7   : > { %2790 = vrcp.f32 %v1419_v8 }
 0xbea   : > { %v2789_v9 = vpop.eup %2788 }
 0xbeb   : > { %v1525_v10 = vadd.f32 1.0, %v2789_v9 }
 0xbed   : > { %2792 = vrcp.f32 %v1525_v10 }
 0xbf1   : > { %v2791_v12 = vpop.eup %2790 }
 0xbf2   : > { %v1432_v30 = vsub.f32 1.0, %v2791_v12  ;;  %v1440_v35 = vmul.f32 %v2791_v12, %v1438_v31 }
 0xbf7   : > { %v2793_v19 = vpop.eup %2792 }
 0xbf8   : > { %v1538_v38 = vsub.f32 1.0, %v2793_v19  ;;  %v1546_v45 = vmul.f32 %v2793_v19, %v1544_v39 }
 0xc48   : > { %v1423_v14 = vpop.permute.xlu0 %1422 }
 0xc49   : > { %v1425_v18 = vmul.f32 %v2791_v12, %v1423_v14 }
 0xc4b   : > { %1427 = vrot.lane.b32.xlu0 %v1425_v18, %s2845_s14 }
 0xc4e   : > { %v1529_v20 = vpop.permute.xlu1 %1528 }
 0xc4f   : > { %v1531_v21 = vmul.f32 %v2793_v19, %v1529_v20 }
 0xc51   : > { %1533 = vrot.lane.b32.xlu1 %v1531_v21, %s2845_s14 }
 0xcbd   : > { %v1428_v24 = vpop.permute.xlu0 %1427 }
 0xcbe   : > { %v1430_v25 = vadd.f32 %v1428_v24, %v3031_v43 }
 0xcc0   : > { %2794 = vtanh.f32 %v1430_v25 }
 0xcc3   : > { %v1534_v26 = vpop.permute.xlu1 %1533 }
 0xcc4   : > { %v1536_v27 = vadd.f32 %v1534_v26, %v3033_v44 }
 0xcc6   : > { %2796 = vtanh.f32 %v1536_v27 }
 0xcca   : > { %v2795_v28 = vpop.eup %2794 }
 0xccb   : > { %1434 = vrot.lane.b32.xlu0 %v2795_v28, %s2846_s19 }
 0xcd0   : > { %v2797_v29 = vpop.eup %2796 }
 0xcd1   : > { %1540 = vrot.lane.b32.xlu1 %v2797_v29, %s2846_s19 }
 0xd3d   : > { %v1435_v34 = vpop.permute.xlu0 %1434 }
 0xd3e   : > { %v1437_v36 = vmul.f32 %v1435_v34, %v1432_v30 }
 0xd40   : > { %v3189_v37 = vadd.f32 %v1440_v35, %v1437_v36 }
 0xd42   : > { %v1549_v40 = vrot.slane %v3189_v37, 4  ;;  %v1650_v29 = vrot.slane %v3189_v37, 7 }
 0xd43   : > { %v1541_v42 = vpop.permute.xlu1 %1540 }
 0xd44   : > { %v1543_v46 = vmul.f32 %v1541_v42, %v1538_v38  ;;  %1550 = vrot.lane.b32.xlu0 %v1549_v40, %s2846_s19 }
 0xd46   : > { %v3194_v47 = vadd.f32 %v1546_v45, %v1543_v46 }
 0xd48   : > { %v1655_v48 = vrot.slane %v3194_v47, 3  ;;  %v1756_v38 = vrot.slane %v3194_v47, 1 }
 0xd4a   : > { %1656 = vrot.lane.b32.xlu1 %v1655_v48, %s2846_s19 }
 0xdb6   : > { %v1551_v50 = vpop.permute.xlu0 %1550 }
 0xdb7   : > { %2564 = vmatmul.mubr.msk.f32.vlgmr.msra.gmra.mrb[14].mxu0 %vm503_vm2, %v1551_v50 }
 0xdb8   : > { %2695 = vmatpush3.bf16.msra.mxu0 %v2961_v15  ;;  %2585 = vmatprep.mubr.msk.f32.mxu0 %vm2843_vm0, %v2842_v1 }
 0xdb9   : > { %2696 = vmatprep.subr.bf16.mxu0 %v2844_v16 }
 0xdbc   : > { %v1657_v52 = vpop.permute.xlu1 %1656  ;;  %2698 = vmatpush3.bf16.msra.mxu0 %v2982_v22 }
 0xdbd   : > { %2575 = vmatmul.mubr.msk.f32.vlgmr.msra.gmra.mrb[14].mxu1 %vm503_vm2, %v1657_v52  ;;  %2705 = vmatprep.subr.bf16.mxu0 %v2844_v16 }
 0xdbe   : > { %2701 = vmatpush3.bf16.msra.mxu1 %v2964_v17  ;;  %2596 = vmatprep.mubr.msk.f32.mxu1 %vm2843_vm0, %v2842_v1 }
 0xdbf   : > { %2702 = vmatprep.subr.bf16.mxu1 %v2844_v16 }
 0xdc2   : > { %2704 = vmatpush3.bf16.msra.mxu1 %v2986_v23 }
 0xdc3   : > { %2711 = vmatprep.subr.bf16.mxu1 %v2844_v16 }
 0xe8a   : > { %v1620_v53 = vpop.f32.mrb[14].mxu0 }
 0xe8b   : > { %v1621_v54 = vadd.f32 %v1620_v53, %v3014_v32  ;;  %v2565_v55 = vpop.f32.mrb[15].mxu0 }
 0xe8d   : > { %v1625_v58 = vrot.slane %v1621_v54, 3 }
 0xe8f   : > { %1634 = vrot.lane.b32.xlu0 %v1625_v58, %s2845_s14  ;;  %v1627_v63 = vadd.f32 %v1625_v58, %v3031_v43 }
 0xe90   : > { %v1726_v59 = vpop.f32.mrb[14].mxu1 }
 0xe91   : > { %v1727_v60 = vadd.f32 %v1726_v59, %v3019_v33  ;;  %v2576_v61 = vpop.f32.mrb[15].mxu1  ;;  %v2318_v2 = vmul.f32 -1.442695, %v1627_v63 }
 0xe93   : > { %v1731_v62 = vrot.slane %v1727_v60, 6  ;;  %2798 = vpow2.f32 %v2318_v2 }
 0xe95   : > { %1740 = vrot.lane.b32.xlu1 %v1731_v62, %s2845_s14  ;;  %v1733_v3 = vadd.f32 %v1731_v62, %v3033_v44 }
 0xe97   : > { %v2320_v4 = vmul.f32 -1.442695, %v1733_v3 }
 0xe99   : > { %2800 = vpow2.f32 %v2320_v4 }
 0xe9d   : > { %v2799_v5 = vpop.eup %2798 }
 0xe9e   : > { %v1631_v6 = vadd.f32 1.0, %v2799_v5 }
 0xea0   : > { %2802 = vrcp.f32 %v1631_v6 }
 0xea3   : > { %v2801_v7 = vpop.eup %2800 }
 0xea4   : > { %v1737_v8 = vadd.f32 1.0, %v2801_v7 }
 0xea6   : > { %2804 = vrcp.f32 %v1737_v8 }
 0xeaa   : > { %v2803_v9 = vpop.eup %2802 }
 0xeab   : > { %v1644_v28 = vsub.f32 1.0, %v2803_v9  ;;  %v1652_v31 = vmul.f32 %v2803_v9, %v1650_v29 }
 0xeb0   : > { %v2805_v14 = vpop.eup %2804 }
 0xeb1   : > { %v1750_v36 = vsub.f32 1.0, %v2805_v14  ;;  %v1758_v42 = vmul.f32 %v2805_v14, %v1756_v38 }
 0xf01   : > { %v1635_v10 = vpop.permute.xlu0 %1634 }
 0xf02   : > { %v1637_v12 = vmul.f32 %v2803_v9, %v1635_v10 }
 0xf04   : > { %1639 = vrot.lane.b32.xlu0 %v1637_v12, %s2845_s14 }
 0xf07   : > { %v1741_v18 = vpop.permute.xlu1 %1740 }
 0xf08   : > { %v1743_v19 = vmul.f32 %v2805_v14, %v1741_v18 }
 0xf0a   : > { %1745 = vrot.lane.b32.xlu1 %v1743_v19, %s2845_s14 }
 0xf76   : > { %v1640_v20 = vpop.permute.xlu0 %1639 }
 0xf77   : > { %v1642_v21 = vadd.f32 %v1640_v20, %v3031_v43 }
 0xf79   : > { %2806 = vtanh.f32 %v1642_v21 }
 0xf7c   : > { %v1746_v24 = vpop.permute.xlu1 %1745 }
 0xf7d   : > { %v1748_v25 = vadd.f32 %v1746_v24, %v3033_v44 }
 0xf7f   : > { %2808 = vtanh.f32 %v1748_v25 }
 0xf83   : > { %v2807_v26 = vpop.eup %2806 }
 0xf84   : > { %1646 = vrot.lane.b32.xlu0 %v2807_v26, %s2846_s19 }
 0xf89   : > { %v2809_v27 = vpop.eup %2808 }
 0xf8a   : > { %1752 = vrot.lane.b32.xlu1 %v2809_v27, %s2846_s19 }
 0xff6   : > { %v1647_v30 = vpop.permute.xlu0 %1646 }
 0xff7   : > { %v1649_v34 = vmul.f32 %v1647_v30, %v1644_v28 }
 0xff9   : > { %v3225_v35 = vadd.f32 %v1652_v31, %v1649_v34 }
 0xffb   : > { %v1761_v39 = vrot.slane %v3225_v35, 5  ;;  %v1862_v21 = vrot.slane %v3225_v35, 7 }
 0xffc   : > { %v1753_v40 = vpop.permute.xlu1 %1752 }
 0xffd   : > { %v1755_v45 = vmul.f32 %v1753_v40, %v1750_v36  ;;  %1762 = vrot.lane.b32.xlu0 %v1761_v39, %s2846_s19 }
 0xfff   : > { %v3230_v46 = vadd.f32 %v1758_v42, %v1755_v45 }
0x1001   : > { %v1867_v48 = vrot.slane %v3230_v46, 2  ;;  %v1968_v29 = vrot.slane %v3230_v46, 1 }
0x1003   : > { %1868 = vrot.lane.b32.xlu1 %v1867_v48, %s2846_s19 }
0x106f   : > { %v1763_v50 = vpop.permute.xlu0 %1762 }
0x1070   : > { %2586 = vmatmul.mubr.msk.f32.vlgmr.msra.gmra.mrb[16].mxu0 %vm503_vm2, %v1763_v50 }
0x1071   : > { %2707 = vmatpush3.bf16.msra.mxu0 %v2961_v15  ;;  %2607 = vmatprep.mubr.msk.f32.mxu0 %vm2843_vm0, %v2842_v1 }
0x1072   : > { %2708 = vmatprep.subr.bf16.mxu0 %v2844_v16 }
0x1075   : > { %v1869_v52 = vpop.permute.xlu1 %1868  ;;  %2710 = vmatpush3.bf16.msra.mxu0 %v2982_v22 }
0x1076   : > { %2597 = vmatmul.mubr.msk.f32.vlgmr.msra.gmra.mrb[16].mxu1 %vm503_vm2, %v1869_v52 }
0x1077   : > { %2713 = vmatpush3.bf16.msra.mxu1 %v2964_v17  ;;  %2618 = vmatprep.mubr.msk.f32.mxu1 %vm2843_vm0, %v2842_v1 }
0x1078   : > { %2714 = vmatprep.subr.bf16.mxu1 %v2844_v16 }
0x107b   : > { %2716 = vmatpush3.bf16.msra.mxu1 %v2986_v23 }
0x1143   : > { %v1832_v15 = vpop.f32.mrb[16].mxu0 }
0x1144   : > { %v1833_v53 = vadd.f32 %v1832_v15, %v3014_v32  ;;  %v2587_v54 = vpop.f32.mrb[17].mxu0 }
0x1146   : > { %v1837_v55 = vrot.slane %v1833_v53, 2 }
0x1148   : > { %1846 = vrot.lane.b32.xlu0 %v1837_v55, %s2845_s14  ;;  %v1839_v1 = vadd.f32 %v1837_v55, %v3031_v43 }
0x1149   : > { %v1938_v58 = vpop.f32.mrb[16].mxu1 }
0x114a   : > { %v1939_v22 = vadd.f32 %v1938_v58, %v3019_v33  ;;  %v2598_v59 = vpop.f32.mrb[17].mxu1  ;;  %v2322_v17 = vmul.f32 -1.442695, %v1839_v1 }
0x114c   : > { %v1943_v60 = vrot.slane %v1939_v22, 7  ;;  %2810 = vpow2.f32 %v2322_v17 }
0x114e   : > { %1952 = vrot.lane.b32.xlu1 %v1943_v60, %s2845_s14  ;;  %v1945_v16 = vadd.f32 %v1943_v60, %v3033_v44 }
0x1150   : > { %v2324_v23 = vmul.f32 -1.442695, %v1945_v16 }
0x1152   : > { %2812 = vpow2.f32 %v2324_v23 }
0x1156   : > { %v2811_v61 = vpop.eup %2810 }
0x1157   : > { %v1843_v62 = vadd.f32 1.0, %v2811_v61 }
0x1159   : > { %2814 = vrcp.f32 %v1843_v62 }
0x115c   : > { %v2813_v63 = vpop.eup %2812 }
0x115d   : > { %v1949_v2 = vadd.f32 1.0, %v2813_v63 }
0x115f   : > { %2816 = vrcp.f32 %v1949_v2 }
0x1163   : > { %v2815_v3 = vpop.eup %2814 }
0x1164   : > { %v1856_v20 = vsub.f32 1.0, %v2815_v3  ;;  %v1864_v25 = vmul.f32 %v2815_v3, %v1862_v21 }
0x1169   : > { %v2817_v6 = vpop.eup %2816 }
0x116a   : > { %v1962_v28 = vsub.f32 1.0, %v2817_v6  ;;  %v1970_v34 = vmul.f32 %v2817_v6, %v1968_v29 }
0x11ba   : > { %v1847_v4 = vpop.permute.xlu0 %1846 }
0x11bb   : > { %v1849_v5 = vmul.f32 %v2815_v3, %v1847_v4 }
0x11bd   : > { %1851 = vrot.lane.b32.xlu0 %v1849_v5, %s2845_s14 }
0x11c0   : > { %v1953_v7 = vpop.permute.xlu1 %1952 }
0x11c1   : > { %v1955_v8 = vmul.f32 %v2817_v6, %v1953_v7 }
0x11c3   : > { %1957 = vrot.lane.b32.xlu1 %v1955_v8, %s2845_s14 }
0x122f   : > { %v1852_v9 = vpop.permute.xlu0 %1851 }
0x1230   : > { %v1854_v10 = vadd.f32 %v1852_v9, %v3031_v43 }
0x1232   : > { %2818 = vtanh.f32 %v1854_v10 }
0x1235   : > { %v1958_v12 = vpop.permute.xlu1 %1957 }
0x1236   : > { %v1960_v14 = vadd.f32 %v1958_v12, %v3033_v44 }
0x1238   : > { %2820 = vtanh.f32 %v1960_v14 }
0x123c   : > { %v2819_v18 = vpop.eup %2818 }
0x123d   : > { %1858 = vrot.lane.b32.xlu0 %v2819_v18, %s2846_s19 }
0x1242   : > { %v2821_v19 = vpop.eup %2820 }
0x1243   : > { %1964 = vrot.lane.b32.xlu1 %v2821_v19, %s2846_s19 }
0x12af   : > { %v1859_v24 = vpop.permute.xlu0 %1858 }
0x12b0   : > { %v1861_v26 = vmul.f32 %v1859_v24, %v1856_v20 }
0x12b2   : > { %v3259_v27 = vadd.f32 %v1864_v25, %v1861_v26 }
0x12b4   : > { %v1973_v30 = vrot.slane %v3259_v27, 6 }
0x12b5   : > { %v1965_v31 = vpop.permute.xlu1 %1964 }
0x12b6   : > { %v1967_v36 = vmul.f32 %v1965_v31, %v1962_v28  ;;  %1974 = vrot.lane.b32.xlu0 %v1973_v30, %s2846_s19 }
0x12b8   : > { %v3264_v38 = vadd.f32 %v1970_v34, %v1967_v36 }
0x12ba   : > { %v2079_v39 = vrot.slane %v3264_v38, 1 }
0x12bc   : > { %2080 = vrot.lane.b32.xlu1 %v2079_v39, %s2846_s19 }
0x1328   : > { %v1975_v40 = vpop.permute.xlu0 %1974 }
0x1329   : > { %2608 = vmatmul.mubr.msk.f32.vlgmr.msra.gmra.mrb[18].mxu0 %vm503_vm2, %v1975_v40 }
0x132e   : > { %v2081_v42 = vpop.permute.xlu1 %2080 }
0x132f   : > { %2619 = vmatmul.mubr.msk.f32.vlgmr.msra.gmra.mrb[18].mxu1 %vm503_vm2, %v2081_v42 }
0x13fc   : > { %v2044_v45 = vpop.f32.mrb[18].mxu0 }
0x13fd   : > { %v2045_v48 = vadd.f32 %v2044_v45, %v3014_v32  ;;  %v2609_v50 = vpop.f32.mrb[19].mxu0 }
0x13ff   : > { %v2049_v52 = vrot.slane %v2045_v48, 1 }
0x1401   : > { %2058 = vrot.lane.b32.xlu0 %v2049_v52, %s2845_s14  ;;  %v2051_v55 = vadd.f32 %v2049_v52, %v3031_v43 }
0x1402   : > { %v2150_v15 = vpop.f32.mrb[18].mxu1 }
0x1403   : > { %v2151_v53 = vadd.f32 %v2150_v15, %v3019_v33  ;;  %v2620_v54 = vpop.f32.mrb[19].mxu1  ;;  %v2326_v58 = vmul.f32 -1.442695, %v2051_v55 }
0x1405   : > { %2162 = vrot.lane.b32.xlu1 %v2151_v53, %s2845_s14  ;;  %v2154_v22 = vadd.f32 %v2151_v53, %v3033_v44  ;;  %2822 = vpow2.f32 %v2326_v58 }
0x1407   : > { %v2328_v59 = vmul.f32 -1.442695, %v2154_v22 }
0x1409   : > { %2824 = vpow2.f32 %v2328_v59 }
0x140f   : > { %v2823_v60 = vpop.eup %2822 }
0x1410   : > { %v2055_v32 = vadd.f32 1.0, %v2823_v60 }
0x1412   : > { %2826 = vrcp.f32 %v2055_v32 }
0x1413   : > { %v2825_v1 = vpop.eup %2824 }
0x1414   : > { %v2158_v17 = vadd.f32 1.0, %v2825_v1 }
0x1416   : > { %2828 = vrcp.f32 %v2158_v17 }
0x141c   : > { %v2827_v16 = vpop.eup %2826 }
0x1420   : > { %v2829_v61 = vpop.eup %2828 }
0x1421   : > { %v2179_v14 = vmul.f32 %v2829_v61, %v2079_v39 }
0x1473   : > { %v2059_v23 = vpop.permute.xlu0 %2058 }
0x1474   : > { %v2061_v33 = vmul.f32 %v2827_v16, %v2059_v23 }
0x1476   : > { %2063 = vrot.lane.b32.xlu0 %v2061_v33, %s2845_s14 }
0x1477   : > { %v2163_v62 = vpop.permute.xlu1 %2162 }
0x1478   : > { %v2165_v63 = vmul.f32 %v2829_v61, %v2163_v62 }
0x147a   : > { %2167 = vrot.lane.b32.xlu1 %v2165_v63, %s2845_s14 }
0x14e8   : > { %v2064_v2 = vpop.permute.xlu0 %2063 }
0x14e9   : > { %v2066_v3 = vadd.f32 %v2064_v2, %v3031_v43  ;;  %v2068_v43 = vsub.f32 1.0, %v2827_v16 }
0x14eb   : > { %2830 = vtanh.f32 %v2066_v3 }
0x14ec   : > { %v2168_v4 = vpop.permute.xlu1 %2167 }
0x14ed   : > { %v2170_v5 = vadd.f32 %v2168_v4, %v3033_v44  ;;  %v2074_v44 = vrot.slane %v3259_v27, 7 }
0x14ef   : > { %2832 = vtanh.f32 %v2170_v5 }
0x14f5   : > { %v2831_v6 = vpop.eup %2830 }
0x14f6   : > { %2070 = vrot.lane.b32.xlu0 %v2831_v6, %s2846_s19 }
0x14f9   : > { %v2833_v7 = vpop.eup %2832 }
0x14fa   : > { %2174 = vrot.lane.b32.xlu1 %v2833_v7, %s2846_s19  ;;  %2183 = vrot.lane.b32.xlu0 %v3081_v57, %s2846_s19  ;;  %v2076_v57 = vmul.f32 %v2827_v16, %v2074_v44 }
0x14fe   : > { %2187 = vrot.lane.b32.xlu1 %v3117_v49, %s2846_s19  ;;  %2191 = vrot.lane.b32.xlu0 %v3153_v41, %s2846_s19  ;;  %v2172_v41 = vsub.f32 1.0, %v2829_v61 }
0x1502   : > { %2195 = vrot.lane.b32.xlu1 %v3189_v37, %s2846_s19  ;;  %2199 = vrot.lane.b32.xlu0 %v3225_v35, %s2846_s19 }
0x1506   : > { %2203 = vrot.lane.b32.xlu1 %v3259_v27, %s2846_s19 }
0x1568   : > { %v2071_v8 = vpop.permute.xlu0 %2070 }
0x1569   : > { %v2073_v9 = vmul.f32 %v2071_v8, %v2068_v43 }
0x156b   : > { %v2077_v10 = vadd.f32 %v2076_v57, %v2073_v9 }
0x156c   : > { %v2175_v49 = vpop.permute.xlu1 %2174  ;;  %v2184_v18 = vpop.permute.xlu0 %2183 }
0x156d   : > { %2208 = vrot.lane.b32.xlu0 %v2077_v10, %s2846_s19  ;;  %v2177_v12 = vmul.f32 %v2175_v49, %v2172_v41  ;;  %v2186_v20 = vsel %vm503_vm2, %v2184_v18, %v3264_v38 }
0x156f   : > { %v2180_v37 = vadd.f32 %v2179_v14, %v2177_v12 }
0x1570   : > { %v2188_v19 = vpop.permute.xlu1 %2187  ;;  %v2192_v25 = vpop.permute.xlu0 %2191 }
0x1571   : > { %v2182_v35 = vsel %vm503_vm2, %v3051_v13, %v2180_v37  ;;  %v2190_v24 = vsel %vm503_vm2, %v2188_v19, %v3230_v46  ;;  %v2194_v28 = vsel %vm503_vm2, %v2192_v25, %v3194_v47 }
0x1572   : > { %v2213_v21 = vsel %vm2212_vm3, %v2182_v35, %v2186_v20 }
0x1573   : > { %v2215_v27 = vsel %vm2214_vm4, %v2213_v21, %v2190_v24 }
0x1574   : > { %v2196_v26 = vpop.permute.xlu1 %2195  ;;  %v2217_v29 = vsel %vm2216_vm5, %v2215_v27, %v2194_v28  ;;  %v2200_v30 = vpop.permute.xlu0 %2199 }
0x1575   : > { %v2198_v13 = vsel %vm503_vm2, %v2196_v26, %v3158_v51  ;;  %v2202_v46 = vsel %vm503_vm2, %v2200_v30, %v3122_v56 }
0x1576   : > { %v2219_v34 = vsel %vm2218_vm6, %v2217_v29, %v2198_v13 }
0x1577   : > { %v2221_v38 = vsel %vm2220_vm7, %v2219_v34, %v2202_v46 }
0x1578   : > { %v2204_v31 = vpop.permute.xlu1 %2203 }
0x1579   : > { %v2206_v36 = vsel %vm503_vm2, %v2204_v31, %v3086_v0 }
0x157a   : > { %v2223_v51 = vsel %vm2222_vm8, %v2221_v38, %v2206_v36 }
0x15df   : > { %v2209_v47 = vpop.permute.xlu0 %2208 }
0x15e0   : > { %v2211_v39 = vsel %vm503_vm2, %v2209_v47, %v3047_v11 }
0x15e1   : > { %v2225_v40 = vsel %vm2224_vm9, %v2223_v51, %v2211_v39 }
0x15e2   : > { %2226 = vst.msk [vmem:[%s327_s23] sm:$0xff] %vm370_vm1, %v2225_v40 }
0x15e3 PF: > { %s19_s30 = sadd.s32 1, %s2840_s30  }
0x15e4   : > { %p16_p4 = scmp.ge.s32.totalorder %s19_s30, 4  }
0x15e6   :  { %18 = sbr.rel (!%p16_p4) target bundleno = 1 (0x1), region = 86 }

// kernel: forward.6
= control target key start
LH: loop header
LB: loop body
LE: loop exit
PB: predicated region body
PF: predicated region fallthrough
CT: control target
= control target key end

     0   :  { %s2620_s30 = smov 0   ;;  %s3001_s0 = inlined_call_operand.vmem [shape: f32[2,7,64], index: 0, kind: input, shape index: {}]   ;;  %s3002_s1 = inlined_call_operand.vmem [shape: bf16[64,96], index: 1, kind: input, shape index: {}]   ;;  %s3003_s2 = inlined_call_operand.vmem [shape: bf16[64,96], index: 2, kind: input, shape index: {}]   ;;  %s3004_s3 = inlined_call_operand.vmem [shape: f32[32,96], index: 3, kind: input, shape index: {}]   ;;  %s3005_s4 = inlined_call_operand.vmem [shape: f32[32,96], index: 4, kind: input, shape index: {}]   ;;  %s3006_s5 = inlined_call_operand.vmem [shape: f32[1,96], index: 5, kind: input, shape index: {}]   ;;  %s3007_s6 = inlined_call_operand.vmem [shape: f32[1,96], index: 6, kind: input, shape index: {}]   ;;  %s3008_s7 = inlined_call_operand.vmem [shape: f32[1,96], index: 7, kind: input, shape index: {}]   ;;  %s3009_s8 = inlined_call_operand.vmem [shape: f32[1,96], index: 8, kind: input, shape index: {}]   ;;  %s3010_s9 = inlined_call_operand.vmem [shape: f32[2,7,64], index: 9, kind: output, shape index: {}]  }
   0x1 LB: > { %s2063_s10 = sadd.s32 4294967295, %s2563_s30   ;;  %p2067_p0 = scmp.ge.s32.totalorder %s2563_s30, 1  ;;  %s2563_s30 = sphi %s2620_s30, %s19_s30  }
   0x2   : > { %p286_p1 = scmp.lt.s32.totalorder %s2563_s30, 3 }
   0x4   : > { %p287_p2 = pnand %p2067_p0, %p286_p1 }
   0x5   : > { %v2465_v0 = vld [vmem:[%s3002_s1] sm:$0xff] (!%p287_p2)   ;;  %v2565_v1 = vmov (!%p287_p2), 0.0   ;;  %v2467_v3 = vld [vmem:[%s3002_s1 + $0x8] sm:$0xff] (!%p287_p2)   ;;  %vm2566_vm0 = vmmov (!%p287_p2), 0   ;;  %p320_p3 = scmp.lt.s32.totalorder (!%p287_p2), %s2063_s10, 1  ;;  %v2469_v5 = vld [vmem:[%s3002_s1 + $0x10] sm:$0xff] (!%p287_p2)  }
   0x6   : > { %290 = sbr.rel (%p287_p2) target bundleno = 4906 (0x132a), region = 56  ;;  %2190 = vmatprep.subr.bf16.mxu0 (!%p287_p2), %v2565_v1  ;;  %2202 = vmatprep.subr.bf16.mxu1 (!%p287_p2), %v2565_v1  ;;  %v2466_v2 = vld [vmem:[%s3003_s2] sm:$0xff] (!%p287_p2)   ;;  %v2468_v4 = vld [vmem:[%s3003_s2 + $0x8] sm:$0xff] (!%p287_p2)   ;;  %v2470_v6 = vld [vmem:[%s3003_s2 + $0x10] sm:$0xff] (!%p287_p2)   ;;  %vm370_vm1 = vcmask (!%p287_p2), 523264   ;;  %v2567_v16 = vmov (!%p287_p2), 0.0|0.0  }
   0x7   : > { %2191 = vmatpush3.bf16.msra.mxu0 (!%p287_p2), %v2465_v0  ;;  %2198 = vmatprep.mubr.msk.bf16.mxu0 (!%p287_p2), %vm2566_vm0, %v2565_v1  ;;  %v2471_v7 = vld [vmem:[%s3002_s1 + $0x18] sm:$0xff] (!%p287_p2)   ;;  %v493_v10 = vld [vmem:[%s3004_s3] sm:$0xff] (!%p287_p2)  ;;  %v494_v11 = vld [vmem:[%s3004_s3 + $0x8] sm:$0xff] (!%p287_p2)  ;;  %s2568_s14 = smov (!%p287_p2), 64   ;;  %s2569_s19 = smov (!%p287_p2), 96   ;;  %vm503_vm2 = vcmask (!%p287_p2), 261120  }
   0x8   : > { %2203 = vmatpush3.bf16.msra.mxu1 (!%p287_p2), %v2466_v2  ;;  %2192 = vmatprep.subr.bf16.mxu0 (!%p287_p2), %v2565_v1  ;;  %v2472_v9 = vld [vmem:[%s3003_s2 + $0x18] sm:$0xff] (!%p287_p2)   ;;  %v497_v12 = vld [vmem:[%s3005_s4] sm:$0xff] (!%p287_p2)  ;;  %v498_v13 = vld [vmem:[%s3005_s4 + $0x8] sm:$0xff] (!%p287_p2)  ;;  %v2684_v15 = vpack.c.bf16 (!%p287_p2), %v494_v11, %v493_v10  ;;  %vm1996_vm3 = vcmask (!%p287_p2), 1040384   ;;  %vm1998_vm4 = vcmask (!%p287_p2), 1041408   ;;  %vm2000_vm5 = vcmask (!%p287_p2), 1042432  }
   0x9   : > { %2204 = vmatprep.subr.bf16.mxu1 (!%p287_p2), %v2565_v1  ;;  %2210 = vmatprep.mubr.msk.bf16.mxu1 (!%p287_p2), %vm2566_vm0, %v2565_v1  ;;  %v2687_v17 = vpack.c.bf16 (!%p287_p2), %v498_v13, %v497_v12  ;;  %v495_v18 = vld [vmem:[%s3004_s3 + $0x10] sm:$0xff] (!%p287_p2)  ;;  %v496_v19 = vld [vmem:[%s3004_s3 + $0x18] sm:$0xff] (!%p287_p2)  ;;  %v2735_v32 = vld [vmem:[%s3008_s7] sm:$0x1] (!%p287_p2)  ;;  %vm2002_vm6 = vcmask (!%p287_p2), 1043456   ;;  %vm2004_vm7 = vcmask (!%p287_p2), 1044480  }
   0xa   : > { %v499_v20 = vld [vmem:[%s3005_s4 + $0x10] sm:$0xff] (!%p287_p2)  ;;  %v500_v21 = vld [vmem:[%s3005_s4 + $0x18] sm:$0xff] (!%p287_p2)  ;;  %v2703_v22 = vpack.c.bf16 (!%p287_p2), %v496_v19, %v495_v18  ;;  %v2740_v33 = vld [vmem:[%s3009_s8] sm:$0x1] (!%p287_p2)  ;;  %vm2006_vm8 = vcmask (!%p287_p2), 1045504   ;;  %vm2008_vm9 = vcmask (!%p287_p2), 522240  }
   0xb   : > { %2193 = vmatpush3.bf16.msra.mxu0 (!%p287_p2), %v2467_v3  ;;  %v2707_v23 = vpack.c.bf16 (!%p287_p2), %v500_v21, %v499_v20  ;;  %v2070_v41 = vld [vmem:[%s3006_s5] ss:$0 sm:$0xff] (!%p287_p2) }
   0xc   : > { %2205 = vmatpush3.bf16.msra.mxu1 (!%p287_p2), %v2468_v4  ;;  %2194 = vmatprep.subr.bf16.mxu0 (!%p287_p2), %v2565_v1  ;;  %v2076_v42 = vld [vmem:[%s3007_s6] ss:$0 sm:$0xff] (!%p287_p2) }
   0xd   : > { %s3012_s10 = smov (!%p320_p3, %s2063_s10), 1  ;;  %2206 = vmatprep.subr.bf16.mxu1 %v2565_v1 }
   0xe   : > { %s2068_s21 = sshll.u32 %s3012_s10, 3 }
   0xf   : > { %s323_s26 = scalar_lea.vmem %s3001_s0, %s2068_s21  ;;  %2195 = vmatpush3.bf16.msra.mxu0 %v2469_v5  ;;  %s327_s23 = scalar_lea.vmem %s3010_s9, %s2068_s21 }
  0x10   : > { %v329_v8 = vld [vmem:[%s323_s26] sm:$0x7f]  ;;  %2207 = vmatpush3.bf16.msra.mxu1 %v2470_v6  ;;  %2196 = vmatprep.subr.bf16.mxu0 %v2565_v1 }
  0x11   : > { %2208 = vmatprep.subr.bf16.mxu1 %v2565_v1  ;;  %v330_v14 = vpack.c.bf16 %v329_v8, %v329_v8 }
  0x13   : > { %2197 = vmatpush3.bf16.msra.mxu0 %v2471_v7 }
  0x14   : > { %2209 = vmatpush3.bf16.msra.mxu1 %v2472_v9  ;;  %2368 = vmatprep.subr.bf16.mxu0 %v2567_v16 }
  0x15   : > { %2374 = vmatprep.subr.bf16.mxu1 %v2567_v16 }
  0x16   : > { %2199 = vmatmul.mubr.msk.bf16.vlgmr.msra.gmra.mrb[0].mxu0 %vm370_vm1, %v330_v14 }
  0x17   : > { %2370 = vmatpush3.bf16.msra.mxu0 %v2684_v15  ;;  %2211 = vmatmul.mubr.msk.bf16.vlgmr.msra.gmra.mrb[0].mxu1 %vm370_vm1, %v330_v14 }
  0x18   : > { %2376 = vmatpush3.bf16.msra.mxu1 %v2687_v17  ;;  %2371 = vmatprep.subr.bf16.mxu0 %v2567_v16 }
  0x19   : > { %2377 = vmatprep.subr.bf16.mxu1 %v2567_v16  ;;  %2222 = vmatprep.mubr.msk.f32.mxu0 %vm2566_vm0, %v2565_v1 }
  0x1a   : > { %2233 = vmatprep.mubr.msk.f32.mxu1 %vm2566_vm0, %v2565_v1 }
  0x1b   : > { %2373 = vmatpush3.bf16.msra.mxu0 %v2703_v22 }
  0x1c   : > { %2379 = vmatpush3.bf16.msra.mxu1 %v2707_v23  ;;  %2380 = vmatprep.subr.bf16.mxu0 %v2567_v16 }
  0x1d   : > { %2386 = vmatprep.subr.bf16.mxu1 %v2567_v16 }
  0x1e   : > { %2223 = vmatmul.mubr.f32.vlgmr.msra.gmra.mrb[4].mxu0 %v2565_v1 }
  0x1f   : > { %2234 = vmatmul.mubr.f32.vlgmr.msra.gmra.mrb[4].mxu1 %v2565_v1  ;;  %2382 = vmatpush3.bf16.msra.mxu0 %v2684_v15 }
  0x20   : > { %2383 = vmatprep.subr.bf16.mxu0 %v2567_v16  ;;  %2244 = vmatprep.mubr.msk.f32.mxu0 %vm2566_vm0, %v2565_v1 }
  0x21   : > { %2388 = vmatpush3.bf16.msra.mxu1 %v2687_v17  ;;  %2255 = vmatprep.mubr.msk.f32.mxu1 %vm2566_vm0, %v2565_v1 }
  0x22   : > { %2389 = vmatprep.subr.bf16.mxu1 %v2567_v16 }
  0x23   : > { %2385 = vmatpush3.bf16.msra.mxu0 %v2703_v22 }
  0x24   : > { %2392 = vmatprep.subr.bf16.mxu0 %v2567_v16 }
  0x25   : > { %2391 = vmatpush3.bf16.msra.mxu1 %v2707_v23 }
  0x26   : > { %2398 = vmatprep.subr.bf16.mxu1 %v2567_v16 }
  0xe9   : > { %v408_v24 = vpop.f32.mrb[0].mxu0 }
  0xea   : > { %v2200_v25 = vpop.f32.mrb[1].mxu0  ;;  %v487_v26 = vpop.f32.mrb[0].mxu1  ;;  %v2752_v43 = vadd.f32 %v2070_v41, %v408_v24 }
  0xeb   : > { %v411_v27 = vpop.f32.mrb[2].mxu0  ;;  %v2212_v28 = vpop.f32.mrb[1].mxu1  ;;  %v2754_v44 = vadd.f32 %v2076_v42, %v487_v26 }
  0xec   : > { %v2201_v29 = vpop.f32.mrb[3].mxu0  ;;  %v490_v30 = vpop.f32.mrb[2].mxu1 }
  0xed   : > { %v2213_v31 = vpop.f32.mrb[3].mxu1 }
  0xf1   : > { %v573_v34 = vpop.f32.mrb[4].mxu0 }
  0xf2   : > { %v574_v35 = vadd.f32 %v573_v34, %v2735_v32  ;;  %v2224_v36 = vpop.f32.mrb[5].mxu0  ;;  %v669_v37 = vpop.f32.mrb[4].mxu1 }
  0xf3   : > { %v670_v38 = vadd.f32 %v669_v37, %v2740_v33  ;;  %v2235_v39 = vpop.f32.mrb[5].mxu1 }
  0xf4   : > { %585 = vrot.lane.b32.xlu0 %v574_v35, %s2568_s14  ;;  %v577_v45 = vadd.f32 %v574_v35, %v2752_v43 }
  0xf5   : > { %v674_v40 = vrot.slane %v670_v38, 2 }
  0xf6   : > { %v2082_v47 = vmul.f32 -1.442695, %v577_v45 }
  0xf7   : > { %v676_v46 = vadd.f32 %v674_v40, %v2754_v44 }
  0xf8   : > { %683 = vrot.lane.b32.xlu0 %v674_v40, %s2568_s14  ;;  %2473 = vpow2.f32 %v2082_v47 }
  0xf9   : > { %v2083_v48 = vmul.f32 -1.442695, %v676_v46 }
  0xfb   : > { %2475 = vpow2.f32 %v2083_v48 }
 0x102   : > { %v2474_v49 = vpop.eup %2473 }
 0x103   : > { %v581_v51 = vadd.f32 1.0, %v2474_v49 }
 0x105   : > { %v2476_v50 = vpop.eup %2475  ;;  %2477 = vrcp.f32 %v581_v51 }
 0x106   : > { %v680_v52 = vadd.f32 1.0, %v2476_v50 }
 0x108   : > { %2479 = vrcp.f32 %v680_v52 }
 0x10f   : > { %v2478_v53 = vpop.eup %2477 }
 0x110   : > { %v595_v2 = vsub.f32 1.0, %v2478_v53  ;;  %v601_v4 = vmul.f32 0.0, %v2478_v53 }
 0x112   : > { %v2480_v56 = vpop.eup %2479 }
 0x113   : > { %v693_v7 = vsub.f32 1.0, %v2480_v56  ;;  %v699_v9 = vmul.f32 0.0, %v2480_v56 }
 0x166   : > { %v586_v54 = vpop.permute.xlu0 %585 }
 0x167   : > { %v588_v55 = vmul.f32 %v2478_v53, %v586_v54 }
 0x169   : > { %590 = vrot.lane.b32.xlu1 %v588_v55, %s2568_s14 }
 0x16a   : > { %v684_v57 = vpop.permute.xlu0 %683 }
 0x16b   : > { %v686_v58 = vmul.f32 %v2480_v56, %v684_v57 }
 0x16d   : > { %688 = vrot.lane.b32.xlu1 %v686_v58, %s2568_s14 }
 0x1db   : > { %v591_v59 = vpop.permute.xlu1 %590 }
 0x1dc   : > { %v593_v60 = vadd.f32 %v591_v59, %v2752_v43 }
 0x1de   : > { %2481 = vtanh.f32 %v593_v60 }
 0x1df   : > { %v689_v61 = vpop.permute.xlu1 %688 }
 0x1e0   : > { %v691_v62 = vadd.f32 %v689_v61, %v2754_v44 }
 0x1e2   : > { %2483 = vtanh.f32 %v691_v62 }
 0x1e8   : > { %v2482_v63 = vpop.eup %2481 }
 0x1e9   : > { %597 = vrot.lane.b32.xlu0 %v2482_v63, %s2569_s19 }
 0x1ec   : > { %v2484_v0 = vpop.eup %2483 }
 0x1ed   : > { %695 = vrot.lane.b32.xlu1 %v2484_v0, %s2569_s19 }
 0x25b   : > { %v598_v3 = vpop.permute.xlu0 %597 }
 0x25c   : > { %v600_v5 = vmul.f32 %v598_v3, %v595_v2 }
 0x25e   : > { %v2764_v6 = vadd.f32 %v601_v4, %v600_v5 }
 0x25f   : > { %v696_v8 = vpop.permute.xlu1 %695 }
 0x260   : > { %v698_v10 = vmul.f32 %v696_v8, %v693_v7  ;;  %702 = vrot.lane.b32.xlu0 %v2764_v6, %s2569_s19  ;;  %v802_v52 = vrot.slane %v2764_v6, 7 }
 0x262   : > { %v2768_v11 = vadd.f32 %v699_v9, %v698_v10 }
 0x264   : > { %v807_v12 = vrot.slane %v2768_v11, 6  ;;  %v908_v59 = vrot.slane %v2768_v11, 1 }
 0x266   : > { %808 = vrot.lane.b32.xlu1 %v807_v12, %s2569_s19 }
 0x2d2   : > { %v2772_v13 = vpop.permute.xlu0 %702 }
 0x2d3   : > { %2245 = vmatmul.mubr.msk.f32.vlgmr.msra.gmra.mrb[6].mxu0 %vm503_vm2, %v2772_v13 }
 0x2d4   : > { %2394 = vmatpush3.bf16.msra.mxu0 %v2684_v15  ;;  %2266 = vmatprep.mubr.msk.f32.mxu0 %vm2566_vm0, %v2565_v1 }
 0x2d5   : > { %2395 = vmatprep.subr.bf16.mxu0 %v2567_v16 }
 0x2d8   : > { %v809_v14 = vpop.permute.xlu1 %808  ;;  %2397 = vmatpush3.bf16.msra.mxu0 %v2703_v22 }
 0x2d9   : > { %2256 = vmatmul.mubr.msk.f32.vlgmr.msra.gmra.mrb[6].mxu1 %vm503_vm2, %v809_v14  ;;  %2404 = vmatprep.subr.bf16.mxu0 %v2567_v16 }
 0x2da   : > { %2400 = vmatpush3.bf16.msra.mxu1 %v2687_v17  ;;  %2277 = vmatprep.mubr.msk.f32.mxu1 %vm2566_vm0, %v2565_v1 }
 0x2db   : > { %2401 = vmatprep.subr.bf16.mxu1 %v2567_v16 }
 0x2de   : > { %2403 = vmatpush3.bf16.msra.mxu1 %v2707_v23 }
 0x2df   : > { %2410 = vmatprep.subr.bf16.mxu1 %v2567_v16 }
 0x3a6   : > { %v772_v18 = vpop.f32.mrb[6].mxu0 }
 0x3a7   : > { %v773_v19 = vadd.f32 %v772_v18, %v2735_v32  ;;  %v2246_v20 = vpop.f32.mrb[7].mxu0 }
 0x3a9   : > { %v777_v21 = vrot.slane %v773_v19, 7 }
 0x3ab   : > { %786 = vrot.lane.b32.xlu0 %v777_v21, %s2568_s14  ;;  %v779_v28 = vadd.f32 %v777_v21, %v2752_v43 }
 0x3ac   : > { %v878_v24 = vpop.f32.mrb[6].mxu1 }
 0x3ad   : > { %v879_v25 = vadd.f32 %v878_v24, %v2740_v33  ;;  %v2257_v26 = vpop.f32.mrb[7].mxu1  ;;  %v2085_v29 = vmul.f32 -1.442695, %v779_v28 }
 0x3af   : > { %v883_v27 = vrot.slane %v879_v25, 3  ;;  %2485 = vpow2.f32 %v2085_v29 }
 0x3b1   : > { %892 = vrot.lane.b32.xlu1 %v883_v27, %s2568_s14  ;;  %v885_v30 = vadd.f32 %v883_v27, %v2754_v44 }
 0x3b3   : > { %v2087_v31 = vmul.f32 -1.442695, %v885_v30 }
 0x3b5   : > { %2487 = vpow2.f32 %v2087_v31 }
 0x3b9   : > { %v2486_v34 = vpop.eup %2485 }
 0x3ba   : > { %v783_v35 = vadd.f32 1.0, %v2486_v34 }
 0x3bc   : > { %2489 = vrcp.f32 %v783_v35 }
 0x3bf   : > { %v2488_v36 = vpop.eup %2487 }
 0x3c0   : > { %v889_v37 = vadd.f32 1.0, %v2488_v36 }
 0x3c2   : > { %2491 = vrcp.f32 %v889_v37 }
 0x3c6   : > { %v2490_v38 = vpop.eup %2489 }
 0x3c7   : > { %v796_v53 = vsub.f32 1.0, %v2490_v38  ;;  %v804_v55 = vmul.f32 %v2490_v38, %v802_v52 }
 0x3cc   : > { %v2492_v41 = vpop.eup %2491 }
 0x3cd   : > { %v902_v58 = vsub.f32 1.0, %v2492_v41  ;;  %v910_v62 = vmul.f32 %v2492_v41, %v908_v59 }
 0x41d   : > { %v787_v39 = vpop.permute.xlu0 %786 }
 0x41e   : > { %v789_v40 = vmul.f32 %v2490_v38, %v787_v39 }
 0x420   : > { %791 = vrot.lane.b32.xlu0 %v789_v40, %s2568_s14 }
 0x423   : > { %v893_v42 = vpop.permute.xlu1 %892 }
 0x424   : > { %v895_v45 = vmul.f32 %v2492_v41, %v893_v42 }
 0x426   : > { %897 = vrot.lane.b32.xlu1 %v895_v45, %s2568_s14 }
 0x492   : > { %v792_v46 = vpop.permute.xlu0 %791 }
 0x493   : > { %v794_v47 = vadd.f32 %v792_v46, %v2752_v43 }
 0x495   : > { %2493 = vtanh.f32 %v794_v47 }
 0x498   : > { %v898_v48 = vpop.permute.xlu1 %897 }
 0x499   : > { %v900_v49 = vadd.f32 %v898_v48, %v2754_v44 }
 0x49b   : > { %2495 = vtanh.f32 %v900_v49 }
 0x49f   : > { %v2494_v50 = vpop.eup %2493 }
 0x4a0   : > { %798 = vrot.lane.b32.xlu0 %v2494_v50, %s2569_s19 }
 0x4a5   : > { %v2496_v51 = vpop.eup %2495 }
 0x4a6   : > { %904 = vrot.lane.b32.xlu1 %v2496_v51, %s2569_s19 }
 0x512   : > { %v799_v54 = vpop.permute.xlu0 %798 }
 0x513   : > { %v801_v56 = vmul.f32 %v799_v54, %v796_v53 }
 0x515   : > { %v2802_v57 = vadd.f32 %v804_v55, %v801_v56 }
 0x517   : > { %v913_v60 = vrot.slane %v2802_v57, 1  ;;  %v1014_v45 = vrot.slane %v2802_v57, 7 }
 0x518   : > { %v905_v61 = vpop.permute.xlu1 %904 }
 0x519   : > { %v907_v63 = vmul.f32 %v905_v61, %v902_v58  ;;  %914 = vrot.lane.b32.xlu0 %v913_v60, %s2569_s19 }
 0x51b   : > { %v2807_v0 = vadd.f32 %v910_v62, %v907_v63 }
 0x51d   : > { %v1019_v2 = vrot.slane %v2807_v0, 5  ;;  %v1120_v51 = vrot.slane %v2807_v0, 1 }
 0x51f   : > { %1020 = vrot.lane.b32.xlu1 %v1019_v2, %s2569_s19 }
 0x58b   : > { %v915_v3 = vpop.permute.xlu0 %914 }
 0x58c   : > { %2267 = vmatmul.mubr.msk.f32.vlgmr.msra.gmra.mrb[8].mxu0 %vm503_vm2, %v915_v3 }
 0x58d   : > { %2406 = vmatpush3.bf16.msra.mxu0 %v2684_v15  ;;  %2288 = vmatprep.mubr.msk.f32.mxu0 %vm2566_vm0, %v2565_v1 }
 0x58e   : > { %2407 = vmatprep.subr.bf16.mxu0 %v2567_v16 }
 0x591   : > { %v1021_v4 = vpop.permute.xlu1 %1020  ;;  %2409 = vmatpush3.bf16.msra.mxu0 %v2703_v22 }
 0x592   : > { %2278 = vmatmul.mubr.msk.f32.vlgmr.msra.gmra.mrb[8].mxu1 %vm503_vm2, %v1021_v4  ;;  %2416 = vmatprep.subr.bf16.mxu0 %v2567_v16 }
 0x593   : > { %2412 = vmatpush3.bf16.msra.mxu1 %v2687_v17  ;;  %2299 = vmatprep.mubr.msk.f32.mxu1 %vm2566_vm0, %v2565_v1 }
 0x594   : > { %2413 = vmatprep.subr.bf16.mxu1 %v2567_v16 }
 0x597   : > { %2415 = vmatpush3.bf16.msra.mxu1 %v2707_v23 }
 0x598   : > { %2422 = vmatprep.subr.bf16.mxu1 %v2567_v16 }
 0x65f   : > { %v984_v5 = vpop.f32.mrb[8].mxu0 }
 0x660   : > { %v985_v6 = vadd.f32 %v984_v5, %v2735_v32  ;;  %v2268_v7 = vpop.f32.mrb[9].mxu0 }
 0x662   : > { %v989_v8 = vrot.slane %v985_v6, 6 }
 0x664   : > { %998 = vrot.lane.b32.xlu0 %v989_v8, %s2568_s14  ;;  %v991_v18 = vadd.f32 %v989_v8, %v2752_v43 }
 0x665   : > { %v1090_v9 = vpop.f32.mrb[8].mxu1 }
 0x666   : > { %v1091_v10 = vadd.f32 %v1090_v9, %v2740_v33  ;;  %v2279_v12 = vpop.f32.mrb[9].mxu1  ;;  %v2089_v19 = vmul.f32 -1.442695, %v991_v18 }
 0x668   : > { %v1095_v14 = vrot.slane %v1091_v10, 4  ;;  %2497 = vpow2.f32 %v2089_v19 }
 0x66a   : > { %1104 = vrot.lane.b32.xlu1 %v1095_v14, %s2568_s14  ;;  %v1097_v20 = vadd.f32 %v1095_v14, %v2754_v44 }
 0x66c   : > { %v2091_v21 = vmul.f32 -1.442695, %v1097_v20 }
 0x66e   : > { %2499 = vpow2.f32 %v2091_v21 }
 0x672   : > { %v2498_v24 = vpop.eup %2497 }
 0x673   : > { %v995_v25 = vadd.f32 1.0, %v2498_v24 }
 0x675   : > { %2501 = vrcp.f32 %v995_v25 }
 0x678   : > { %v2500_v26 = vpop.eup %2499 }
 0x679   : > { %v1101_v27 = vadd.f32 1.0, %v2500_v26 }
 0x67b   : > { %2503 = vrcp.f32 %v1101_v27 }
 0x67f   : > { %v2502_v28 = vpop.eup %2501 }
 0x680   : > { %v1008_v42 = vsub.f32 1.0, %v2502_v28  ;;  %v1016_v47 = vmul.f32 %v2502_v28, %v1014_v45 }
 0x685   : > { %v2504_v31 = vpop.eup %2503 }
 0x686   : > { %v1114_v50 = vsub.f32 1.0, %v2504_v31  ;;  %v1122_v54 = vmul.f32 %v2504_v31, %v1120_v51 }
 0x6d6   : > { %v999_v29 = vpop.permute.xlu0 %998 }
 0x6d7   : > { %v1001_v30 = vmul.f32 %v2502_v28, %v999_v29 }
 0x6d9   : > { %1003 = vrot.lane.b32.xlu0 %v1001_v30, %s2568_s14 }
 0x6dc   : > { %v1105_v34 = vpop.permute.xlu1 %1104 }
 0x6dd   : > { %v1107_v35 = vmul.f32 %v2504_v31, %v1105_v34 }
 0x6df   : > { %1109 = vrot.lane.b32.xlu1 %v1107_v35, %s2568_s14 }
 0x74b   : > { %v1004_v36 = vpop.permute.xlu0 %1003 }
 0x74c   : > { %v1006_v37 = vadd.f32 %v1004_v36, %v2752_v43 }
 0x74e   : > { %2505 = vtanh.f32 %v1006_v37 }
 0x751   : > { %v1110_v38 = vpop.permute.xlu1 %1109 }
 0x752   : > { %v1112_v39 = vadd.f32 %v1110_v38, %v2754_v44 }
 0x754   : > { %2507 = vtanh.f32 %v1112_v39 }
 0x758   : > { %v2506_v40 = vpop.eup %2505 }
 0x759   : > { %1010 = vrot.lane.b32.xlu0 %v2506_v40, %s2569_s19 }
 0x75e   : > { %v2508_v41 = vpop.eup %2507 }
 0x75f   : > { %1116 = vrot.lane.b32.xlu1 %v2508_v41, %s2569_s19 }
 0x7cb   : > { %v1011_v46 = vpop.permute.xlu0 %1010 }
 0x7cc   : > { %v1013_v48 = vmul.f32 %v1011_v46, %v1008_v42 }
 0x7ce   : > { %v2838_v49 = vadd.f32 %v1016_v47, %v1013_v48 }
 0x7d0   : > { %v1125_v52 = vrot.slane %v2838_v49, 2  ;;  %v1226_v37 = vrot.slane %v2838_v49, 7 }
 0x7d1   : > { %v1117_v53 = vpop.permute.xlu1 %1116 }
 0x7d2   : > { %v1119_v55 = vmul.f32 %v1117_v53, %v1114_v50  ;;  %1126 = vrot.lane.b32.xlu0 %v1125_v52, %s2569_s19 }
 0x7d4   : > { %v2843_v56 = vadd.f32 %v1122_v54, %v1119_v55 }
 0x7d6   : > { %v1231_v58 = vrot.slane %v2843_v56, 4  ;;  %v1332_v45 = vrot.slane %v2843_v56, 1 }
 0x7d8   : > { %1232 = vrot.lane.b32.xlu1 %v1231_v58, %s2569_s19 }
 0x844   : > { %v1127_v59 = vpop.permute.xlu0 %1126 }
 0x845   : > { %2289 = vmatmul.mubr.msk.f32.vlgmr.msra.gmra.mrb[10].mxu0 %vm503_vm2, %v1127_v59 }
 0x846   : > { %2418 = vmatpush3.bf16.msra.mxu0 %v2684_v15  ;;  %2310 = vmatprep.mubr.msk.f32.mxu0 %vm2566_vm0, %v2565_v1 }
 0x847   : > { %2419 = vmatprep.subr.bf16.mxu0 %v2567_v16 }
 0x84a   : > { %v1233_v60 = vpop.permute.xlu1 %1232  ;;  %2421 = vmatpush3.bf16.msra.mxu0 %v2703_v22 }
 0x84b   : > { %2300 = vmatmul.mubr.msk.f32.vlgmr.msra.gmra.mrb[10].mxu1 %vm503_vm2, %v1233_v60  ;;  %2428 = vmatprep.subr.bf16.mxu0 %v2567_v16 }
 0x84c   : > { %2424 = vmatpush3.bf16.msra.mxu1 %v2687_v17  ;;  %2321 = vmatprep.mubr.msk.f32.mxu1 %vm2566_vm0, %v2565_v1 }
 0x84d   : > { %2425 = vmatprep.subr.bf16.mxu1 %v2567_v16 }
 0x850   : > { %2427 = vmatpush3.bf16.msra.mxu1 %v2707_v23 }
 0x851   : > { %2434 = vmatprep.subr.bf16.mxu1 %v2567_v16 }
 0x918   : > { %v1196_v61 = vpop.f32.mrb[10].mxu0 }
 0x919   : > { %v1197_v62 = vadd.f32 %v1196_v61, %v2735_v32  ;;  %v2290_v63 = vpop.f32.mrb[11].mxu0 }
 0x91b   : > { %v1201_v2 = vrot.slane %v1197_v62, 5 }
 0x91d   : > { %1210 = vrot.lane.b32.xlu0 %v1201_v2, %s2568_s14  ;;  %v1203_v7 = vadd.f32 %v1201_v2, %v2752_v43 }
 0x91e   : > { %v1302_v3 = vpop.f32.mrb[10].mxu1 }
 0x91f   : > { %v1303_v4 = vadd.f32 %v1302_v3, %v2740_v33  ;;  %v2301_v5 = vpop.f32.mrb[11].mxu1  ;;  %v2093_v8 = vmul.f32 -1.442695, %v1203_v7 }
 0x921   : > { %v1307_v6 = vrot.slane %v1303_v4, 5  ;;  %2509 = vpow2.f32 %v2093_v8 }
 0x923   : > { %1316 = vrot.lane.b32.xlu1 %v1307_v6, %s2568_s14  ;;  %v1309_v9 = vadd.f32 %v1307_v6, %v2754_v44 }
 0x925   : > { %v2095_v10 = vmul.f32 -1.442695, %v1309_v9 }
 0x927   : > { %2511 = vpow2.f32 %v2095_v10 }
 0x92b   : > { %v2510_v12 = vpop.eup %2509 }
 0x92c   : > { %v1207_v14 = vadd.f32 1.0, %v2510_v12 }
 0x92e   : > { %2513 = vrcp.f32 %v1207_v14 }
 0x931   : > { %v2512_v18 = vpop.eup %2511 }
 0x932   : > { %v1313_v19 = vadd.f32 1.0, %v2512_v18 }
 0x934   : > { %2515 = vrcp.f32 %v1313_v19 }
 0x938   : > { %v2514_v20 = vpop.eup %2513 }
 0x939   : > { %v1220_v36 = vsub.f32 1.0, %v2514_v20  ;;  %v1228_v39 = vmul.f32 %v2514_v20, %v1226_v37 }
 0x93e   : > { %v2516_v25 = vpop.eup %2515 }
 0x93f   : > { %v1326_v42 = vsub.f32 1.0, %v2516_v25  ;;  %v1334_v48 = vmul.f32 %v2516_v25, %v1332_v45 }
 0x98f   : > { %v1211_v21 = vpop.permute.xlu0 %1210 }
 0x990   : > { %v1213_v24 = vmul.f32 %v2514_v20, %v1211_v21 }
 0x992   : > { %1215 = vrot.lane.b32.xlu0 %v1213_v24, %s2568_s14 }
 0x995   : > { %v1317_v26 = vpop.permute.xlu1 %1316 }
 0x996   : > { %v1319_v27 = vmul.f32 %v2516_v25, %v1317_v26 }
 0x998   : > { %1321 = vrot.lane.b32.xlu1 %v1319_v27, %s2568_s14 }
 0xa04   : > { %v1216_v28 = vpop.permute.xlu0 %1215 }
 0xa05   : > { %v1218_v29 = vadd.f32 %v1216_v28, %v2752_v43 }
 0xa07   : > { %2517 = vtanh.f32 %v1218_v29 }
 0xa0a   : > { %v1322_v30 = vpop.permute.xlu1 %1321 }
 0xa0b   : > { %v1324_v31 = vadd.f32 %v1322_v30, %v2754_v44 }
 0xa0d   : > { %2519 = vtanh.f32 %v1324_v31 }
 0xa11   : > { %v2518_v34 = vpop.eup %2517 }
 0xa12   : > { %1222 = vrot.lane.b32.xlu0 %v2518_v34, %s2569_s19 }
 0xa17   : > { %v2520_v35 = vpop.eup %2519 }
 0xa18   : > { %1328 = vrot.lane.b32.xlu1 %v2520_v35, %s2569_s19 }
 0xa84   : > { %v1223_v38 = vpop.permute.xlu0 %1222 }
 0xa85   : > { %v1225_v40 = vmul.f32 %v1223_v38, %v1220_v36 }
 0xa87   : > { %v2874_v41 = vadd.f32 %v1228_v39, %v1225_v40 }
 0xa89   : > { %v1337_v46 = vrot.slane %v2874_v41, 3  ;;  %v1438_v31 = vrot.slane %v2874_v41, 7 }
 0xa8a   : > { %v1329_v47 = vpop.permute.xlu1 %1328 }
 0xa8b   : > { %v1331_v50 = vmul.f32 %v1329_v47, %v1326_v42  ;;  %1338 = vrot.lane.b32.xlu0 %v1337_v46, %s2569_s19 }
 0xa8d   : > { %v2879_v51 = vadd.f32 %v1334_v48, %v1331_v50 }
 0xa8f   : > { %v1443_v52 = vrot.slane %v2879_v51, 3  ;;  %v1544_v39 = vrot.slane %v2879_v51, 1 }
 0xa91   : > { %1444 = vrot.lane.b32.xlu1 %v1443_v52, %s2569_s19 }
 0xafd   : > { %v1339_v53 = vpop.permute.xlu0 %1338 }
 0xafe   : > { %2311 = vmatmul.mubr.msk.f32.vlgmr.msra.gmra.mrb[12].mxu0 %vm503_vm2, %v1339_v53 }
 0xaff   : > { %2430 = vmatpush3.bf16.msra.mxu0 %v2684_v15  ;;  %2332 = vmatprep.mubr.msk.f32.mxu0 %vm2566_vm0, %v2565_v1 }
 0xb00   : > { %2431 = vmatprep.subr.bf16.mxu0 %v2567_v16 }
 0xb03   : > { %v1445_v54 = vpop.permute.xlu1 %1444  ;;  %2433 = vmatpush3.bf16.msra.mxu0 %v2703_v22 }
 0xb04   : > { %2322 = vmatmul.mubr.msk.f32.vlgmr.msra.gmra.mrb[12].mxu1 %vm503_vm2, %v1445_v54  ;;  %2440 = vmatprep.subr.bf16.mxu0 %v2567_v16 }
 0xb05   : > { %2436 = vmatpush3.bf16.msra.mxu1 %v2687_v17  ;;  %2343 = vmatprep.mubr.msk.f32.mxu1 %vm2566_vm0, %v2565_v1 }
 0xb06   : > { %2437 = vmatprep.subr.bf16.mxu1 %v2567_v16 }
 0xb09   : > { %2439 = vmatpush3.bf16.msra.mxu1 %v2707_v23 }
 0xb0a   : > { %2446 = vmatprep.subr.bf16.mxu1 %v2567_v16 }
 0xbd1   : > { %v1408_v55 = vpop.f32.mrb[12].mxu0 }
 0xbd2   : > { %v1409_v58 = vadd.f32 %v1408_v55, %v2735_v32  ;;  %v2312_v59 = vpop.f32.mrb[13].mxu0 }
 0xbd4   : > { %v1413_v60 = vrot.slane %v1409_v58, 4 }
 0xbd6   : > { %1422 = vrot.lane.b32.xlu0 %v1413_v60, %s2568_s14  ;;  %v1415_v3 = vadd.f32 %v1413_v60, %v2752_v43 }
 0xbd7   : > { %v1514_v61 = vpop.f32.mrb[12].mxu1 }
 0xbd8   : > { %v1515_v62 = vadd.f32 %v1514_v61, %v2740_v33  ;;  %v2323_v63 = vpop.f32.mrb[13].mxu1  ;;  %v2097_v4 = vmul.f32 -1.442695, %v1415_v3 }
 0xbda   : > { %v1519_v2 = vrot.slane %v1515_v62, 6  ;;  %2521 = vpow2.f32 %v2097_v4 }
 0xbdc   : > { %1528 = vrot.lane.b32.xlu1 %v1519_v2, %s2568_s14  ;;  %v1521_v5 = vadd.f32 %v1519_v2, %v2754_v44 }
 0xbde   : > { %v2099_v6 = vmul.f32 -1.442695, %v1521_v5 }
 0xbe0   : > { %2523 = vpow2.f32 %v2099_v6 }
 0xbe4   : > { %v2522_v7 = vpop.eup %2521 }
 0xbe5   : > { %v1419_v8 = vadd.f32 1.0, %v2522_v7 }
 0xbe7   : > { %2525 = vrcp.f32 %v1419_v8 }
 0xbea   : > { %v2524_v9 = vpop.eup %2523 }
 0xbeb   : > { %v1525_v10 = vadd.f32 1.0, %v2524_v9 }
 0xbed   : > { %2527 = vrcp.f32 %v1525_v10 }
 0xbf1   : > { %v2526_v12 = vpop.eup %2525 }
 0xbf2   : > { %v1432_v30 = vsub.f32 1.0, %v2526_v12  ;;  %v1440_v35 = vmul.f32 %v2526_v12, %v1438_v31 }
 0xbf7   : > { %v2528_v19 = vpop.eup %2527 }
 0xbf8   : > { %v1538_v38 = vsub.f32 1.0, %v2528_v19  ;;  %v1546_v45 = vmul.f32 %v2528_v19, %v1544_v39 }
 0xc48   : > { %v1423_v14 = vpop.permute.xlu0 %1422 }
 0xc49   : > { %v1425_v18 = vmul.f32 %v2526_v12, %v1423_v14 }
 0xc4b   : > { %1427 = vrot.lane.b32.xlu0 %v1425_v18, %s2568_s14 }
 0xc4e   : > { %v1529_v20 = vpop.permute.xlu1 %1528 }
 0xc4f   : > { %v1531_v21 = vmul.f32 %v2528_v19, %v1529_v20 }
 0xc51   : > { %1533 = vrot.lane.b32.xlu1 %v1531_v21, %s2568_s14 }
 0xcbd   : > { %v1428_v24 = vpop.permute.xlu0 %1427 }
 0xcbe   : > { %v1430_v25 = vadd.f32 %v1428_v24, %v2752_v43 }
 0xcc0   : > { %2529 = vtanh.f32 %v1430_v25 }
 0xcc3   : > { %v1534_v26 = vpop.permute.xlu1 %1533 }
 0xcc4   : > { %v1536_v27 = vadd.f32 %v1534_v26, %v2754_v44 }
 0xcc6   : > { %2531 = vtanh.f32 %v1536_v27 }
 0xcca   : > { %v2530_v28 = vpop.eup %2529 }
 0xccb   : > { %1434 = vrot.lane.b32.xlu0 %v2530_v28, %s2569_s19 }
 0xcd0   : > { %v2532_v29 = vpop.eup %2531 }
 0xcd1   : > { %1540 = vrot.lane.b32.xlu1 %v2532_v29, %s2569_s19 }
 0xd3d   : > { %v1435_v34 = vpop.permute.xlu0 %1434 }
 0xd3e   : > { %v1437_v36 = vmul.f32 %v1435_v34, %v1432_v30 }
 0xd40   : > { %v2910_v37 = vadd.f32 %v1440_v35, %v1437_v36 }
 0xd42   : > { %v1549_v40 = vrot.slane %v2910_v37, 4  ;;  %v1650_v21 = vrot.slane %v2910_v37, 7 }
 0xd43   : > { %v1541_v42 = vpop.permute.xlu1 %1540 }
 0xd44   : > { %v1543_v46 = vmul.f32 %v1541_v42, %v1538_v38  ;;  %1550 = vrot.lane.b32.xlu0 %v1549_v40, %s2569_s19 }
 0xd46   : > { %v2915_v47 = vadd.f32 %v1546_v45, %v1543_v46 }
 0xd48   : > { %v1655_v48 = vrot.slane %v2915_v47, 2  ;;  %v1756_v29 = vrot.slane %v2915_v47, 1 }
 0xd4a   : > { %1656 = vrot.lane.b32.xlu1 %v1655_v48, %s2569_s19 }
 0xdb6   : > { %v1551_v50 = vpop.permute.xlu0 %1550 }
 0xdb7   : > { %2333 = vmatmul.mubr.msk.f32.vlgmr.msra.gmra.mrb[14].mxu0 %vm503_vm2, %v1551_v50 }
 0xdb8   : > { %2442 = vmatpush3.bf16.msra.mxu0 %v2684_v15  ;;  %2354 = vmatprep.mubr.msk.f32.mxu0 %vm2566_vm0, %v2565_v1 }
 0xdb9   : > { %2443 = vmatprep.subr.bf16.mxu0 %v2567_v16 }
 0xdbc   : > { %v1657_v52 = vpop.permute.xlu1 %1656  ;;  %2445 = vmatpush3.bf16.msra.mxu0 %v2703_v22 }
 0xdbd   : > { %2344 = vmatmul.mubr.msk.f32.vlgmr.msra.gmra.mrb[14].mxu1 %vm503_vm2, %v1657_v52 }
 0xdbe   : > { %2448 = vmatpush3.bf16.msra.mxu1 %v2687_v17  ;;  %2365 = vmatprep.mubr.msk.f32.mxu1 %vm2566_vm0, %v2565_v1 }
 0xdbf   : > { %2449 = vmatprep.subr.bf16.mxu1 %v2567_v16 }
 0xdc2   : > { %2451 = vmatpush3.bf16.msra.mxu1 %v2707_v23 }
 0xe8a   : > { %v1620_v15 = vpop.f32.mrb[14].mxu0 }
 0xe8b   : > { %v1621_v53 = vadd.f32 %v1620_v15, %v2735_v32  ;;  %v2334_v54 = vpop.f32.mrb[15].mxu0 }
 0xe8d   : > { %v1625_v55 = vrot.slane %v1621_v53, 3 }
 0xe8f   : > { %1634 = vrot.lane.b32.xlu0 %v1625_v55, %s2568_s14  ;;  %v1627_v1 = vadd.f32 %v1625_v55, %v2752_v43 }
 0xe90   : > { %v1726_v58 = vpop.f32.mrb[14].mxu1 }
 0xe91   : > { %v1727_v22 = vadd.f32 %v1726_v58, %v2740_v33  ;;  %v2345_v59 = vpop.f32.mrb[15].mxu1  ;;  %v2101_v17 = vmul.f32 -1.442695, %v1627_v1 }
 0xe93   : > { %v1731_v60 = vrot.slane %v1727_v22, 7  ;;  %2533 = vpow2.f32 %v2101_v17 }
 0xe95   : > { %1740 = vrot.lane.b32.xlu1 %v1731_v60, %s2568_s14  ;;  %v1733_v16 = vadd.f32 %v1731_v60, %v2754_v44 }
 0xe97   : > { %v2103_v23 = vmul.f32 -1.442695, %v1733_v16 }
 0xe99   : > { %2535 = vpow2.f32 %v2103_v23 }
 0xe9d   : > { %v2534_v61 = vpop.eup %2533 }
 0xe9e   : > { %v1631_v62 = vadd.f32 1.0, %v2534_v61 }
 0xea0   : > { %2537 = vrcp.f32 %v1631_v62 }
 0xea3   : > { %v2536_v63 = vpop.eup %2535 }
 0xea4   : > { %v1737_v2 = vadd.f32 1.0, %v2536_v63 }
 0xea6   : > { %2539 = vrcp.f32 %v1737_v2 }
 0xeaa   : > { %v2538_v3 = vpop.eup %2537 }
 0xeab   : > { %v1644_v20 = vsub.f32 1.0, %v2538_v3  ;;  %v1652_v25 = vmul.f32 %v2538_v3, %v1650_v21 }
 0xeb0   : > { %v2540_v6 = vpop.eup %2539 }
 0xeb1   : > { %v1750_v28 = vsub.f32 1.0, %v2540_v6  ;;  %v1758_v34 = vmul.f32 %v2540_v6, %v1756_v29 }
 0xf01   : > { %v1635_v4 = vpop.permute.xlu0 %1634 }
 0xf02   : > { %v1637_v5 = vmul.f32 %v2538_v3, %v1635_v4 }
 0xf04   : > { %1639 = vrot.lane.b32.xlu0 %v1637_v5, %s2568_s14 }
 0xf07   : > { %v1741_v7 = vpop.permute.xlu1 %1740 }
 0xf08   : > { %v1743_v8 = vmul.f32 %v2540_v6, %v1741_v7 }
 0xf0a   : > { %1745 = vrot.lane.b32.xlu1 %v1743_v8, %s2568_s14 }
 0xf76   : > { %v1640_v9 = vpop.permute.xlu0 %1639 }
 0xf77   : > { %v1642_v10 = vadd.f32 %v1640_v9, %v2752_v43 }
 0xf79   : > { %2541 = vtanh.f32 %v1642_v10 }
 0xf7c   : > { %v1746_v12 = vpop.permute.xlu1 %1745 }
 0xf7d   : > { %v1748_v14 = vadd.f32 %v1746_v12, %v2754_v44 }
 0xf7f   : > { %2543 = vtanh.f32 %v1748_v14 }
 0xf83   : > { %v2542_v18 = vpop.eup %2541 }
 0xf84   : > { %1646 = vrot.lane.b32.xlu0 %v2542_v18, %s2569_s19 }
 0xf89   : > { %v2544_v19 = vpop.eup %2543 }
 0xf8a   : > { %1752 = vrot.lane.b32.xlu1 %v2544_v19, %s2569_s19 }
 0xff6   : > { %v1647_v24 = vpop.permute.xlu0 %1646 }
 0xff7   : > { %v1649_v26 = vmul.f32 %v1647_v24, %v1644_v20 }
 0xff9   : > { %v2944_v27 = vadd.f32 %v1652_v25, %v1649_v26 }
 0xffb   : > { %v1761_v30 = vrot.slane %v2944_v27, 5 }
 0xffc   : > { %v1753_v31 = vpop.permute.xlu1 %1752 }
 0xffd   : > { %v1755_v35 = vmul.f32 %v1753_v31, %v1750_v28  ;;  %1762 = vrot.lane.b32.xlu0 %v1761_v30, %s2569_s19 }
 0xfff   : > { %v2949_v36 = vadd.f32 %v1758_v34, %v1755_v35 }
0x1001   : > { %v1867_v38 = vrot.slane %v2949_v36, 1 }
0x1003   : > { %1868 = vrot.lane.b32.xlu1 %v1867_v38, %s2569_s19 }
0x106f   : > { %v1763_v39 = vpop.permute.xlu0 %1762 }
0x1070   : > { %2355 = vmatmul.mubr.msk.f32.vlgmr.msra.gmra.mrb[16].mxu0 %vm503_vm2, %v1763_v39 }
0x1075   : > { %v1869_v40 = vpop.permute.xlu1 %1868 }
0x1076   : > { %2366 = vmatmul.mubr.msk.f32.vlgmr.msra.gmra.mrb[16].mxu1 %vm503_vm2, %v1869_v40 }
0x1143   : > { %v1832_v42 = vpop.f32.mrb[16].mxu0 }
0x1144   : > { %v1833_v45 = vadd.f32 %v1832_v42, %v2735_v32  ;;  %v2356_v46 = vpop.f32.mrb[17].mxu0 }
0x1146   : > { %v1837_v48 = vrot.slane %v1833_v45, 2 }
0x1148   : > { %1846 = vrot.lane.b32.xlu0 %v1837_v48, %s2568_s14  ;;  %v1839_v53 = vadd.f32 %v1837_v48, %v2752_v43 }
0x1149   : > { %v1938_v50 = vpop.f32.mrb[16].mxu1 }
0x114a   : > { %v1939_v52 = vadd.f32 %v1938_v50, %v2740_v33  ;;  %v2367_v15 = vpop.f32.mrb[17].mxu1  ;;  %v2105_v54 = vmul.f32 -1.442695, %v1839_v53 }
0x114c   : > { %1950 = vrot.lane.b32.xlu1 %v1939_v52, %s2568_s14  ;;  %v1942_v55 = vadd.f32 %v1939_v52, %v2754_v44  ;;  %2545 = vpow2.f32 %v2105_v54 }
0x114e   : > { %v2107_v58 = vmul.f32 -1.442695, %v1942_v55 }
0x1150   : > { %2547 = vpow2.f32 %v2107_v58 }
0x1156   : > { %v2546_v22 = vpop.eup %2545 }
0x1157   : > { %v1843_v32 = vadd.f32 1.0, %v2546_v22 }
0x1159   : > { %2549 = vrcp.f32 %v1843_v32 }
0x115a   : > { %v2548_v59 = vpop.eup %2547 }
0x115b   : > { %v1946_v60 = vadd.f32 1.0, %v2548_v59 }
0x115d   : > { %2551 = vrcp.f32 %v1946_v60 }
0x1163   : > { %v2550_v1 = vpop.eup %2549 }
0x1167   : > { %v2552_v16 = vpop.eup %2551 }
0x1168   : > { %v1967_v12 = vmul.f32 %v2552_v16, %v1867_v38 }
0x11ba   : > { %v1847_v17 = vpop.permute.xlu0 %1846 }
0x11bb   : > { %v1849_v33 = vmul.f32 %v2550_v1, %v1847_v17 }
0x11bd   : > { %1851 = vrot.lane.b32.xlu0 %v1849_v33, %s2568_s14 }
0x11be   : > { %v1951_v23 = vpop.permute.xlu1 %1950 }
0x11bf   : > { %v1953_v61 = vmul.f32 %v2552_v16, %v1951_v23 }
0x11c1   : > { %1955 = vrot.lane.b32.xlu1 %v1953_v61, %s2568_s14 }
0x122f   : > { %v1852_v62 = vpop.permute.xlu0 %1851 }
0x1230   : > { %v1854_v63 = vadd.f32 %v1852_v62, %v2752_v43  ;;  %v1856_v43 = vsub.f32 1.0, %v2550_v1 }
0x1232   : > { %2553 = vtanh.f32 %v1854_v63 }
0x1233   : > { %v1956_v2 = vpop.permute.xlu1 %1955 }
0x1234   : > { %v1958_v3 = vadd.f32 %v1956_v2, %v2754_v44  ;;  %v1862_v44 = vrot.slane %v2944_v27, 7 }
0x1236   : > { %2555 = vtanh.f32 %v1958_v3  ;;  %v1864_v7 = vmul.f32 %v2550_v1, %v1862_v44 }
0x123c   : > { %v2554_v4 = vpop.eup %2553 }
0x123d   : > { %1858 = vrot.lane.b32.xlu0 %v2554_v4, %s2569_s19 }
0x1240   : > { %v2556_v5 = vpop.eup %2555 }
0x1241   : > { %1962 = vrot.lane.b32.xlu1 %v2556_v5, %s2569_s19  ;;  %1971 = vrot.lane.b32.xlu0 %v2802_v57, %s2569_s19 }
0x1245   : > { %1975 = vrot.lane.b32.xlu1 %v2838_v49, %s2569_s19  ;;  %1979 = vrot.lane.b32.xlu0 %v2874_v41, %s2569_s19  ;;  %v1960_v49 = vsub.f32 1.0, %v2552_v16 }
0x1249   : > { %1983 = vrot.lane.b32.xlu1 %v2910_v37, %s2569_s19  ;;  %1987 = vrot.lane.b32.xlu0 %v2944_v27, %s2569_s19 }
0x12af   : > { %v1859_v6 = vpop.permute.xlu0 %1858 }
0x12b0   : > { %v1861_v8 = vmul.f32 %v1859_v6, %v1856_v43 }
0x12b2   : > { %v1865_v9 = vadd.f32 %v1864_v7, %v1861_v8 }
0x12b3   : > { %v1963_v57 = vpop.permute.xlu1 %1962  ;;  %v1972_v14 = vpop.permute.xlu0 %1971 }
0x12b4   : > { %1992 = vrot.lane.b32.xlu1 %v1865_v9, %s2569_s19  ;;  %v1965_v10 = vmul.f32 %v1963_v57, %v1960_v49  ;;  %v1974_v19 = vsel %vm503_vm2, %v1972_v14, %v2949_v36 }
0x12b6   : > { %v1968_v41 = vadd.f32 %v1967_v12, %v1965_v10 }
0x12b7   : > { %v1976_v18 = vpop.permute.xlu1 %1975  ;;  %v1980_v24 = vpop.permute.xlu0 %1979 }
0x12b8   : > { %v1970_v37 = vsel %vm503_vm2, %v2772_v13, %v1968_v41  ;;  %v1978_v21 = vsel %vm503_vm2, %v1976_v18, %v2915_v47  ;;  %v1982_v27 = vsel %vm503_vm2, %v1980_v24, %v2879_v51 }
0x12b9   : > { %v1997_v20 = vsel %vm1996_vm3, %v1970_v37, %v1974_v19 }
0x12ba   : > { %v1999_v25 = vsel %vm1998_vm4, %v1997_v20, %v1978_v21 }
0x12bb   : > { %v1984_v26 = vpop.permute.xlu1 %1983  ;;  %v2001_v28 = vsel %vm2000_vm5, %v1999_v25, %v1982_v27  ;;  %v1988_v29 = vpop.permute.xlu0 %1987 }
0x12bc   : > { %v1986_v13 = vsel %vm503_vm2, %v1984_v26, %v2843_v56  ;;  %v1990_v31 = vsel %vm503_vm2, %v1988_v29, %v2807_v0 }
0x12bd   : > { %v2003_v30 = vsel %vm2002_vm6, %v2001_v28, %v1986_v13 }
0x12be   : > { %v2005_v51 = vsel %vm2004_vm7, %v2003_v30, %v1990_v31 }
0x1326   : > { %v1993_v47 = vpop.permute.xlu1 %1992 }
0x1327   : > { %v1995_v34 = vsel %vm503_vm2, %v1993_v47, %v2768_v11 }
0x1328   : > { %v2007_v35 = vsel %vm2006_vm8, %v2005_v51, %v1995_v34 }
0x1329   : > { %2009 = vst.msk [vmem:[%s327_s23] sm:$0x7f] %vm2008_vm9, %v2007_v35 }
0x132a PF: > { %s19_s30 = sadd.s32 1, %s2563_s30  }
0x132b   : > { %p16_p4 = scmp.ge.s32.totalorder %s19_s30, 4  }
0x132d   :  { %18 = sbr.rel (!%p16_p4) target bundleno = 1 (0x1), region = 86 }

// kernel: forward.7
= control target key start
LH: loop header
LB: loop body
LE: loop exit
PB: predicated region body
PF: predicated region fallthrough
CT: control target
= control target key end

     0   :  { %s3483_s23 = smov 0   ;;  %s4175_s0 = inlined_call_operand.vmem [shape: f32[2,8,64], index: 0, kind: input, shape index: {}]   ;;  %s4176_s1 = inlined_call_operand.vmem [shape: f32[2,7,64], index: 1, kind: input, shape index: {}]   ;;  %s4177_s2 = inlined_call_operand.vmem [shape: f32[2,8,64], index: 2, kind: input, shape index: {}]   ;;  %s4178_s3 = inlined_call_operand.vmem [shape: f32[2,7,64], index: 3, kind: input, shape index: {}]   ;;  %s4179_s4 = inlined_call_operand.vmem [shape: f32[1,64], index: 4, kind: input, shape index: {}]   ;;  %s4180_s5 = inlined_call_operand.vmem [shape: f32[1,64], index: 5, kind: input, shape index: {}]   ;;  %s4181_s6 = inlined_call_operand.vmem [shape: f32[1,64], index: 6, kind: input, shape index: {}]   ;;  %s4182_s7 = inlined_call_operand.vmem [shape: f32[1,64], index: 7, kind: input, shape index: {}]   ;;  %s4183_s8 = inlined_call_operand.vmem [shape: f32[1,64], index: 8, kind: input, shape index: {}]   ;;  %s4184_s9 = inlined_call_operand.vmem [shape: f32[8,1], index: 9, kind: input, shape index: {}]   ;;  %s4185_s10 = inlined_call_operand.vmem [shape: f32[1,64], index: 10, kind: input, shape index: {}]   ;;  %s4186_s11 = inlined_call_operand.vmem [shape: f32[7,1], index: 11, kind: input, shape index: {}]   ;;  %s4187_s12 = inlined_call_operand.vmem [shape: f32[1,64], index: 12, kind: input, shape index: {}]   ;;  %s4188_s13 = inlined_call_operand.vmem [shape: f32[8,1], index: 13, kind: input, shape index: {}]   ;;  %s4189_s14 = inlined_call_operand.vmem [shape: f32[1,64], index: 14, kind: input, shape index: {}]   ;;  %s4190_s15 = inlined_call_operand.vmem [shape: f32[7,1], index: 15, kind: input, shape index: {}]   ;;  %s4191_s16 = inlined_call_operand.vmem [shape: bf16[2304,32], index: 16, kind: input, shape index: {}]   ;;  %s4192_s17 = inlined_call_operand.vmem [shape: f32[1,32], index: 17, kind: input, shape index: {}]   ;;  %s4193_s18 = inlined_call_operand.vmem [shape: f32[32,1], index: 18, kind: input, shape index: {}]   ;;  %s4194_s19 = inlined_call_operand.<no memory space> [shape: f32[1,1], index: 19, kind: input, shape index: {}]   ;;  %s4195_s20 = inlined_call_operand.vmem [shape: f32[2,1,1], index: 20, kind: output, shape index: {}]  }
   0x1   :  { %4196 = sst [smem:[#allocation3_spill]] %s4175_s0  ;;  %v25_v0 = vstv %s4194_s19 }
   0x2   :  { %4197 = sst [smem:[#allocation4_spill]] %s4176_s1  ;;  %26 = vst [vmem:[#allocation2] sm:$0x1] %v25_v0 }
   0x3   :  { %4198 = sst [smem:[#allocation5_spill]] %s4177_s2 }
   0x4   :  { %4199 = sst [smem:[#allocation6_spill]] %s4178_s3 }
   0x5   :  { %4200 = sst [smem:[#allocation7_spill]] %s4179_s4 }
   0x6 LB: > { %s2746_s24 = sadd.s32 4294967295, %s3368_s23   ;;  %p2750_p0 = scmp.ge.s32.totalorder %s3368_s23, 1  ;;  %s3368_s23 = sphi %s3483_s23, %s32_s23  }
   0x7   : > { %p590_p1 = scmp.lt.s32.totalorder %s3368_s23, 3 }
   0x9   : > { %p591_p2 = pnand %p2750_p0, %p590_p1 }
   0xa   : > { %p657_p3 = scmp.lt.s32.totalorder (!%p591_p2), %s2746_s24, 1  ;;  %vm714_vm0 = vcmask (!%p591_p2), 522240   ;;  %vm682_vm1 = vcmask (!%p591_p2), 523264   ;;  %s4201_s3 = sld [smem:[#allocation6_spill]] (!%p591_p2)  ;;  %v2760_v12 = vld [vmem:[%s4185_s10] ss:$0 sm:$0xff] (!%p591_p2) }
   0xb   : > { %594 = sbr.rel (%p591_p2) target bundleno = 1362 (0x552), region = 100  ;;  %s4202_s4 = sld [smem:[#allocation5_spill]] (!%p591_p2)  ;;  %v3370_v19 = vmov (!%p591_p2), 0   ;;  %v783_v25 = vld [vmem:[%s4186_s11] sm:$0x7f] (!%p591_p2)  ;;  %vm798_vm2 = vcmask (!%p591_p2), 6144  }
   0xc   : > { %s4203_s21 = sld [smem:[#allocation4_spill]] (!%p591_p2)  ;;  %3144 = vset.pattern.permute.xlu1 (!%p591_p2), %v3370_v19  ;;  %3143 = vset.pattern.permute.xlu0 (!%p591_p2), %v3370_v19  ;;  %v2757_v30 = vld [vmem:[%s4181_s6] ss:$0 sm:$0xff] (!%p591_p2)  ;;  %vm758_vm3 = vcmask (!%p591_p2), 7168   ;;  %s3371_s22 = smov (!%p591_p2), 64   ;;  %vm3373_vm4 = vmmov (!%p591_p2), 0  }
   0xd   : > { %v2758_v32 = vld [vmem:[%s4182_s7] ss:$0 sm:$0xff] (!%p591_p2)  ;;  %vm2587_vm5 = vcmask (!%p591_p2), 261120   ;;  %vm2661_vm6 = vcmask (!%p591_p2), 0  }
   0xe   : > { %v2762_v35 = vld [vmem:[%s4189_s14] ss:$0 sm:$0xff] (!%p591_p2) }
   0xf   : > { %v2759_v37 = vld [vmem:[%s4183_s8] ss:$0 sm:$0xff] (!%p591_p2) }
  0x10   : > { %v2756_v44 = vld [vmem:[%s4180_s5] ss:$0 sm:$0xff] (!%p591_p2) }
  0x11   : > { %v2761_v48 = vld [vmem:[%s4187_s12] ss:$0 sm:$0xff] (!%p591_p2) }
  0x12   : > { %s4207_s24 = smov (!%p657_p3, %s2746_s24), 1  ;;  %v862_v0 = vld [vmem:[%s4190_s15] sm:$0x7f] }
  0x13   : > { %s3494_s19 = sshll.u32 %s4207_s24, 3 }
  0x14   : > { %s672_s26 = scalar_lea.vmem %s4201_s3, %s3494_s19  ;;  %s668_s29 = scalar_lea.vmem %s4202_s4, %s3494_s19 }
  0x15   : > { %v711_v1 = vld [vmem:[%s672_s26] sm:$0x7f]  ;;  %s664_s1 = scalar_lea.vmem %s4203_s21, %s3494_s19  ;;  %s4205_s26 = sld [smem:[#allocation7_spill]] }
  0x16   : > { %v679_v2 = vld [vmem:[%s668_s29] sm:$0xff]  ;;  %v715_v3 = vsel %vm714_vm0, %v711_v1, 0.0  ;;  %s4204_s29 = sld [smem:[#allocation3_spill]] }
  0x17   : > { %v683_v4 = vsel %vm682_vm1, %v679_v2, 0.0  ;;  %716 = vadd.xlane.f32.xlu0 %v715_v3  ;;  %v3510_v11 = vld [vmem:[%s664_s1] sm:$0x7f] }
  0x18   : > { %v790_v16 = vmul.f32 %v2760_v12, %v3510_v11  ;;  %v743_v3 = vld [vmem:[%s4184_s9] sm:$0xff] }
  0x1a   : > { %v791_v18 = vsel %vm714_vm0, %v790_v16, 0.0 }
  0x1b   : > { %684 = vadd.xlane.f32.xlu0 %v683_v4  ;;  %v2755_v40 = vld [vmem:[%s4205_s26] ss:$0 sm:$0xff] }
  0x1c   : > { %s660_s30 = scalar_lea.vmem %s4204_s29, %s3494_s19  ;;  %v823_v4 = vld [vmem:[%s4188_s13] sm:$0xff]  ;;  %s675_s29 = scalar_lea.vmem %s4195_s20, %s4207_s24 }
  0x1d   : > { %v3535_v36 = vld [vmem:[%s660_s30] sm:$0xff] }
  0x1e   : > { %v750_v45 = vmul.f32 %v2759_v37, %v3535_v36 }
  0x20   : > { %v751_v50 = vsel %vm682_vm1, %v750_v45, 0.0 }
  0xa4   : > { %v717_v5 = vpop.xlane.xlu0 %716 }
  0xa5   : > { %v718_v6 = vmul.f32 0.015625, %v717_v5 }
  0xa7   : > { %v719_v7 = vsub.f32 %v711_v1, %v718_v6 }
  0xa8   : > { %v685_v8 = vpop.xlane.xlu0 %684 }
  0xa9   : > { %v687_v9 = vmul.f32 0.015625, %v685_v8  ;;  %v720_v10 = vmul.f32 %v719_v7, %v719_v7 }
  0xab   : > { %v688_v13 = vsub.f32 %v679_v2, %v687_v9  ;;  %v721_v14 = vsel %vm714_vm0, %v720_v10, 0.0 }
  0xac   : > { %722 = vadd.xlane.f32.xlu1 %v721_v14 }
  0xad   : > { %v689_v15 = vmul.f32 %v688_v13, %v688_v13 }
  0xaf   : > { %v690_v17 = vsel %vm682_vm1, %v689_v15, 0.0 }
  0xb0   : > { %691 = vadd.xlane.f32.xlu1 %v690_v17 }
  0xb4   : > { %792 = vadd.xlane.f32.xlu1 %v791_v18 }
 0x139   : > { %v723_v20 = vpop.xlane.xlu1 %722 }
 0x13a   : > { %v724_v21 = vmul.f32 0.015625, %v723_v20 }
 0x13c   : > { %v725_v22 = vadd.f32 1e-05, %v724_v21 }
 0x13d   : > { %v692_v23 = vpop.xlane.xlu1 %691 }
 0x13e   : > { %3334 = vrsqrt.f32 %v725_v22  ;;  %v693_v24 = vmul.f32 0.015625, %v692_v23 }
 0x140   : > { %v694_v26 = vadd.f32 1e-05, %v693_v24 }
 0x141   : > { %v793_v27 = vpop.xlane.xlu1 %792 }
 0x142   : > { %3336 = vrsqrt.f32 %v694_v26  ;;  %v794_v28 = vadd.f32 %v793_v27, %v783_v25 }
 0x144   : > { %3338 = vtanh.f32 %v794_v28 }
 0x148   : > { %v3335_v29 = vpop.eup %3334 }
 0x149   : > { %v727_v31 = vmul.f32 %v3335_v29, %v719_v7 }
 0x14b   : > { %v734_v33 = vmul.f32 %v2757_v30, %v727_v31 }
 0x14c   : > { %v3337_v34 = vpop.eup %3336 }
 0x14d   : > { %v696_v38 = vmul.f32 %v3337_v34, %v688_v13  ;;  %v3540_v39 = vadd.f32 %v2758_v32, %v734_v33 }
 0x14e   : > { %v3339_v41 = vpop.eup %3338 }
 0x14f   : > { %v796_v42 = vmul.f32 1.442695, %v3339_v41  ;;  %v869_v43 = vmul.f32 %v2762_v35, %v3540_v39  ;;  %v703_v46 = vmul.f32 %v2755_v40, %v696_v38 }
 0x151   : > { %3340 = vpow2.f32 %v796_v42  ;;  %v870_v47 = vsel %vm714_vm0, %v869_v43, 0.0  ;;  %v3554_v49 = vadd.f32 %v2756_v44, %v703_v46 }
 0x152   : > { %871 = vadd.xlane.f32.xlu0 %v870_v47 }
 0x153   : > { %v830_v51 = vmul.f32 %v2761_v48, %v3554_v49 }
 0x155   : > { %v831_v52 = vsel %vm682_vm1, %v830_v51, 0.0 }
 0x156   : > { %752 = vadd.xlane.f32.xlu0 %v751_v50  ;;  %832 = vadd.xlane.f32.xlu1 %v831_v52  ;;  %v3190_v52 = vld [vmem:[%s4191_s16 + $0x40] sm:$0xff]  }
 0x157   : > { %2910 = vmatprep.subr.bf16.mxu0 %v3190_v52 }
 0x15b   : > { %v3341_v53 = vpop.eup %3340 }
 0x15c   : > { %v799_v54 = vsel %vm798_vm2, %v3341_v53, 0.0 }
 0x15d   : > { %v800_v55 = vrot.slane %v799_v54, 4 }
 0x15f   : > { %v801_v56 = vadd.f32 %v800_v55, %v799_v54  ;;  %v3192_v54 = vld [vmem:[%s4191_s16 + $0x48] sm:$0xff]   ;;  %v3193_v55 = vld [vmem:[%s4191_s16 + $0xc0] sm:$0xff]  }
 0x160   : > { %2932 = vmatprep.subr.bf16.mxu1 %v3193_v55 }
 0x161   : > { %v802_v57 = vrot.slane %v801_v56, 2 }
 0x163   : > { %v803_v58 = vadd.f32 %v802_v57, %v801_v56  ;;  %v3195_v56 = vld [vmem:[%s4191_s16 + $0x80] sm:$0xff]   ;;  %v3197_v57 = vld [vmem:[%s4191_s16 + $0xc8] sm:$0xff]  }
 0x164   : > { %2933 = vmatpush3.bf16.msra.mxu1 %v3195_v56 }
 0x165   : > { %v804_v59 = vrot.slane %v803_v58, 1  ;;  %2934 = vmatprep.subr.bf16.mxu1 %v3197_v57 }
 0x167   : > { %v805_v60 = vadd.f32 %v804_v59, %v803_v58  ;;  %v3194_v58 = vld [vmem:[%s4191_s16 + $0x8] sm:$0xff]   ;;  %v3196_v59 = vld [vmem:[%s4191_s16 + $0x50] sm:$0xff]  }
 0x169   : > { %v806_v61 = vadd.f32 1e-10, %v805_v60  ;;  %v3199_v60 = vld [vmem:[%s4191_s16 + $0x88] sm:$0xff]  }
 0x16a   : > { %2935 = vmatpush3.bf16.msra.mxu1 %v3199_v60  ;;  %v3220_v60 = vld [vmem:[%s4191_s16 + $0xf8] sm:$0xff]  }
 0x16b   : > { %3342 = vrcp.f32 %v806_v61  ;;  %v3201_v61 = vld [vmem:[%s4191_s16 + $0xd0] sm:$0xff]  }
 0x16c   : > { %2936 = vmatprep.subr.bf16.mxu1 %v3201_v61  ;;  %v3221_v61 = vld [vmem:[%s4191_s16 + $0x140] sm:$0xff]  }
 0x175   : > { %v3343_v62 = vpop.eup %3342 }
 0x176   : > { %v808_v63 = vmul.f32 %v3343_v62, %v3341_v53  ;;  %v3191_v53 = vld [vmem:[%s4191_s16] sm:$0xff]   ;;  %v3198_v62 = vld [vmem:[%s4191_s16 + $0x10] sm:$0xff]  }
 0x177   : > { %2911 = vmatpush3.bf16.msra.mxu0 %v3191_v53 }
 0x178   : > { %811 = vperm.xlu1 %3144, %v808_v63   ;;  %2912 = vmatprep.subr.bf16.mxu0 %v3192_v54  ;;  %v3200_v63 = vld [vmem:[%s4191_s16 + $0x58] sm:$0xff]  }
 0x17b   : > { %2913 = vmatpush3.bf16.msra.mxu0 %v3194_v58 }
 0x17c   : > { %2914 = vmatprep.subr.bf16.mxu0 %v3196_v59 }
 0x17f   : > { %2915 = vmatpush3.bf16.msra.mxu0 %v3198_v62 }
 0x180   : > { %2916 = vmatprep.subr.bf16.mxu0 %v3200_v63  ;;  %v3222_v63 = vld [vmem:[%s4191_s16 + $0xb8] sm:$0xff]  }
 0x1df   : > { %v872_v1 = vpop.xlane.xlu0 %871 }
 0x1e0   : > { %v873_v2 = vadd.f32 %v872_v1, %v862_v0  ;;  %v3203_v0 = vld [vmem:[%s4191_s16 + $0x90] sm:$0xff]   ;;  %v3205_v1 = vld [vmem:[%s4191_s16 + $0xd8] sm:$0xff]  }
 0x1e1   : > { %2937 = vmatpush3.bf16.msra.mxu1 %v3203_v0 }
 0x1e2   : > { %3344 = vtanh.f32 %v873_v2  ;;  %v3202_v2 = vld [vmem:[%s4191_s16 + $0x18] sm:$0xff]   ;;  %2938 = vmatprep.subr.bf16.mxu1 %v3205_v1 }
 0x1e3   : > { %v753_v5 = vpop.xlane.xlu0 %752  ;;  %v833_v6 = vpop.xlane.xlu1 %832  ;;  %2917 = vmatpush3.bf16.msra.mxu0 %v3202_v2 }
 0x1e4   : > { %v754_v7 = vadd.f32 %v753_v5, %v743_v3  ;;  %v834_v8 = vadd.f32 %v833_v6, %v823_v4  ;;  %v3204_v3 = vld [vmem:[%s4191_s16 + $0x60] sm:$0xff]   ;;  %v3207_v4 = vld [vmem:[%s4191_s16 + $0x98] sm:$0xff]  }
 0x1e5   : > { %v3209_v5 = vld [vmem:[%s4191_s16 + $0xe0] sm:$0xff]   ;;  %2918 = vmatprep.subr.bf16.mxu0 %v3204_v3  ;;  %2939 = vmatpush3.bf16.msra.mxu1 %v3207_v4 }
 0x1e6   : > { %3346 = vtanh.f32 %v754_v7  ;;  %v3206_v6 = vld [vmem:[%s4191_s16 + $0x20] sm:$0xff]   ;;  %v3208_v7 = vld [vmem:[%s4191_s16 + $0x68] sm:$0xff]   ;;  %2940 = vmatprep.subr.bf16.mxu1 %v3209_v5 }
 0x1e7   : > { %3348 = vtanh.f32 %v834_v8  ;;  %v3211_v8 = vld [vmem:[%s4191_s16 + $0xa0] sm:$0xff]   ;;  %2919 = vmatpush3.bf16.msra.mxu0 %v3206_v6 }
 0x1e8   : > { %2920 = vmatprep.subr.bf16.mxu0 %v3208_v7  ;;  %v3224_v3 = vld [vmem:[%s4191_s16 + $0x1c0] sm:$0xff]  }
 0x1e9   : > { %2941 = vmatpush3.bf16.msra.mxu1 %v3211_v8 }
 0x1ec   : > { %v3345_v9 = vpop.eup %3344 }
 0x1ed   : > { %v875_v10 = vmul.f32 1.442695, %v3345_v9  ;;  %v3213_v9 = vld [vmem:[%s4191_s16 + $0xe8] sm:$0xff]  }
 0x1ee   : > { %2942 = vmatprep.subr.bf16.mxu1 %v3213_v9 }
 0x1ef   : > { %3350 = vpow2.f32 %v875_v10  ;;  %v3210_v10 = vld [vmem:[%s4191_s16 + $0x28] sm:$0xff]  }
 0x1f0   : > { %v3347_v12 = vpop.eup %3346  ;;  %2921 = vmatpush3.bf16.msra.mxu0 %v3210_v10 }
 0x1f1   : > { %v3349_v13 = vpop.eup %3348  ;;  %v756_v14 = vmul.f32 1.442695, %v3347_v12  ;;  %v3212_v12 = vld [vmem:[%s4191_s16 + $0x70] sm:$0xff]  }
 0x1f2   : > { %v836_v15 = vmul.f32 1.442695, %v3349_v13  ;;  %v3215_v13 = vld [vmem:[%s4191_s16 + $0xa8] sm:$0xff]   ;;  %2922 = vmatprep.subr.bf16.mxu0 %v3212_v12 }
 0x1f3   : > { %3352 = vpow2.f32 %v756_v14  ;;  %v3214_v14 = vld [vmem:[%s4191_s16 + $0x30] sm:$0xff]   ;;  %2943 = vmatpush3.bf16.msra.mxu1 %v3215_v13 }
 0x1f4   : > { %3354 = vpow2.f32 %v836_v15  ;;  %2923 = vmatpush3.bf16.msra.mxu0 %v3214_v14 }
 0x1f7   : > { %v812_v15 = vpop.permute.xlu1 %811 }
 0x1f9   : > { %v3351_v16 = vpop.eup %3350 }
 0x1fa   : > { %v877_v17 = vsel %vm798_vm2, %v3351_v16, 0.0 }
 0x1fb   : > { %v878_v18 = vrot.slane %v877_v17, 4 }
 0x1fd   : > { %v3353_v19 = vpop.eup %3352  ;;  %v879_v20 = vadd.f32 %v878_v18, %v877_v17  ;;  %v909_v18 = vsel %vm682_vm1, %v3554_v49, -inf }
 0x1fe   : > { %v3355_v21 = vpop.eup %3354  ;;  %v759_v22 = vsel %vm758_vm3, %v3353_v19, 0.0 }
 0x1ff   : > { %v880_v23 = vrot.slane %v879_v20, 2  ;;  %v838_v24 = vsel %vm758_vm3, %v3355_v21, 0.0  ;;  %v760_v25 = vrot.slane %v759_v22, 4 }
 0x200   : > { %v839_v26 = vrot.slane %v838_v24, 4 }
 0x201   : > { %v761_v27 = vadd.f32 %v760_v25, %v759_v22  ;;  %v881_v28 = vadd.f32 %v880_v23, %v879_v20  ;;  %v900_v20 = vsel %vm682_vm1, %v3554_v49, 0.0  ;;  %v910_v22 = vrot.slane %v909_v18, 4 }
 0x202   : > { %v840_v29 = vadd.f32 %v839_v26, %v838_v24  ;;  %v901_v24 = vrot.slane %v900_v20, 4  ;;  %v916_v25 = vsel %vm714_vm0, %v3540_v39, 0.0 }
 0x203   : > { %v762_v30 = vrot.slane %v761_v27, 2  ;;  %v882_v31 = vrot.slane %v881_v28, 1 }
 0x204   : > { %v841_v32 = vrot.slane %v840_v29, 2 }
 0x205   : > { %v883_v33 = vadd.f32 %v882_v31, %v881_v28  ;;  %v763_v34 = vadd.f32 %v762_v30, %v761_v27  ;;  %v917_v28 = vrot.slane %v916_v25, 4  ;;  %v902_v30 = vadd.f32 %v901_v24, %v900_v20 }
 0x206   : > { %v842_v35 = vadd.f32 %v841_v32, %v840_v29 }
 0x207   : > { %v884_v37 = vadd.f32 1e-10, %v883_v33  ;;  %v764_v38 = vrot.slane %v763_v34, 1 }
 0x208   : > { %v843_v40 = vrot.slane %v842_v35, 1 }
 0x209   : > { %3356 = vrcp.f32 %v884_v37  ;;  %v765_v41 = vadd.f32 %v764_v38, %v763_v34  ;;  %v918_v38 = vadd.f32 %v917_v28, %v916_v25 }
 0x20a   : > { %v844_v42 = vadd.f32 %v843_v40, %v842_v35 }
 0x20b   : > { %v766_v43 = vadd.f32 1e-10, %v765_v41  ;;  %v903_v41 = vrot.slane %v902_v30, 2  ;;  %v919_v53 = vrot.slane %v918_v38, 2 }
 0x20c   : > { %v845_v44 = vadd.f32 1e-10, %v844_v42 }
 0x20d   : > { %3358 = vrcp.f32 %v766_v43  ;;  %v3216_v43 = vld [vmem:[%s4191_s16 + $0x78] sm:$0xff]   ;;  %v904_v55 = vadd.f32 %v903_v41, %v902_v30  ;;  %v920_v4 = vadd.f32 %v919_v53, %v918_v38 }
 0x20e   : > { %3360 = vrcp.f32 %v845_v44  ;;  %v3217_v44 = vld [vmem:[%s4191_s16 + $0xf0] sm:$0xff]   ;;  %2924 = vmatprep.subr.bf16.mxu0 %v3216_v43 }
 0x20f   : > { %2944 = vmatprep.subr.bf16.mxu1 %v3217_v44  ;;  %v905_v6 = vrot.slane %v904_v55, 1 }
 0x213   : > { %v3357_v45 = vpop.eup %3356 }
 0x214   : > { %v886_v46 = vmul.f32 %v3357_v45, %v3351_v16  ;;  %v814_v16 = vmul.f32 %v812_v15, %v3510_v11  ;;  %v911_v11 = vmax.f32 %v909_v18, %v910_v22  ;;  %v906_v18 = vadd.f32 %v905_v6, %v904_v55  ;;  %v3230_v6 = vld [vmem:[%s4191_s16 + $0x110] sm:$0xff]  }
 0x216   : > { %889 = vperm.xlu0 %3143, %v886_v46   ;;  %v815_v17 = vsel %vm714_vm0, %v814_v16, 0.0  ;;  %v912_v34 = vrot.slane %v911_v11, 2  ;;  %v921_v16 = vrot.slane %v920_v4, 1  ;;  %v3703_v24 = vmul.f32 0.125, %v906_v18 }
 0x217   : > { %v3359_v47 = vpop.eup %3358 }
 0x218   : > { %v768_v48 = vmul.f32 %v3359_v47, %v3353_v19  ;;  %v3361_v50 = vpop.eup %3360  ;;  %v925_v19 = vsel %vm714_vm0, %v3540_v39, -inf  ;;  %v3219_v47 = vld [vmem:[%s4191_s16 + $0xb0] sm:$0xff]  }
 0x219   : > { %v847_v51 = vmul.f32 %v3361_v50, %v3355_v21  ;;  %v816_v21 = vrot.slane %v815_v17, 4  ;;  %v926_v23 = vrot.slane %v925_v19, 4  ;;  %2945 = vmatpush3.bf16.msra.mxu1 %v3219_v47 }
 0x21a   : > { %771 = vperm.xlu1 %3144, %v768_v48   ;;  %v913_v48 = vmax.f32 %v911_v11, %v912_v34  ;;  %2946 = vmatprep.subr.bf16.mxu1 %v3220_v60 }
 0x21b   : > { %v817_v26 = vadd.f32 %v816_v21, %v815_v17  ;;  %v927_v29 = vmax.f32 %v925_v19, %v926_v23  ;;  %v922_v23 = vadd.f32 %v921_v16, %v920_v4  ;;  %v3233_v16 = vld [vmem:[%s4191_s16 + $0x1d0] sm:$0xff]  }
 0x21c   : > { %v914_v0 = vrot.slane %v913_v48, 1 }
 0x21d   : > { %v818_v32 = vrot.slane %v817_v26, 2  ;;  %v928_v40 = vrot.slane %v927_v29, 2  ;;  %2947 = vmatpush3.bf16.msra.mxu1 %v3222_v63 }
 0x21e   : > { %850 = vperm.xlu1 %3144, %v847_v51   ;;  %2976 = vmatprep.subr.bf16.mxu1 %v3224_v3  ;;  %v3692_v12 = vmax.f32 %v913_v48, %v914_v0  ;;  %v3226_v0 = vld [vmem:[%s4191_s16 + $0x108] sm:$0xff]  }
 0x21f   : > { %v819_v45 = vadd.f32 %v818_v32, %v817_v26  ;;  %v929_v54 = vmax.f32 %v927_v29, %v928_v40  ;;  %v3716_v29 = vmul.f32 0.14285715, %v922_v23 }
 0x221   : > { %v820_v57 = vrot.slane %v819_v45, 1  ;;  %v930_v5 = vrot.slane %v929_v54, 1 }
 0x223   : > { %v3688_v7 = vadd.f32 %v820_v57, %v819_v45  ;;  %v3696_v17 = vmax.f32 %v929_v54, %v930_v5  ;;  %v957_v45 = vmul.f32 %v3716_v29, %v3692_v12 }
 0x225   : > { %v3150_v22 = vpack.i.bf16 %v3692_v12, %v3696_v17  ;;  %v941_v40 = vmul.f32 %v3703_v24, %v3688_v7  ;;  %v943_v41 = vmul.f32 %v3716_v29, %v3688_v7 }
 0x295   : > { %v890_v27 = vpop.permute.xlu0 %889 }
 0x296   : > { %v892_v31 = vmul.f32 %v890_v27, %v3540_v39  ;;  %v3218_v39 = vld [vmem:[%s4191_s16 + $0x38] sm:$0xff]  }
 0x297   : > { %2925 = vmatpush3.bf16.msra.mxu0 %v3218_v39 }
 0x298   : > { %v893_v33 = vsel %vm714_vm0, %v892_v31, 0.0  ;;  %2954 = vmatprep.subr.bf16.mxu0 %v3221_v61 }
 0x299   : > { %v894_v35 = vrot.slane %v893_v33, 4  ;;  %v772_v37 = vpop.permute.xlu1 %771 }
 0x29a   : > { %v774_v42 = vmul.f32 %v772_v37, %v3535_v36 }
 0x29b   : > { %v895_v46 = vadd.f32 %v894_v35, %v893_v33  ;;  %v955_v35 = vmul.f32 %v3716_v29, %v3703_v24 }
 0x29c   : > { %v775_v36 = vsel %vm682_vm1, %v774_v42, 0.0  ;;  %v3165_v42 = vpack.i.bf16 %v941_v40, %v943_v41  ;;  %v3247_v40 = vld [vmem:[%s4191_s16 + $0x1a8] sm:$0xff]  }
 0x29d   : > { %v896_v50 = vrot.slane %v895_v46, 2  ;;  %v776_v51 = vrot.slane %v775_v36, 4  ;;  %v851_v52 = vpop.permute.xlu1 %850 }
 0x29e   : > { %v853_v56 = vmul.f32 %v851_v52, %v3554_v49 }
 0x29f   : > { %v897_v58 = vadd.f32 %v896_v50, %v895_v46  ;;  %v777_v59 = vadd.f32 %v776_v51, %v775_v36  ;;  %v959_v46 = vmul.f32 %v3696_v17, %v3716_v29 }
 0x2a0   : > { %v854_v62 = vsel %vm682_vm1, %v853_v56, 0.0  ;;  %v3223_v56 = vld [vmem:[%s4191_s16 + $0x100] sm:$0xff]  }
 0x2a1   : > { %v898_v1 = vrot.slane %v897_v58, 1  ;;  %v778_v49 = vrot.slane %v777_v59, 2  ;;  %v855_v2 = vrot.slane %v854_v62, 4  ;;  %v3185_v47 = vpack.i.bf16 %v957_v45, %v959_v46  ;;  %v3250_v46 = vld [vmem:[%s4191_s16 + $0x138] sm:$0xff]  }
 0x2a3   : > { %v3690_v8 = vadd.f32 %v898_v1, %v897_v58  ;;  %v779_v9 = vadd.f32 %v778_v49, %v777_v59  ;;  %v856_v10 = vadd.f32 %v855_v2, %v854_v62  ;;  %v3225_v59 = vld [vmem:[%s4191_s16 + $0x148] sm:$0xff]   ;;  %v3227_v1 = vld [vmem:[%s4191_s16 + $0x180] sm:$0xff]   ;;  %v3228_v49 = vld [vmem:[%s4191_s16 + $0x150] sm:$0xff]  }
 0x2a4   : > { %v3229_v2 = vld [vmem:[%s4191_s16 + $0x1c8] sm:$0xff]  }
 0x2a5   : > { %v780_v13 = vrot.slane %v779_v9, 1  ;;  %v857_v14 = vrot.slane %v856_v10, 2  ;;  %v3145_v15 = vpack.i.bf16 %v3688_v7, %v3690_v8  ;;  %v953_v33 = vmul.f32 %v3696_v17, %v3690_v8 }
 0x2a6   : > { %v951_v44 = vmul.f32 %v3692_v12, %v3690_v8 }
 0x2a7   : > { %v858_v19 = vadd.f32 %v857_v14, %v856_v10  ;;  %3146 = vrot.lane.b32.xlu1 %v3145_v15, %s3371_s22  ;;  %v3699_v20 = vadd.f32 %v780_v13, %v779_v9  ;;  %v3180_v38 = vpack.i.bf16 %v953_v33, %v955_v35  ;;  %v3231_v9 = vld [vmem:[%s4191_s16 + $0x188] sm:$0xff]   ;;  %v3232_v13 = vld [vmem:[%s4191_s16 + $0x158] sm:$0xff]   ;;  %v3244_v35 = vld [vmem:[%s4191_s16 + $0x170] sm:$0xff]  }
 0x2a8   : > { %v3242_v33 = vld [vmem:[%s4191_s16 + $0x128] sm:$0xff]  }
 0x2a9   : > { %v859_v21 = vrot.slane %v858_v19, 1  ;;  %v935_v11 = vmul.f32 %v3703_v24, %v3699_v20  ;;  %v937_v34 = vmul.f32 %v3716_v29, %v3699_v20  ;;  %v934_v5 = vmul.f32 %v3690_v8, %v3699_v20 }
 0x2ab   : > { %v3705_v25 = vadd.f32 %v859_v21, %v858_v19  ;;  %3151 = vrot.lane.b32.xlu1 %v3150_v22, %s3371_s22  ;;  %v938_v19 = vmul.f32 %v3696_v17, %v3699_v20  ;;  %v3234_v21 = vld [vmem:[%s4191_s16 + $0x118] sm:$0xff]   ;;  %v3235_v22 = vld [vmem:[%s4191_s16 + $0x190] sm:$0xff]  }
 0x2ad   : > { %v933_v26 = vmul.f32 %v3705_v25, %v3699_v20  ;;  %v945_v27 = vmul.f32 %v3690_v8, %v3705_v25  ;;  %v947_v28 = vmul.f32 %v3692_v12, %v3705_v25  ;;  %v939_v32 = vmul.f32 %v3705_v25, %v3688_v7 }
 0x2ae   : > { %v949_v43 = vmul.f32 %v3696_v17, %v3705_v25 }
 0x2af   : > { %v3155_v30 = vpack.i.bf16 %v933_v26, %v935_v11  ;;  %v3170_v31 = vpack.i.bf16 %v945_v27, %v947_v28  ;;  %v3160_v37 = vpack.i.bf16 %v937_v34, %v939_v32  ;;  %v3236_v26 = vld [vmem:[%s4191_s16 + $0x160] sm:$0xff]   ;;  %v3237_v27 = vld [vmem:[%s4191_s16 + $0x1d8] sm:$0xff]  }
 0x2b0   : > { %v3175_v39 = vpack.i.bf16 %v949_v43, %v951_v44  ;;  %v3238_v28 = vld [vmem:[%s4191_s16 + $0x120] sm:$0xff]   ;;  %v3249_v43 = vld [vmem:[%s4191_s16 + $0x1f0] sm:$0xff]  }
 0x2b1   : > { %3156 = vrot.lane.b32.xlu1 %v3155_v30, %s3371_s22  ;;  %3171 = vrot.lane.b32.xlu0 %v3170_v31, %s3371_s22  ;;  %v3239_v30 = vld [vmem:[%s4191_s16 + $0x198] sm:$0xff]   ;;  %v3240_v31 = vld [vmem:[%s4191_s16 + $0x168] sm:$0xff]  }
 0x2b2   : > { %v3241_v32 = vld [vmem:[%s4191_s16 + $0x1e0] sm:$0xff]  }
 0x2b3   : > { %v3243_v34 = vld [vmem:[%s4191_s16 + $0x1a0] sm:$0xff]  }
 0x2b5   : > { %3161 = vrot.lane.b32.xlu1 %v3160_v37, %s3371_s22  ;;  %3181 = vrot.lane.b32.xlu0 %v3180_v38, %s3371_s22  ;;  %v3245_v37 = vld [vmem:[%s4191_s16 + $0x1e8] sm:$0xff]   ;;  %v3246_v38 = vld [vmem:[%s4191_s16 + $0x130] sm:$0xff]  }
 0x2b9   : > { %3166 = vrot.lane.b32.xlu1 %v3165_v42, %s3371_s22  ;;  %v3248_v42 = vld [vmem:[%s4191_s16 + $0x178] sm:$0xff]  }
 0x2bd   : > { %3176 = vrot.lane.b32.xlu1 %v3175_v39, %s3371_s22  ;;  %v932_v39 = vmul.f32 %v3688_v7, %v3699_v20 }
 0x2c1   : > { %3186 = vrot.lane.b32.xlu1 %v3185_v47, %s3371_s22  ;;  %v3251_v47 = vld [vmem:[%s4191_s16 + $0x1b0] sm:$0xff]  }
 0x319   : > { %v3147_v36 = vpop.permute.xlu1 %3146 }
 0x31a   : > { %v3149_v48 = vunpack.i.h.bf16 %v3147_v36  ;;  %v3148_v50 = vunpack.i.l.bf16 %v3147_v36 }
 0x31c   : > { %v993_v51 = vsel %vm682_vm1, %v3705_v25, %v3148_v50  ;;  %v992_v52 = vsel %vm682_vm1, %v3699_v20, %v3149_v48  ;;  %v3252_v48 = vld [vmem:[%s4191_s16 + $0x1f8] sm:$0xff]   ;;  %v3253_v50 = vld [vmem:[%s4191_s16 + $0x240] sm:$0xff]  }
 0x31d   : > { %v3152_v53 = vpop.permute.xlu1 %3151  ;;  %v1051_v54 = vpack.c.bf16 %v993_v51, %v993_v51  ;;  %v1050_v55 = vpack.c.bf16 %v992_v52, %v992_v52 }
 0x31e   : > { %v3154_v57 = vunpack.i.h.bf16 %v3152_v53  ;;  %v3153_v58 = vunpack.i.l.bf16 %v3152_v53  ;;  %v942_v53 = vmul.f32 %v3692_v12, %v3688_v7 }
 0x31f   : > { %2253 = vmatprep.mubr.bf16.mxu0 %v1051_v54 }
 0x320   : > { %2254 = vmatmul.mubr.bf16.vlgmr.msra.gmra.mrb[0].mxu0 %v1050_v55  ;;  %v995_v60 = vsel %vm682_vm1, %v3716_v29, %v3153_v58  ;;  %v994_v61 = vsel %vm682_vm1, %v3703_v24, %v3154_v57  ;;  %v936_v55 = vmul.f32 %v3692_v12, %v3699_v20  ;;  %v3255_v57 = vld [vmem:[%s4191_s16 + $0x200] sm:$0xff]  }
 0x321   : > { %2955 = vmatpush3.bf16.msra.mxu0 %v3223_v56  ;;  %v1053_v62 = vpack.c.bf16 %v995_v60, %v995_v60  ;;  %v1052_v63 = vpack.c.bf16 %v994_v61, %v994_v61  ;;  %v3254_v56 = vld [vmem:[%s4191_s16 + $0x1b8] sm:$0xff]   ;;  %v3256_v60 = vld [vmem:[%s4191_s16 + $0x248] sm:$0xff]   ;;  %v3257_v61 = vld [vmem:[%s4191_s16 + $0x2c0] sm:$0xff]  }
 0x322   : > { %2956 = vmatprep.subr.bf16.mxu0 %v3225_v59 }
 0x323   : > { %v3771_v3 = vpop.permute.xlu1 %3156  ;;  %2293 = vmatprep.mubr.bf16.mxu1 %v1053_v62  ;;  %v3855_v36 = vpop.permute.xlu0 %3171  ;;  %v946_v62 = vmul.f32 %v3703_v24, %v3705_v25 }
 0x324   : > { %v3158_v4 = vunpack.i.l.bf16 %v3771_v3  ;;  %2294 = vmatmul.mubr.bf16.vlgmr.msra.gmra.mrb[0].mxu1 %v1052_v63  ;;  %v3159_v44 = vunpack.i.h.bf16 %v3771_v3  ;;  %v3173_v54 = vunpack.i.l.bf16 %v3855_v36  ;;  %v3260_v3 = vld [vmem:[%s4191_s16 + $0x250] sm:$0xff]  }
 0x325   : > { %2957 = vmatpush3.bf16.msra.mxu0 %v3226_v0  ;;  %2977 = vmatpush3.bf16.msra.mxu1 %v3227_v1  ;;  %v3258_v0 = vld [vmem:[%s4191_s16 + $0x208] sm:$0xff]   ;;  %v3259_v1 = vld [vmem:[%s4191_s16 + $0x280] sm:$0xff]  }
 0x326   : > { %2958 = vmatprep.subr.bf16.mxu0 %v3228_v49  ;;  %2978 = vmatprep.subr.bf16.mxu1 %v3229_v2  ;;  %v997_v10 = vsel %vm682_vm1, %v934_v5, %v3158_v4  ;;  %v996_v51 = vsel %vm682_vm1, %v932_v39, %v3159_v44  ;;  %v1035_v49 = vsel %vm682_vm1, %v946_v62, %v3173_v54  ;;  %v3261_v4 = vld [vmem:[%s4191_s16 + $0x2c8] sm:$0xff]   ;;  %v3285_v44 = vld [vmem:[%s4191_s16 + $0x340] sm:$0xff]   ;;  %v3174_v39 = vunpack.i.h.bf16 %v3855_v36 }
 0x327   : > { %v3786_v14 = vpop.permute.xlu1 %3161  ;;  %v1055_v15 = vpack.c.bf16 %v997_v10, %v997_v10  ;;  %v1054_v59 = vpack.c.bf16 %v996_v51, %v996_v51  ;;  %v1061_v5 = vpack.c.bf16 %v1035_v49, %v1035_v49  ;;  %v3264_v10 = vld [vmem:[%s4191_s16 + $0x258] sm:$0xff]   ;;  %v3287_v36 = vld [vmem:[%s4191_s16 + $0x300] sm:$0xff]   ;;  %v3297_v49 = vld [vmem:[%s4191_s16 + $0x3d0] sm:$0xff]  }
 0x328   : > { %v3163_v18 = vunpack.i.l.bf16 %v3786_v14  ;;  %v3164_v52 = vunpack.i.h.bf16 %v3786_v14  ;;  %v3266_v14 = vld [vmem:[%s4191_s16 + $0x218] sm:$0xff]   ;;  %v3289_v54 = vld [vmem:[%s4191_s16 + $0x3c0] sm:$0xff]  }
 0x329   : > { %2959 = vmatpush3.bf16.msra.mxu0 %v3230_v6  ;;  %2979 = vmatpush3.bf16.msra.mxu1 %v3231_v9  ;;  %v3262_v6 = vld [vmem:[%s4191_s16 + $0x210] sm:$0xff]   ;;  %v3263_v9 = vld [vmem:[%s4191_s16 + $0x288] sm:$0xff]  }
 0x32a   : > { %2333 = vmatprep.mubr.bf16.mxu0 %v1055_v15  ;;  %2960 = vmatprep.subr.bf16.mxu0 %v3232_v13  ;;  %v999_v23 = vsel %vm682_vm1, %v938_v19, %v3163_v18  ;;  %v998_v20 = vsel %vm682_vm1, %v936_v55, %v3164_v52  ;;  %v3265_v13 = vld [vmem:[%s4191_s16 + $0x2d0] sm:$0xff]   ;;  %v3269_v18 = vld [vmem:[%s4191_s16 + $0x2d8] sm:$0xff]   ;;  %v3270_v19 = vld [vmem:[%s4191_s16 + $0x220] sm:$0xff]   ;;  %v954_v55 = vmul.f32 %v3692_v12, %v3703_v24 }
 0x32b   : > { %2980 = vmatprep.subr.bf16.mxu1 %v3233_v16  ;;  %v1057_v11 = vpack.c.bf16 %v999_v23, %v999_v23  ;;  %v3837_v41 = vpop.permute.xlu1 %3166  ;;  %v1056_v2 = vpack.c.bf16 %v998_v20, %v998_v20  ;;  %v3267_v15 = vld [vmem:[%s4191_s16 + $0x290] sm:$0xff]   ;;  %v3268_v16 = vld [vmem:[%s4191_s16 + $0x260] sm:$0xff]  }
 0x32c   : > { %v3168_v45 = vunpack.i.l.bf16 %v3837_v41  ;;  %v3273_v23 = vld [vmem:[%s4191_s16 + $0x2e0] sm:$0xff]   ;;  %v3292_v20 = vld [vmem:[%s4191_s16 + $0x350] sm:$0xff]  }
 0x32d   : > { %2961 = vmatpush3.bf16.msra.mxu0 %v3234_v21  ;;  %2981 = vmatpush3.bf16.msra.mxu1 %v3235_v22  ;;  %v3271_v21 = vld [vmem:[%s4191_s16 + $0x298] sm:$0xff]   ;;  %v3272_v22 = vld [vmem:[%s4191_s16 + $0x268] sm:$0xff]  }
 0x32e   : > { %2373 = vmatprep.mubr.bf16.mxu1 %v1057_v11  ;;  %2962 = vmatprep.subr.bf16.mxu0 %v3236_v26  ;;  %v1033_v58 = vsel %vm682_vm1, %v942_v53, %v3168_v45  ;;  %v3274_v26 = vld [vmem:[%s4191_s16 + $0x228] sm:$0xff]   ;;  %v3275_v11 = vld [vmem:[%s4191_s16 + $0x2a0] sm:$0xff]  }
 0x32f   : > { %2982 = vmatprep.subr.bf16.mxu1 %v3237_v27  ;;  %v1059_v63 = vpack.c.bf16 %v1033_v58, %v1033_v58  ;;  %v3276_v27 = vld [vmem:[%s4191_s16 + $0x270] sm:$0xff]   ;;  %v3291_v58 = vld [vmem:[%s4191_s16 + $0x380] sm:$0xff]  }
 0x331   : > { %2963 = vmatpush3.bf16.msra.mxu0 %v3238_v28  ;;  %2983 = vmatpush3.bf16.msra.mxu1 %v3239_v30  ;;  %v3277_v28 = vld [vmem:[%s4191_s16 + $0x2e8] sm:$0xff]   ;;  %v3278_v30 = vld [vmem:[%s4191_s16 + $0x230] sm:$0xff]  }
 0x332   : > { %2964 = vmatprep.subr.bf16.mxu0 %v3240_v31  ;;  %2984 = vmatprep.subr.bf16.mxu1 %v3241_v32  ;;  %v3279_v31 = vld [vmem:[%s4191_s16 + $0x2a8] sm:$0xff]   ;;  %v3953_v32 = vpop.permute.xlu1 %3176 }
 0x335   : > { %2965 = vmatpush3.bf16.msra.mxu0 %v3242_v33  ;;  %2985 = vmatpush3.bf16.msra.mxu1 %v3243_v34  ;;  %v3280_v33 = vld [vmem:[%s4191_s16 + $0x278] sm:$0xff]   ;;  %v3281_v34 = vld [vmem:[%s4191_s16 + $0x2f0] sm:$0xff]  }
 0x336   : > { %2966 = vmatprep.subr.bf16.mxu0 %v3244_v35  ;;  %2986 = vmatprep.subr.bf16.mxu1 %v3245_v37  ;;  %v3169_v35 = vunpack.i.h.bf16 %v3837_v41  ;;  %v940_v37 = vmul.f32 %v3690_v8, %v3688_v7  ;;  %v3284_v41 = vld [vmem:[%s4191_s16 + $0x2f8] sm:$0xff]  }
 0x338   : > { %v1032_v45 = vsel %vm682_vm1, %v940_v37, %v3169_v35  ;;  %v958_v35 = vmul.f32 %v3696_v17, %v3692_v12  ;;  %v952_v37 = vmul.f32 %v3716_v29, %v3690_v8  ;;  %v3320_v12 = vld [vmem:[%s4191_s16 + $0x448] sm:$0xff]  }
 0x339   : > { %2967 = vmatpush3.bf16.msra.mxu0 %v3246_v38  ;;  %2987 = vmatpush3.bf16.msra.mxu1 %v3247_v40  ;;  %v3178_v38 = vunpack.i.l.bf16 %v3953_v32  ;;  %v3282_v40 = vld [vmem:[%s4191_s16 + $0x238] sm:$0xff]   ;;  %v1058_v52 = vpack.c.bf16 %v1032_v45, %v1032_v45  ;;  %v3323_v45 = vld [vmem:[%s4191_s16 + $0x410] sm:$0xff]  }
 0x33a   : > { %2968 = vmatprep.subr.bf16.mxu0 %v3248_v42  ;;  %2988 = vmatprep.subr.bf16.mxu1 %v3249_v43  ;;  %v3283_v42 = vld [vmem:[%s4191_s16 + $0x2b0] sm:$0xff]   ;;  %v3971_v43 = vpop.permute.xlu0 %3181 }
 0x33d   : > { %2969 = vmatpush3.bf16.msra.mxu0 %v3250_v46  ;;  %2989 = vmatpush3.bf16.msra.mxu1 %v3251_v47  ;;  %v950_v46 = vmul.f32 %v3703_v24, %v3690_v8  ;;  %v944_v47 = vmul.f32 %v3696_v17, %v3688_v7  ;;  %v3288_v7 = vld [vmem:[%s4191_s16 + $0x348] sm:$0xff]  }
 0x33e   : > { %2990 = vmatprep.subr.bf16.mxu1 %v3252_v48  ;;  %2998 = vmatprep.subr.bf16.mxu0 %v3253_v50  ;;  %v3183_v48 = vunpack.i.l.bf16 %v3971_v43  ;;  %v3286_v50 = vld [vmem:[%s4191_s16 + $0x2b8] sm:$0xff]  }
 0x33f   : > { %v1037_v51 = vsel %vm682_vm1, %v950_v46, %v3178_v38  ;;  %v1034_v53 = vsel %vm682_vm1, %v944_v47, %v3174_v39  ;;  %v3318_v38 = vld [vmem:[%s4191_s16 + $0x3b8] sm:$0xff]   ;;  %v3322_v39 = vld [vmem:[%s4191_s16 + $0x450] sm:$0xff]  }
 0x340   : > { %2334 = vmatmul.mubr.bf16.vlgmr.msra.gmra.mrb[4].mxu0 %v1054_v59  ;;  %v1039_v59 = vsel %vm682_vm1, %v954_v55, %v3183_v48  ;;  %v3324_v46 = vld [vmem:[%s4191_s16 + $0x458] sm:$0xff]   ;;  %v3326_v48 = vld [vmem:[%s4191_s16 + $0x460] sm:$0xff]   ;;  %v956_v55 = vmul.f32 %v3696_v17, %v3703_v24  ;;  %v2583_v17 = vld [vmem:[%s4193_s18 + $0x8] sm:$0xff] }
 0x341   : > { %2991 = vmatpush3.bf16.msra.mxu1 %v3254_v56  ;;  %2999 = vmatpush3.bf16.msra.mxu0 %v3255_v57  ;;  %v1063_v56 = vpack.c.bf16 %v1037_v51, %v1037_v51  ;;  %v3290_v57 = vld [vmem:[%s4191_s16 + $0x308] sm:$0xff]   ;;  %v1065_v62 = vpack.c.bf16 %v1039_v59, %v1039_v59  ;;  %v3325_v47 = vld [vmem:[%s4191_s16 + $0x418] sm:$0xff]   ;;  %v3372_v59 = vmov 0.0|0.0  }
 0x342   : > { %2413 = vmatprep.mubr.bf16.mxu0 %v1059_v63  ;;  %3000 = vmatprep.subr.bf16.mxu0 %v3256_v60  ;;  %v1060_v60 = vpack.c.bf16 %v1034_v53, %v1034_v53  ;;  %v3294_v63 = vld [vmem:[%s4191_s16 + $0x310] sm:$0xff]   ;;  %v3329_v51 = vld [vmem:[%s4191_s16 + $0x428] sm:$0xff]   ;;  %v3332_v53 = vld [vmem:[%s4191_s16 + $0x478] sm:$0xff]  }
 0x343   : > { %3020 = vmatprep.subr.bf16.mxu1 %v3257_v61  ;;  %v3293_v61 = vld [vmem:[%s4191_s16 + $0x3c8] sm:$0xff]  }
 0x344   : > { %2374 = vmatmul.mubr.bf16.vlgmr.msra.gmra.mrb[4].mxu1 %v1056_v2  ;;  %v3298_v2 = vld [vmem:[%s4191_s16 + $0x318] sm:$0xff]  }
 0x345   : > { %3001 = vmatpush3.bf16.msra.mxu0 %v3258_v0  ;;  %3021 = vmatpush3.bf16.msra.mxu1 %v3259_v1  ;;  %v3295_v0 = vld [vmem:[%s4191_s16 + $0x388] sm:$0xff]   ;;  %v3296_v1 = vld [vmem:[%s4191_s16 + $0x358] sm:$0xff]  }
 0x346   : > { %2453 = vmatprep.mubr.bf16.mxu1 %v1061_v5  ;;  %3002 = vmatprep.subr.bf16.mxu0 %v3260_v3  ;;  %v3299_v3 = vld [vmem:[%s4191_s16 + $0x390] sm:$0xff]   ;;  %v3301_v5 = vld [vmem:[%s4191_s16 + $0x3d8] sm:$0xff]  }
 0x347   : > { %3022 = vmatprep.subr.bf16.mxu1 %v3261_v4  ;;  %v3300_v4 = vld [vmem:[%s4191_s16 + $0x360] sm:$0xff]  }
 0x349   : > { %3003 = vmatpush3.bf16.msra.mxu0 %v3262_v6  ;;  %3023 = vmatpush3.bf16.msra.mxu1 %v3263_v9  ;;  %v3302_v6 = vld [vmem:[%s4191_s16 + $0x320] sm:$0xff]   ;;  %v3303_v9 = vld [vmem:[%s4191_s16 + $0x398] sm:$0xff]  }
 0x34a   : > { %3004 = vmatprep.subr.bf16.mxu0 %v3264_v10  ;;  %3024 = vmatprep.subr.bf16.mxu1 %v3265_v13  ;;  %v3304_v10 = vld [vmem:[%s4191_s16 + $0x368] sm:$0xff]   ;;  %v3305_v13 = vld [vmem:[%s4191_s16 + $0x3e0] sm:$0xff]  }
 0x34d   : > { %3005 = vmatpush3.bf16.msra.mxu0 %v3266_v14  ;;  %3025 = vmatpush3.bf16.msra.mxu1 %v3267_v15  ;;  %v3306_v14 = vld [vmem:[%s4191_s16 + $0x328] sm:$0xff]   ;;  %v3307_v15 = vld [vmem:[%s4191_s16 + $0x3a0] sm:$0xff]  }
 0x34e   : > { %3006 = vmatprep.subr.bf16.mxu0 %v3268_v16  ;;  %3026 = vmatprep.subr.bf16.mxu1 %v3269_v18  ;;  %v3308_v16 = vld [vmem:[%s4191_s16 + $0x370] sm:$0xff]   ;;  %v3309_v18 = vld [vmem:[%s4191_s16 + $0x3e8] sm:$0xff]  }
 0x351   : > { %3007 = vmatpush3.bf16.msra.mxu0 %v3270_v19  ;;  %3027 = vmatpush3.bf16.msra.mxu1 %v3271_v21  ;;  %v3310_v19 = vld [vmem:[%s4191_s16 + $0x330] sm:$0xff]   ;;  %v3311_v21 = vld [vmem:[%s4191_s16 + $0x3a8] sm:$0xff]  }
 0x352   : > { %3008 = vmatprep.subr.bf16.mxu0 %v3272_v22  ;;  %3028 = vmatprep.subr.bf16.mxu1 %v3273_v23  ;;  %v4069_v22 = vpop.permute.xlu1 %3186  ;;  %v3312_v23 = vld [vmem:[%s4191_s16 + $0x378] sm:$0xff]  }
 0x355   : > { %3009 = vmatpush3.bf16.msra.mxu0 %v3274_v26  ;;  %3029 = vmatpush3.bf16.msra.mxu1 %v3275_v11  ;;  %v3313_v26 = vld [vmem:[%s4191_s16 + $0x3f0] sm:$0xff]   ;;  %v3179_v11 = vunpack.i.h.bf16 %v3953_v32  ;;  %v3316_v32 = vld [vmem:[%s4191_s16 + $0x3f8] sm:$0xff]  }
 0x356   : > { %3010 = vmatprep.subr.bf16.mxu0 %v3276_v27  ;;  %3030 = vmatprep.subr.bf16.mxu1 %v3277_v28  ;;  %v948_v27 = vmul.f32 %v3716_v29, %v3705_v25  ;;  %v3188_v28 = vunpack.i.l.bf16 %v4069_v22  ;;  %v3317_v25 = vld [vmem:[%s4191_s16 + $0x440] sm:$0xff]  }
 0x359   : > { %3011 = vmatpush3.bf16.msra.mxu0 %v3278_v30  ;;  %3031 = vmatpush3.bf16.msra.mxu1 %v3279_v31  ;;  %v3314_v30 = vld [vmem:[%s4191_s16 + $0x338] sm:$0xff]   ;;  %v3315_v31 = vld [vmem:[%s4191_s16 + $0x3b0] sm:$0xff]  }
 0x35a   : > { %3012 = vmatprep.subr.bf16.mxu0 %v3280_v33  ;;  %3032 = vmatprep.subr.bf16.mxu1 %v3281_v34  ;;  %v3184_v33 = vunpack.i.h.bf16 %v3971_v43  ;;  %v1036_v34 = vsel %vm682_vm1, %v948_v27, %v3179_v11 }
 0x35b   : > { %v1062_v43 = vpack.c.bf16 %v1036_v34, %v1036_v34 }
 0x35c   : > { %v1038_v8 = vsel %vm682_vm1, %v952_v37, %v3184_v33 }
 0x35d   : > { %3013 = vmatpush3.bf16.msra.mxu0 %v3282_v40  ;;  %3033 = vmatpush3.bf16.msra.mxu1 %v3283_v42  ;;  %v3319_v40 = vld [vmem:[%s4191_s16 + $0x400] sm:$0xff]   ;;  %v1049_v42 = vsel %vm682_vm1, %v958_v35, %v3188_v28 }
 0x35e   : > { %3034 = vmatprep.subr.bf16.mxu1 %v3284_v41  ;;  %3042 = vmatprep.subr.bf16.mxu0 %v3285_v44  ;;  %v1067_v29 = vpack.c.bf16 %v1049_v42, %v1049_v42  ;;  %v3321_v41 = vld [vmem:[%s4191_s16 + $0x408] sm:$0xff]   ;;  %v1064_v44 = vpack.c.bf16 %v1038_v8, %v1038_v8 }
 0x360   : > { %2414 = vmatmul.mubr.bf16.vlgmr.msra.gmra.mrb[8].mxu0 %v1058_v52  ;;  %v3330_v52 = vld [vmem:[%s4191_s16 + $0x470] sm:$0xff]  }
 0x361   : > { %3035 = vmatpush3.bf16.msra.mxu1 %v3286_v50  ;;  %3043 = vmatpush3.bf16.msra.mxu0 %v3287_v36  ;;  %v3327_v50 = vld [vmem:[%s4191_s16 + $0x420] sm:$0xff]   ;;  %v3328_v36 = vld [vmem:[%s4191_s16 + $0x468] sm:$0xff]  }
 0x362   : > { %2493 = vmatprep.mubr.bf16.mxu0 %v1063_v56  ;;  %3044 = vmatprep.subr.bf16.mxu0 %v3288_v7  ;;  %v3331_v7 = vld [vmem:[%s4191_s16 + $0x430] sm:$0xff]   ;;  %v3333_v56 = vld [vmem:[%s4191_s16 + $0x438] sm:$0xff]  }
 0x363   : > { %3064 = vmatprep.subr.bf16.mxu1 %v3289_v54  ;;  %v3189_v54 = vunpack.i.h.bf16 %v4069_v22 }
 0x364   : > { %2454 = vmatmul.mubr.bf16.vlgmr.msra.gmra.mrb[8].mxu1 %v1060_v60  ;;  %v2582_v60 = vld [vmem:[%s4193_s18] sm:$0xff] }
 0x365   : > { %3045 = vmatpush3.bf16.msra.mxu0 %v3290_v57  ;;  %3065 = vmatpush3.bf16.msra.mxu1 %v3291_v58  ;;  %v1048_v57 = vsel %vm682_vm1, %v956_v55, %v3189_v54 }
 0x366   : > { %2533 = vmatprep.mubr.bf16.mxu1 %v1065_v62  ;;  %3046 = vmatprep.subr.bf16.mxu0 %v3292_v20  ;;  %v1066_v58 = vpack.c.bf16 %v1048_v57, %v1048_v57  ;;  %v3125_v20 = vpack.c.bf16 %v2583_v17, %v2582_v60 }
 0x367   : > { %3066 = vmatprep.subr.bf16.mxu1 %v3293_v61 }
 0x369   : > { %3047 = vmatpush3.bf16.msra.mxu0 %v3294_v63  ;;  %3067 = vmatpush3.bf16.msra.mxu1 %v3295_v0  ;;  %v1356_v0 = vld [vmem:[%s4192_s17] sm:$0x1] }
 0x36a   : > { %3048 = vmatprep.subr.bf16.mxu0 %v3296_v1  ;;  %3068 = vmatprep.subr.bf16.mxu1 %v3297_v49  ;;  %v2584_v49 = vld [vmem:[%s4193_s18 + $0x10] sm:$0xff] }
 0x36d   : > { %3049 = vmatpush3.bf16.msra.mxu0 %v3298_v2  ;;  %3069 = vmatpush3.bf16.msra.mxu1 %v3299_v3  ;;  %v2585_v2 = vld [vmem:[%s4193_s18 + $0x18] sm:$0xff] }
 0x36e   : > { %3050 = vmatprep.subr.bf16.mxu0 %v3300_v4  ;;  %3070 = vmatprep.subr.bf16.mxu1 %v3301_v5  ;;  %v3128_v4 = vpack.c.bf16 %v2585_v2, %v2584_v49 }
 0x371   : > { %3051 = vmatpush3.bf16.msra.mxu0 %v3302_v6  ;;  %3071 = vmatpush3.bf16.msra.mxu1 %v3303_v9 }
 0x372   : > { %3052 = vmatprep.subr.bf16.mxu0 %v3304_v10  ;;  %3072 = vmatprep.subr.bf16.mxu1 %v3305_v13 }
 0x375   : > { %3053 = vmatpush3.bf16.msra.mxu0 %v3306_v14  ;;  %3073 = vmatpush3.bf16.msra.mxu1 %v3307_v15  ;;  %v3374_v14 = vmov 0.0  }
 0x376   : > { %3054 = vmatprep.subr.bf16.mxu0 %v3308_v16  ;;  %3074 = vmatprep.subr.bf16.mxu1 %v3309_v18 }
 0x379   : > { %3055 = vmatpush3.bf16.msra.mxu0 %v3310_v19  ;;  %3075 = vmatpush3.bf16.msra.mxu1 %v3311_v21 }
 0x37a   : > { %3056 = vmatprep.subr.bf16.mxu0 %v3312_v23  ;;  %3076 = vmatprep.subr.bf16.mxu1 %v3313_v26 }
 0x37d   : > { %3057 = vmatpush3.bf16.msra.mxu0 %v3314_v30  ;;  %3077 = vmatpush3.bf16.msra.mxu1 %v3315_v31 }
 0x37e   : > { %3078 = vmatprep.subr.bf16.mxu1 %v3316_v32  ;;  %3086 = vmatprep.subr.bf16.mxu0 %v3317_v25 }
 0x380   : > { %2494 = vmatmul.mubr.bf16.vlgmr.msra.gmra.mrb[12].mxu0 %v1062_v43 }
 0x381   : > { %3079 = vmatpush3.bf16.msra.mxu1 %v3318_v38  ;;  %3087 = vmatpush3.bf16.msra.mxu0 %v3319_v40 }
 0x382   : > { %2573 = vmatprep.mubr.bf16.mxu0 %v1067_v29  ;;  %3088 = vmatprep.subr.bf16.mxu0 %v3320_v12 }
 0x383   : > { %3124 = vmatprep.subr.bf16.mxu1 %v3372_v59 }
 0x384   : > { %2534 = vmatmul.mubr.bf16.vlgmr.msra.gmra.mrb[12].mxu1 %v1064_v44 }
 0x385   : > { %3089 = vmatpush3.bf16.msra.mxu0 %v3321_v41  ;;  %3126 = vmatpush3.bf16.msra.mxu1 %v3125_v20 }
 0x386   : > { %3090 = vmatprep.subr.bf16.mxu0 %v3322_v39  ;;  %3127 = vmatprep.subr.bf16.mxu1 %v3372_v59  ;;  %v2586_v59 = vld [vmem:[#allocation2] sm:$0x1] }
 0x387   : > { %3121 = vmatprep.mubr.msk.f32.mxu1 %vm3373_vm4, %v3374_v14 }
 0x389   : > { %3091 = vmatpush3.bf16.msra.mxu0 %v3323_v45  ;;  %3129 = vmatpush3.bf16.msra.mxu1 %v3128_v4 }
 0x38a   : > { %3092 = vmatprep.subr.bf16.mxu0 %v3324_v46 }
 0x38d   : > { %3093 = vmatpush3.bf16.msra.mxu0 %v3325_v47 }
 0x38e   : > { %3094 = vmatprep.subr.bf16.mxu0 %v3326_v48 }
 0x391   : > { %3095 = vmatpush3.bf16.msra.mxu0 %v3327_v50 }
 0x392   : > { %3096 = vmatprep.subr.bf16.mxu0 %v3328_v36 }
 0x395   : > { %3097 = vmatpush3.bf16.msra.mxu0 %v3329_v51 }
 0x396   : > { %3098 = vmatprep.subr.bf16.mxu0 %v3330_v52 }
 0x399   : > { %3099 = vmatpush3.bf16.msra.mxu0 %v3331_v7 }
 0x39a   : > { %3100 = vmatprep.subr.bf16.mxu0 %v3332_v53 }
 0x39d   : > { %3101 = vmatpush3.bf16.msra.mxu0 %v3333_v56 }
 0x3a0   : > { %2574 = vmatmul.mubr.bf16.vlgmr.msra.gmra.mrb[16].mxu0 %v1066_v58 }
 0x3f3   : > { %v2926_v24 = vpop.f32.mrb[0].mxu0 }
 0x3f4   : > { %v2927_v61 = vpop.f32.mrb[1].mxu0 }
 0x3f5   : > { %v2928_v62 = vadd.f32 %v2927_v61, %v2926_v24  ;;  %v2929_v63 = vpop.f32.mrb[2].mxu0 }
 0x3f6   : > { %v2930_v1 = vpop.f32.mrb[3].mxu0 }
 0x3f7   : > { %v2948_v3 = vpop.f32.mrb[0].mxu1  ;;  %v2256_v6 = vadd.f32 %v2928_v62, %v1356_v0 }
 0x3f8   : > { %v2949_v5 = vpop.f32.mrb[1].mxu1 }
 0x3f9   : > { %v2950_v9 = vadd.f32 %v2949_v5, %v2948_v3  ;;  %v2951_v10 = vpop.f32.mrb[2].mxu1 }
 0x3fa   : > { %v2952_v13 = vpop.f32.mrb[3].mxu1 }
 0x3fb   : > { %v2296_v15 = vadd.f32 %v2950_v9, %v2256_v6 }
 0x413   : > { %v2970_v16 = vpop.f32.mrb[4].mxu0 }
 0x414   : > { %v2971_v18 = vpop.f32.mrb[5].mxu0 }
 0x415   : > { %v2972_v19 = vadd.f32 %v2971_v18, %v2970_v16  ;;  %v2973_v21 = vpop.f32.mrb[6].mxu0 }
 0x416   : > { %v2974_v22 = vpop.f32.mrb[7].mxu0 }
 0x417   : > { %v2336_v23 = vadd.f32 %v2972_v19, %v2296_v15  ;;  %v2992_v26 = vpop.f32.mrb[4].mxu1 }
 0x418   : > { %v2993_v11 = vpop.f32.mrb[5].mxu1 }
 0x419   : > { %v2994_v27 = vadd.f32 %v2993_v11, %v2992_v26  ;;  %v2995_v28 = vpop.f32.mrb[6].mxu1 }
 0x41a   : > { %v2996_v30 = vpop.f32.mrb[7].mxu1 }
 0x41b   : > { %v2376_v31 = vadd.f32 %v2994_v27, %v2336_v23 }
 0x433   : > { %v3014_v32 = vpop.f32.mrb[8].mxu0 }
 0x434   : > { %v3015_v25 = vpop.f32.mrb[9].mxu0 }
 0x435   : > { %v3016_v33 = vadd.f32 %v3015_v25, %v3014_v32  ;;  %v3017_v34 = vpop.f32.mrb[10].mxu0 }
 0x436   : > { %v3018_v35 = vpop.f32.mrb[11].mxu0 }
 0x437   : > { %v2416_v37 = vadd.f32 %v3016_v33, %v2376_v31  ;;  %v3036_v38 = vpop.f32.mrb[8].mxu1 }
 0x438   : > { %v3037_v40 = vpop.f32.mrb[9].mxu1 }
 0x439   : > { %v3038_v42 = vadd.f32 %v3037_v40, %v3036_v38  ;;  %v3039_v43 = vpop.f32.mrb[10].mxu1 }
 0x43a   : > { %v3040_v12 = vpop.f32.mrb[11].mxu1 }
 0x43b   : > { %v2456_v8 = vadd.f32 %v3038_v42, %v2416_v37 }
 0x453   : > { %v3058_v29 = vpop.f32.mrb[12].mxu0 }
 0x454   : > { %v3059_v41 = vpop.f32.mrb[13].mxu0 }
 0x455   : > { %v3060_v44 = vadd.f32 %v3059_v41, %v3058_v29  ;;  %v3061_v39 = vpop.f32.mrb[14].mxu0 }
 0x456   : > { %v3062_v45 = vpop.f32.mrb[15].mxu0 }
 0x457   : > { %v2496_v46 = vadd.f32 %v3060_v44, %v2456_v8  ;;  %v3080_v47 = vpop.f32.mrb[12].mxu1 }
 0x458   : > { %v3081_v48 = vpop.f32.mrb[13].mxu1 }
 0x459   : > { %v3082_v50 = vadd.f32 %v3081_v48, %v3080_v47  ;;  %v3083_v36 = vpop.f32.mrb[14].mxu1 }
 0x45a   : > { %v3084_v51 = vpop.f32.mrb[15].mxu1 }
 0x45b   : > { %v2536_v52 = vadd.f32 %v3082_v50, %v2496_v46 }
 0x473   : > { %v3102_v7 = vpop.f32.mrb[16].mxu0 }
 0x474   : > { %v3103_v53 = vpop.f32.mrb[17].mxu0 }
 0x475   : > { %v3104_v54 = vadd.f32 %v3103_v53, %v3102_v7  ;;  %v3105_v55 = vpop.f32.mrb[18].mxu0 }
 0x476   : > { %v3106_v56 = vpop.f32.mrb[19].mxu0 }
 0x477   : > { %v2576_v57 = vadd.f32 %v3104_v54, %v2536_v52 }
 0x479   : > { %v2581_v58 = vmax.f32 %v2576_v57, 0.0 }
 0x47b   : > { %3122 = vmatmul.mubr.msk.f32.vlgmr.msra.gmra.mrb[16].mxu1 %vm2587_vm5, %v2581_v58 }
 0x54e   : > { %v2657_v60 = vpop.f32.mrb[16].mxu1 }
 0x54f   : > { %v2658_v17 = vadd.f32 %v2657_v60, %v2586_v59  ;;  %v3123_v24 = vpop.f32.mrb[17].mxu1 }
 0x551   : > { %2662 = vst.msk [vmem:[%s675_s29] sm:$0x1] %vm2661_vm6, %v2658_v17 }
 0x552 PF: > { %s32_s23 = sadd.s32 1, %s3368_s23  }
 0x553   : > { %p29_p4 = scmp.ge.s32.totalorder %s32_s23, 4  }
 0x555   :  { %31 = sbr.rel (!%p29_p4) target bundleno = 6 (0x6), region = 139 }

</bundles_post_ra>
